<compile_context>
chip_gen: v7x
topology: tpu7x:2x2x1
jax: 0.10.0
libtpu: 0.0.40
codegen_flags: <defaults>
</compile_context>

<pallas_src>
import functools

import jax
import jax.numpy as jnp
import numpy as np
from jax.experimental import pallas as pl
from jax.experimental.pallas import tpu as pltpu

LN_EPS = 1e-5   # PyTorch nn.LayerNorm default
LANE = 128


def _rup(n, m):
    return ((n + m - 1) // m) * m


def _choose_tb(batch):
    """Prefer a big MXU M tile, but keep >= 2 grid steps so v7x's two
    TensorCores both get work via the 'parallel' batch axis."""
    for tb in (256, 128, 64, 32, 16, 8):
        if _rup(batch, tb) // tb >= 2:
            return tb
    return 8


def _resident_spec(shape):
    """Fully VMEM-resident parameter: constant block index.  Single-buffered
    (the block never changes, so double-buffering only wastes VMEM)."""
    try:
        return pl.BlockSpec(shape, lambda i: (0,) * len(shape),
                            pipeline_mode=pl.Buffered(1))
    except TypeError:   # older jax without pipeline_mode kwarg
        return pl.BlockSpec(shape, lambda i: (0,) * len(shape))


# --------------------------------------------------------------------------
# Kernel
# --------------------------------------------------------------------------
def mlp_kernel(*refs, real_dims):
    """Fused MLP forward for one batch tile.

    refs = (x_ref, W_0, ..., W_{L-1}, vec_ref, out_ref)
      x_ref   : (tb, in_features)  f32, unpadded feature dim
      W_i     : bf16, zero-padded to lane multiples (first W keeps K = in_features)
      vec_ref : f32 (n_rows, max_pad) slab: per hidden block [b, gamma, beta],
                then the final bias row
    real_dims: tuple of the real (unpadded) layer widths (in, h, ..., out).
    """
    x_ref = refs[0]
    out_ref = refs[-1]
    vec_ref = refs[-2]
    w_refs = refs[1:-2]
    num_layers = len(w_refs)

    h = x_ref[...].astype(jnp.bfloat16)          # cast once, hidden under MXU/DMA
    row = 0
    for li in range(num_layers - 1):             # Linear -> ReLU -> LayerNorm
        W = w_refs[li]
        kout_p = W.shape[1]
        n_real = real_dims[li + 1]
        inv_n = 1.0 / float(n_real)

        b = vec_ref[row:row + 1, :kout_p]
        z = jnp.dot(h, W[...], preferred_element_type=jnp.float32) + b
        z = jnp.maximum(z, 0.0)                  # ReLU

        # Two-pass LayerNorm over the real feature count.  Padded lanes of z
        # are exactly zero (zero-padded W columns / bias), so the mean sum is
        # unaffected; the centered term is masked so padded lanes don't
        # contaminate the variance.
        mean = jnp.sum(z, axis=-1, keepdims=True) * inv_n
        lane = jax.lax.broadcasted_iota(jnp.int32, (1, kout_p), 1)
        mask = (lane < n_real).astype(jnp.float32)
        c = (z - mean) * mask
        var = jnp.sum(c * c, axis=-1, keepdims=True) * inv_n
        z = c * jax.lax.rsqrt(var + LN_EPS)
        g = vec_ref[row + 1:row + 2, :kout_p]
        be = vec_ref[row + 2:row + 3, :kout_p]
        z = z * g + be                           # gamma/beta zero-padded -> padded lanes stay 0
        row += 3
        h = z.astype(jnp.bfloat16)

    # Final Linear + Sigmoid
    W = w_refs[-1]
    kout_p = W.shape[1]
    b = vec_ref[row:row + 1, :kout_p]
    z = jnp.dot(h, W[...], preferred_element_type=jnp.float32) + b
    out_ref[...] = jax.nn.sigmoid(z).astype(out_ref.dtype)


# --------------------------------------------------------------------------
# One-time parameter preparation (hoisted out of the per-call path)
# --------------------------------------------------------------------------
def prepare_mlp_params(params):
    """params: flat list [W, b, gamma, beta] * num_hidden_blocks + [W_last, b_last],
    W shaped (fan_in, fan_out).  Returns a persistent padded/cast pytree:
      weights : list of bf16 weights (first W keeps K = in_features; all other
                dims zero-padded to multiples of 128)
      vecs    : f32 (n_rows, max_pad) slab of bias/gamma/beta rows
      dims    : tuple of real layer widths (static metadata)
    """
    num_hidden = (len(params) - 2) // 4

    dims = [int(params[0].shape[0])]
    idx = 0
    for _ in range(num_hidden):
        dims.append(int(params[idx].shape[1]))
        idx += 4
    dims.append(int(params[idx].shape[1]))

    max_pad = max(_rup(d, LANE) for d in dims[1:])

    weights, vec_rows = [], []
    idx = 0
    prev_pad = dims[0]                    # first matmul K stays unpadded
    for _ in range(num_hidden):
        W, b, g, be = params[idx:idx + 4]
        idx += 4
        kin, kout = W.shape
        kout_p = _rup(kout, LANE)
        weights.append(jnp.pad(W, ((0, prev_pad - kin), (0, kout_p - kout)))
                       .astype(jnp.bfloat16))
        for v in (b, g, be):
            vec_rows.append(jnp.pad(v.astype(jnp.float32), (0, max_pad - kout)))
        prev_pad = kout_p
    W, b = params[idx], params[idx + 1]
    kin, kout = W.shape
    kout_p = _rup(kout, LANE)
    weights.append(jnp.pad(W, ((0, prev_pad - kin), (0, kout_p - kout)))
                   .astype(jnp.bfloat16))
    vec_rows.append(jnp.pad(b.astype(jnp.float32), (0, max_pad - kout)))

    return {"weights": weights,
            "vecs": jnp.stack(vec_rows, axis=0),
            "dims": tuple(dims)}


# --------------------------------------------------------------------------
# Forward
# --------------------------------------------------------------------------
@functools.partial(jax.jit, static_argnames=("dims", "tb"))
def mlp_forward(x, weights, vecs, *, dims, tb=None):
    B, in_f = x.shape
    assert in_f == dims[0]
    num_layers = len(weights)
    out_f = dims[-1]
    out_pad = weights[-1].shape[1]

    if tb is None:
        tb = _choose_tb(B)
    B_pad = _rup(B, tb)
    if B_pad != B:
        x = jnp.pad(x, ((0, B_pad - B), (0, 0)))   # only the batch dim, only if ragged

    in_specs = [pl.BlockSpec((tb, in_f), lambda i: (i, 0))]   # last dim == full array dim
    for w in weights:
        in_specs.append(_resident_spec(w.shape))
    in_specs.append(_resident_spec(vecs.shape))
    out_spec = pl.BlockSpec((tb, out_pad), lambda i: (i, 0))

    # Advisory cost estimate from REAL (unpadded) dims.
    flops = 2 * B * sum(dims[i] * dims[i + 1] for i in range(num_layers))
    transcendentals = B * out_f + B * (num_layers - 1)
    bytes_accessed = (B * in_f * 4
                      + sum(dims[i] * dims[i + 1] * 2 for i in range(num_layers))
                      + sum(dims[i + 1] * 4 * (3 if i < num_layers - 1 else 1)
                            for i in range(num_layers))
                      + B * out_f * 4)

    kern = functools.partial(mlp_kernel, real_dims=dims)
    out = pl.pallas_call(
        kern,
        out_shape=jax.ShapeDtypeStruct((B_pad, out_pad), x.dtype),
        grid_spec=pltpu.PrefetchScalarGridSpec(
            num_scalar_prefetch=0,
            grid=(B_pad // tb,),
            in_specs=in_specs,
            out_specs=out_spec,
        ),
        compiler_params=pltpu.CompilerParams(
            dimension_semantics=("parallel",)),
        cost_estimate=pl.CostEstimate(flops=flops,
                                      transcendentals=transcendentals,
                                      bytes_accessed=bytes_accessed),
    )(x, *weights, vecs)
    return out[:B, :out_f]


# --------------------------------------------------------------------------
# Init + reference
# --------------------------------------------------------------------------
def init_mlp_params(key, in_features, hidden_features, out_features, num_layers):
    """Parameter shapes mirroring the PyTorch module (W stored transposed as
    (fan_in, fan_out)); uniform +-1/sqrt(fan_in) like nn.Linear's default."""
    params = []
    dims = [in_features] + [hidden_features] * (num_layers - 1) + [out_features]
    keys = jax.random.split(key, 2 * num_layers)
    for li in range(num_layers):
        fan_in, fan_out = dims[li], dims[li + 1]
        bound = 1.0 / np.sqrt(fan_in)
        W = jax.random.uniform(keys[2 * li], (fan_in, fan_out),
                               jnp.float32, -bound, bound)
        b = jax.random.uniform(keys[2 * li + 1], (fan_out,),
                               jnp.float32, -bound, bound)
        params.append(W)
        params.append(b)
        if li < num_layers - 1:
            params.append(jnp.ones((fan_out,), jnp.float32))    # LayerNorm gamma
            params.append(jnp.zeros((fan_out,), jnp.float32))   # LayerNorm beta
    return params


def mlp_reference(x, params):
    """Plain-jnp reference mirroring the kernel numerics (bf16 matmul operands,
    f32 accumulation, two-pass f32 LayerNorm, f32 sigmoid)."""
    num_hidden = (len(params) - 2) // 4
    h = x.astype(jnp.bfloat16)
    idx = 0
    for _ in range(num_hidden):
        W, b, g, be = params[idx:idx + 4]
        idx += 4
        z = jnp.dot(h, W.astype(jnp.bfloat16),
                    preferred_element_type=jnp.float32) + b
        z = jnp.maximum(z, 0.0)
        mean = jnp.mean(z, axis=-1, keepdims=True)
        c = z - mean
        var = jnp.mean(c * c, axis=-1, keepdims=True)
        z = c * jax.lax.rsqrt(var + LN_EPS) * g + be
        h = z.astype(jnp.bfloat16)
    W, b = params[idx], params[idx + 1]
    z = jnp.dot(h, W.astype(jnp.bfloat16),
                preferred_element_type=jnp.float32) + b
    return jax.nn.sigmoid(z)


if __name__ == "__main__":
    # Module defaults: in=28*28, out=10, hidden=20, num_layers=5, use_layer_norm=True.
    batch = 256
    in_features = 28 * 28
    hidden_features = 20
    out_features = 10
    num_layers = 5

    key = jax.random.PRNGKey(0)
    k_x, k_p = jax.random.split(key)
    x = jax.random.normal(k_x, (batch, in_features), jnp.float32)
    params = init_mlp_params(k_p, in_features, hidden_features, out_features,
                             num_layers)

    # One-time padding/casting, hoisted out of the per-call path.
    prepared = prepare_mlp_params(params)

    out = mlp_forward(x, prepared["weights"], prepared["vecs"],
                      dims=prepared["dims"])
    out = jax.block_until_ready(out)
    assert out.shape == (batch, out_features)

    ref = mlp_reference(x, params)
    np.testing.assert_allclose(np.asarray(out), np.asarray(ref),
                               atol=2e-3, rtol=2e-3)
    print("KERNEL_OK")
</pallas_src>

<mosaic_0001>
module attributes {stable_mosaic.version = 11 : i64} {
  func.func @mlp_kernel(%arg0: i32, %arg1: memref<128x784xf32, #tpu.memory_space<vmem>>, %arg2: memref<784x128xbf16, #tpu.memory_space<vmem>>, %arg3: memref<128x128xbf16, #tpu.memory_space<vmem>>, %arg4: memref<128x128xbf16, #tpu.memory_space<vmem>>, %arg5: memref<128x128xbf16, #tpu.memory_space<vmem>>, %arg6: memref<128x128xbf16, #tpu.memory_space<vmem>>, %arg7: memref<13x128xf32, #tpu.memory_space<vmem>>, %arg8: memref<128x128xf32, #tpu.memory_space<vmem>>) attributes {dimension_semantics = [#tpu.dimension_semantics<parallel>], iteration_bounds = array<i64: 2>, scalar_prefetch = 0 : i64, scratch_operands = 0 : i64, tpu.core_type = #tpu.core_type<tc>, window_params = [{transform_indices = @transform_0, window_bounds = array<i64: 128, 784>}, {pipeline_mode = #tpu.pipeline_mode<synchronous>, transform_indices = @transform_1, window_bounds = array<i64: 784, 128>}, {pipeline_mode = #tpu.pipeline_mode<synchronous>, transform_indices = @transform_2, window_bounds = array<i64: 128, 128>}, {pipeline_mode = #tpu.pipeline_mode<synchronous>, transform_indices = @transform_3, window_bounds = array<i64: 128, 128>}, {pipeline_mode = #tpu.pipeline_mode<synchronous>, transform_indices = @transform_4, window_bounds = array<i64: 128, 128>}, {pipeline_mode = #tpu.pipeline_mode<synchronous>, transform_indices = @transform_5, window_bounds = array<i64: 128, 128>}, {pipeline_mode = #tpu.pipeline_mode<synchronous>, transform_indices = @transform_6, window_bounds = array<i64: 13, 128>}, {transform_indices = @transform_7, window_bounds = array<i64: 128, 128>}]} {
    %c0 = arith.constant 0 : index
    %c0_0 = arith.constant 0 : index
    %0 = vector.load %arg1[%c0, %c0_0] : memref<128x784xf32, #tpu.memory_space<vmem>>, vector<128x784xf32>
    %1 = arith.truncf %0 : vector<128x784xf32> to vector<128x784xbf16>
    %c0_1 = arith.constant 0 : index
    %c0_2 = arith.constant 0 : index
    %2 = vector.load %arg7[%c0_1, %c0_2] : memref<13x128xf32, #tpu.memory_space<vmem>>, vector<1x128xf32>
    %c0_3 = arith.constant 0 : index
    %c0_4 = arith.constant 0 : index
    %3 = vector.load %arg2[%c0_3, %c0_4] : memref<784x128xbf16, #tpu.memory_space<vmem>>, vector<784x128xbf16>
    %cst = arith.constant dense<0.000000e+00> : vector<128x128xf32>
    %4 = tpu.matmul %1, %3, %cst {dimension_numbers = #tpu.dot_dimension_numbers<[1], [0], [0], [1], [0, 0, 1, 1], [], []>} : vector<128x784xbf16>, vector<784x128xbf16>, vector<128x128xf32> -> vector<128x128xf32>
    %5 = vector.broadcast %2 : vector<1x128xf32> to vector<128x128xf32>
    %6 = arith.addf %4, %5 : vector<128x128xf32>
    %cst_5 = arith.constant 0.000000e+00 : f32
    %7 = vector.broadcast %cst_5 : f32 to vector<128x128xf32>
    %8 = arith.maximumf %6, %7 : vector<128x128xf32>
    %cst_6 = arith.constant dense<0.000000e+00> : vector<128xf32>
    %9 = vector.multi_reduction <add>, %8, %cst_6 [1] : vector<128x128xf32> to vector<128xf32>
    %10 = vector.shape_cast %9 : vector<128xf32> to vector<128x1xf32>
    %cst_7 = arith.constant 5.000000e-02 : f32
    %11 = vector.broadcast %cst_7 : f32 to vector<128x1xf32>
    %12 = arith.mulf %10, %11 : vector<128x1xf32>
    %13 = tpu.iota {dimensions = array<i32: 1>} : vector<1x128xi32>
    %c20_i32 = arith.constant 20 : i32
    %14 = vector.broadcast %c20_i32 : i32 to vector<1x128xi32>
    %15 = arith.cmpi slt, %13, %14 : vector<1x128xi32>
    %16 = arith.extui %15 : vector<1x128xi1> to vector<1x128xi32>
    %17 = arith.sitofp %16 : vector<1x128xi32> to vector<1x128xf32>
    %18 = vector.broadcast %12 : vector<128x1xf32> to vector<128x128xf32>
    %19 = arith.subf %8, %18 : vector<128x128xf32>
    %20 = vector.broadcast %17 : vector<1x128xf32> to vector<128x128xf32>
    %21 = arith.mulf %19, %20 : vector<128x128xf32>
    %22 = arith.mulf %21, %21 : vector<128x128xf32>
    %cst_8 = arith.constant dense<0.000000e+00> : vector<128xf32>
    %23 = vector.multi_reduction <add>, %22, %cst_8 [1] : vector<128x128xf32> to vector<128xf32>
    %24 = vector.shape_cast %23 : vector<128xf32> to vector<128x1xf32>
    %cst_9 = arith.constant 5.000000e-02 : f32
    %25 = vector.broadcast %cst_9 : f32 to vector<128x1xf32>
    %26 = arith.mulf %24, %25 : vector<128x1xf32>
    %cst_10 = arith.constant 9.99999974E-6 : f32
    %27 = vector.broadcast %cst_10 : f32 to vector<128x1xf32>
    %28 = arith.addf %26, %27 : vector<128x1xf32>
    %29 = math.rsqrt %28 : vector<128x1xf32>
    %30 = vector.broadcast %29 : vector<128x1xf32> to vector<128x128xf32>
    %31 = arith.mulf %21, %30 : vector<128x128xf32>
    %c1 = arith.constant 1 : index
    %c0_11 = arith.constant 0 : index
    %32 = vector.load %arg7[%c1, %c0_11] : memref<13x128xf32, #tpu.memory_space<vmem>>, vector<1x128xf32>
    %c2 = arith.constant 2 : index
    %c0_12 = arith.constant 0 : index
    %33 = vector.load %arg7[%c2, %c0_12] : memref<13x128xf32, #tpu.memory_space<vmem>>, vector<1x128xf32>
    %34 = vector.broadcast %32 : vector<1x128xf32> to vector<128x128xf32>
    %35 = arith.mulf %31, %34 : vector<128x128xf32>
    %36 = vector.broadcast %33 : vector<1x128xf32> to vector<128x128xf32>
    %37 = arith.addf %35, %36 : vector<128x128xf32>
    %38 = arith.truncf %37 : vector<128x128xf32> to vector<128x128xbf16>
    %c3 = arith.constant 3 : index
    %c0_13 = arith.constant 0 : index
    %39 = vector.load %arg7[%c3, %c0_13] : memref<13x128xf32, #tpu.memory_space<vmem>>, vector<1x128xf32>
    %c0_14 = arith.constant 0 : index
    %c0_15 = arith.constant 0 : index
    %40 = vector.load %arg3[%c0_14, %c0_15] : memref<128x128xbf16, #tpu.memory_space<vmem>>, vector<128x128xbf16>
    %cst_16 = arith.constant dense<0.000000e+00> : vector<128x128xf32>
    %41 = tpu.matmul %38, %40, %cst_16 {dimension_numbers = #tpu.dot_dimension_numbers<[1], [0], [0], [1], [0, 0, 1, 1], [], []>} : vector<128x128xbf16>, vector<128x128xbf16>, vector<128x128xf32> -> vector<128x128xf32>
    %42 = vector.broadcast %39 : vector<1x128xf32> to vector<128x128xf32>
    %43 = arith.addf %41, %42 : vector<128x128xf32>
    %cst_17 = arith.constant 0.000000e+00 : f32
    %44 = vector.broadcast %cst_17 : f32 to vector<128x128xf32>
    %45 = arith.maximumf %43, %44 : vector<128x128xf32>
    %cst_18 = arith.constant dense<0.000000e+00> : vector<128xf32>
    %46 = vector.multi_reduction <add>, %45, %cst_18 [1] : vector<128x128xf32> to vector<128xf32>
    %47 = vector.shape_cast %46 : vector<128xf32> to vector<128x1xf32>
    %cst_19 = arith.constant 5.000000e-02 : f32
    %48 = vector.broadcast %cst_19 : f32 to vector<128x1xf32>
    %49 = arith.mulf %47, %48 : vector<128x1xf32>
    %50 = tpu.iota {dimensions = array<i32: 1>} : vector<1x128xi32>
    %c20_i32_20 = arith.constant 20 : i32
    %51 = vector.broadcast %c20_i32_20 : i32 to vector<1x128xi32>
    %52 = arith.cmpi slt, %50, %51 : vector<1x128xi32>
    %53 = arith.extui %52 : vector<1x128xi1> to vector<1x128xi32>
    %54 = arith.sitofp %53 : vector<1x128xi32> to vector<1x128xf32>
    %55 = vector.broadcast %49 : vector<128x1xf32> to vector<128x128xf32>
    %56 = arith.subf %45, %55 : vector<128x128xf32>
    %57 = vector.broadcast %54 : vector<1x128xf32> to vector<128x128xf32>
    %58 = arith.mulf %56, %57 : vector<128x128xf32>
    %59 = arith.mulf %58, %58 : vector<128x128xf32>
    %cst_21 = arith.constant dense<0.000000e+00> : vector<128xf32>
    %60 = vector.multi_reduction <add>, %59, %cst_21 [1] : vector<128x128xf32> to vector<128xf32>
    %61 = vector.shape_cast %60 : vector<128xf32> to vector<128x1xf32>
    %cst_22 = arith.constant 5.000000e-02 : f32
    %62 = vector.broadcast %cst_22 : f32 to vector<128x1xf32>
    %63 = arith.mulf %61, %62 : vector<128x1xf32>
    %cst_23 = arith.constant 9.99999974E-6 : f32
    %64 = vector.broadcast %cst_23 : f32 to vector<128x1xf32>
    %65 = arith.addf %63, %64 : vector<128x1xf32>
    %66 = math.rsqrt %65 : vector<128x1xf32>
    %67 = vector.broadcast %66 : vector<128x1xf32> to vector<128x128xf32>
    %68 = arith.mulf %58, %67 : vector<128x128xf32>
    %c4 = arith.constant 4 : index
    %c0_24 = arith.constant 0 : index
    %69 = vector.load %arg7[%c4, %c0_24] : memref<13x128xf32, #tpu.memory_space<vmem>>, vector<1x128xf32>
    %c5 = arith.constant 5 : index
    %c0_25 = arith.constant 0 : index
    %70 = vector.load %arg7[%c5, %c0_25] : memref<13x128xf32, #tpu.memory_space<vmem>>, vector<1x128xf32>
    %71 = vector.broadcast %69 : vector<1x128xf32> to vector<128x128xf32>
    %72 = arith.mulf %68, %71 : vector<128x128xf32>
    %73 = vector.broadcast %70 : vector<1x128xf32> to vector<128x128xf32>
    %74 = arith.addf %72, %73 : vector<128x128xf32>
    %75 = arith.truncf %74 : vector<128x128xf32> to vector<128x128xbf16>
    %c6 = arith.constant 6 : index
    %c0_26 = arith.constant 0 : index
    %76 = vector.load %arg7[%c6, %c0_26] : memref<13x128xf32, #tpu.memory_space<vmem>>, vector<1x128xf32>
    %c0_27 = arith.constant 0 : index
    %c0_28 = arith.constant 0 : index
    %77 = vector.load %arg4[%c0_27, %c0_28] : memref<128x128xbf16, #tpu.memory_space<vmem>>, vector<128x128xbf16>
    %cst_29 = arith.constant dense<0.000000e+00> : vector<128x128xf32>
    %78 = tpu.matmul %75, %77, %cst_29 {dimension_numbers = #tpu.dot_dimension_numbers<[1], [0], [0], [1], [0, 0, 1, 1], [], []>} : vector<128x128xbf16>, vector<128x128xbf16>, vector<128x128xf32> -> vector<128x128xf32>
    %79 = vector.broadcast %76 : vector<1x128xf32> to vector<128x128xf32>
    %80 = arith.addf %78, %79 : vector<128x128xf32>
    %cst_30 = arith.constant 0.000000e+00 : f32
    %81 = vector.broadcast %cst_30 : f32 to vector<128x128xf32>
    %82 = arith.maximumf %80, %81 : vector<128x128xf32>
    %cst_31 = arith.constant dense<0.000000e+00> : vector<128xf32>
    %83 = vector.multi_reduction <add>, %82, %cst_31 [1] : vector<128x128xf32> to vector<128xf32>
    %84 = vector.shape_cast %83 : vector<128xf32> to vector<128x1xf32>
    %cst_32 = arith.constant 5.000000e-02 : f32
    %85 = vector.broadcast %cst_32 : f32 to vector<128x1xf32>
    %86 = arith.mulf %84, %85 : vector<128x1xf32>
    %87 = tpu.iota {dimensions = array<i32: 1>} : vector<1x128xi32>
    %c20_i32_33 = arith.constant 20 : i32
    %88 = vector.broadcast %c20_i32_33 : i32 to vector<1x128xi32>
    %89 = arith.cmpi slt, %87, %88 : vector<1x128xi32>
    %90 = arith.extui %89 : vector<1x128xi1> to vector<1x128xi32>
    %91 = arith.sitofp %90 : vector<1x128xi32> to vector<1x128xf32>
    %92 = vector.broadcast %86 : vector<128x1xf32> to vector<128x128xf32>
    %93 = arith.subf %82, %92 : vector<128x128xf32>
    %94 = vector.broadcast %91 : vector<1x128xf32> to vector<128x128xf32>
    %95 = arith.mulf %93, %94 : vector<128x128xf32>
    %96 = arith.mulf %95, %95 : vector<128x128xf32>
    %cst_34 = arith.constant dense<0.000000e+00> : vector<128xf32>
    %97 = vector.multi_reduction <add>, %96, %cst_34 [1] : vector<128x128xf32> to vector<128xf32>
    %98 = vector.shape_cast %97 : vector<128xf32> to vector<128x1xf32>
    %cst_35 = arith.constant 5.000000e-02 : f32
    %99 = vector.broadcast %cst_35 : f32 to vector<128x1xf32>
    %100 = arith.mulf %98, %99 : vector<128x1xf32>
    %cst_36 = arith.constant 9.99999974E-6 : f32
    %101 = vector.broadcast %cst_36 : f32 to vector<128x1xf32>
    %102 = arith.addf %100, %101 : vector<128x1xf32>
    %103 = math.rsqrt %102 : vector<128x1xf32>
    %104 = vector.broadcast %103 : vector<128x1xf32> to vector<128x128xf32>
    %105 = arith.mulf %95, %104 : vector<128x128xf32>
    %c7 = arith.constant 7 : index
    %c0_37 = arith.constant 0 : index
    %106 = vector.load %arg7[%c7, %c0_37] : memref<13x128xf32, #tpu.memory_space<vmem>>, vector<1x128xf32>
    %c8 = arith.constant 8 : index
    %c0_38 = arith.constant 0 : index
    %107 = vector.load %arg7[%c8, %c0_38] : memref<13x128xf32, #tpu.memory_space<vmem>>, vector<1x128xf32>
    %108 = vector.broadcast %106 : vector<1x128xf32> to vector<128x128xf32>
    %109 = arith.mulf %105, %108 : vector<128x128xf32>
    %110 = vector.broadcast %107 : vector<1x128xf32> to vector<128x128xf32>
    %111 = arith.addf %109, %110 : vector<128x128xf32>
    %112 = arith.truncf %111 : vector<128x128xf32> to vector<128x128xbf16>
    %c9 = arith.constant 9 : index
    %c0_39 = arith.constant 0 : index
    %113 = vector.load %arg7[%c9, %c0_39] : memref<13x128xf32, #tpu.memory_space<vmem>>, vector<1x128xf32>
    %c0_40 = arith.constant 0 : index
    %c0_41 = arith.constant 0 : index
    %114 = vector.load %arg5[%c0_40, %c0_41] : memref<128x128xbf16, #tpu.memory_space<vmem>>, vector<128x128xbf16>
    %cst_42 = arith.constant dense<0.000000e+00> : vector<128x128xf32>
    %115 = tpu.matmul %112, %114, %cst_42 {dimension_numbers = #tpu.dot_dimension_numbers<[1], [0], [0], [1], [0, 0, 1, 1], [], []>} : vector<128x128xbf16>, vector<128x128xbf16>, vector<128x128xf32> -> vector<128x128xf32>
    %116 = vector.broadcast %113 : vector<1x128xf32> to vector<128x128xf32>
    %117 = arith.addf %115, %116 : vector<128x128xf32>
    %cst_43 = arith.constant 0.000000e+00 : f32
    %118 = vector.broadcast %cst_43 : f32 to vector<128x128xf32>
    %119 = arith.maximumf %117, %118 : vector<128x128xf32>
    %cst_44 = arith.constant dense<0.000000e+00> : vector<128xf32>
    %120 = vector.multi_reduction <add>, %119, %cst_44 [1] : vector<128x128xf32> to vector<128xf32>
    %121 = vector.shape_cast %120 : vector<128xf32> to vector<128x1xf32>
    %cst_45 = arith.constant 5.000000e-02 : f32
    %122 = vector.broadcast %cst_45 : f32 to vector<128x1xf32>
    %123 = arith.mulf %121, %122 : vector<128x1xf32>
    %124 = tpu.iota {dimensions = array<i32: 1>} : vector<1x128xi32>
    %c20_i32_46 = arith.constant 20 : i32
    %125 = vector.broadcast %c20_i32_46 : i32 to vector<1x128xi32>
    %126 = arith.cmpi slt, %124, %125 : vector<1x128xi32>
    %127 = arith.extui %126 : vector<1x128xi1> to vector<1x128xi32>
    %128 = arith.sitofp %127 : vector<1x128xi32> to vector<1x128xf32>
    %129 = vector.broadcast %123 : vector<128x1xf32> to vector<128x128xf32>
    %130 = arith.subf %119, %129 : vector<128x128xf32>
    %131 = vector.broadcast %128 : vector<1x128xf32> to vector<128x128xf32>
    %132 = arith.mulf %130, %131 : vector<128x128xf32>
    %133 = arith.mulf %132, %132 : vector<128x128xf32>
    %cst_47 = arith.constant dense<0.000000e+00> : vector<128xf32>
    %134 = vector.multi_reduction <add>, %133, %cst_47 [1] : vector<128x128xf32> to vector<128xf32>
    %135 = vector.shape_cast %134 : vector<128xf32> to vector<128x1xf32>
    %cst_48 = arith.constant 5.000000e-02 : f32
    %136 = vector.broadcast %cst_48 : f32 to vector<128x1xf32>
    %137 = arith.mulf %135, %136 : vector<128x1xf32>
    %cst_49 = arith.constant 9.99999974E-6 : f32
    %138 = vector.broadcast %cst_49 : f32 to vector<128x1xf32>
    %139 = arith.addf %137, %138 : vector<128x1xf32>
    %140 = math.rsqrt %139 : vector<128x1xf32>
    %141 = vector.broadcast %140 : vector<128x1xf32> to vector<128x128xf32>
    %142 = arith.mulf %132, %141 : vector<128x128xf32>
    %c10 = arith.constant 10 : index
    %c0_50 = arith.constant 0 : index
    %143 = vector.load %arg7[%c10, %c0_50] : memref<13x128xf32, #tpu.memory_space<vmem>>, vector<1x128xf32>
    %c11 = arith.constant 11 : index
    %c0_51 = arith.constant 0 : index
    %144 = vector.load %arg7[%c11, %c0_51] : memref<13x128xf32, #tpu.memory_space<vmem>>, vector<1x128xf32>
    %145 = vector.broadcast %143 : vector<1x128xf32> to vector<128x128xf32>
    %146 = arith.mulf %142, %145 : vector<128x128xf32>
    %147 = vector.broadcast %144 : vector<1x128xf32> to vector<128x128xf32>
    %148 = arith.addf %146, %147 : vector<128x128xf32>
    %149 = arith.truncf %148 : vector<128x128xf32> to vector<128x128xbf16>
    %c12 = arith.constant 12 : index
    %c0_52 = arith.constant 0 : index
    %150 = vector.load %arg7[%c12, %c0_52] : memref<13x128xf32, #tpu.memory_space<vmem>>, vector<1x128xf32>
    %c0_53 = arith.constant 0 : index
    %c0_54 = arith.constant 0 : index
    %151 = vector.load %arg6[%c0_53, %c0_54] : memref<128x128xbf16, #tpu.memory_space<vmem>>, vector<128x128xbf16>
    %cst_55 = arith.constant dense<0.000000e+00> : vector<128x128xf32>
    %152 = tpu.matmul %149, %151, %cst_55 {dimension_numbers = #tpu.dot_dimension_numbers<[1], [0], [0], [1], [0, 0, 1, 1], [], []>} : vector<128x128xbf16>, vector<128x128xbf16>, vector<128x128xf32> -> vector<128x128xf32>
    %153 = vector.broadcast %150 : vector<1x128xf32> to vector<128x128xf32>
    %154 = arith.addf %152, %153 : vector<128x128xf32>
    %155 = arith.negf %154 : vector<128x128xf32>
    %156 = math.exp %155 : vector<128x128xf32>
    %cst_56 = arith.constant 1.000000e+00 : f32
    %157 = vector.broadcast %cst_56 : f32 to vector<128x128xf32>
    %158 = arith.addf %157, %156 : vector<128x128xf32>
    %159 = arith.divf %157, %158 : vector<128x128xf32>
    %c0_57 = arith.constant 0 : index
    %c0_58 = arith.constant 0 : index
    %160 = vector.load %arg8[%c0_57, %c0_58] : memref<128x128xf32, #tpu.memory_space<vmem>>, vector<128x128xf32>
    tpu.vector_store %arg8[%c0_57, %c0_58], %159 {strides = array<i32>} : memref<128x128xf32, #tpu.memory_space<vmem>>, vector<128x128xf32>,
    return
  }
  func.func @transform_0(%arg0: i32) -> (i32, i32) {
    %c0_i32 = arith.constant 0 : i32
    %c0_i32_0 = arith.constant 0 : i32
    return %arg0, %c0_i32 : i32, i32
  }
  func.func @transform_1(%arg0: i32) -> (i32, i32) {
    %c0_i32 = arith.constant 0 : i32
    %c0_i32_0 = arith.constant 0 : i32
    %c0_i32_1 = arith.constant 0 : i32
    return %c0_i32, %c0_i32_0 : i32, i32
  }
  func.func @transform_2(%arg0: i32) -> (i32, i32) {
    %c0_i32 = arith.constant 0 : i32
    %c0_i32_0 = arith.constant 0 : i32
    %c0_i32_1 = arith.constant 0 : i32
    return %c0_i32, %c0_i32_0 : i32, i32
  }
  func.func @transform_3(%arg0: i32) -> (i32, i32) {
    %c0_i32 = arith.constant 0 : i32
    %c0_i32_0 = arith.constant 0 : i32
    %c0_i32_1 = arith.constant 0 : i32
    return %c0_i32, %c0_i32_0 : i32, i32
  }
  func.func @transform_4(%arg0: i32) -> (i32, i32) {
    %c0_i32 = arith.constant 0 : i32
    %c0_i32_0 = arith.constant 0 : i32
    %c0_i32_1 = arith.constant 0 : i32
    return %c0_i32, %c0_i32_0 : i32, i32
  }
  func.func @transform_5(%arg0: i32) -> (i32, i32) {
    %c0_i32 = arith.constant 0 : i32
    %c0_i32_0 = arith.constant 0 : i32
    %c0_i32_1 = arith.constant 0 : i32
    return %c0_i32, %c0_i32_0 : i32, i32
  }
  func.func @transform_6(%arg0: i32) -> (i32, i32) {
    %c0_i32 = arith.constant 0 : i32
    %c0_i32_0 = arith.constant 0 : i32
    %c0_i32_1 = arith.constant 0 : i32
    return %c0_i32, %c0_i32_0 : i32, i32
  }
  func.func @transform_7(%arg0: i32) -> (i32, i32) {
    %c0_i32 = arith.constant 0 : i32
    %c0_i32_0 = arith.constant 0 : i32
    return %arg0, %c0_i32 : i32, i32
  }
}

</mosaic_0001>

<bundles_post_ra>
// kernel: mlp_forward.1
= control target key start
LH: loop header
LB: loop body
LE: loop exit
PB: predicated region body
PF: predicated region fallthrough
CT: control target
= control target key end

     0   :  { %s4022_s24 = smov 0   ;;  %s5533_s0 = inlined_call_operand.vmem [shape: f32[256,784], index: 0, kind: input, shape index: {}]   ;;  %s5534_s1 = inlined_call_operand.vmem [shape: bf16[784,128], index: 1, kind: input, shape index: {}]   ;;  %s5535_s2 = inlined_call_operand.vmem [shape: bf16[128,128], index: 2, kind: input, shape index: {}]   ;;  %s5536_s3 = inlined_call_operand.vmem [shape: bf16[128,128], index: 3, kind: input, shape index: {}]   ;;  %s5537_s4 = inlined_call_operand.vmem [shape: bf16[128,128], index: 4, kind: input, shape index: {}]   ;;  %s5538_s5 = inlined_call_operand.vmem [shape: bf16[128,128], index: 5, kind: input, shape index: {}]   ;;  %s5539_s6 = inlined_call_operand.vmem [shape: f32[13,128], index: 6, kind: input, shape index: {}]   ;;  %s5540_s7 = inlined_call_operand.vmem [shape: f32[256,128], index: 7, kind: output, shape index: {}]  }
   0x1 LB: > { %s3133_s25 = sadd.s32 4294967295, %s3979_s24   ;;  %p3137_p0 = scmp.ge.s32.totalorder %s3979_s24, 1  ;;  %s3979_s24 = sphi %s4022_s24, %s17_s24  }
   0x2   : > { %p239_p1 = scmp.lt.s32.totalorder %s3979_s24, 3 }
   0x4   : > { %p240_p2 = pnand %p3137_p0, %p239_p1 }
   0x5   : > { %v3700_v0 = vld [vmem:[%s5534_s1 + $0x40] sm:$0xff] (!%p240_p2)   ;;  %v3704_v4 = vld [vmem:[%s5534_s1 + $0x48] sm:$0xff] (!%p240_p2)   ;;  %v3708_v8 = vld [vmem:[%s5534_s1 + $0x50] sm:$0xff] (!%p240_p2)   ;;  %s3138_s12 = sshll.u32 (!%p240_p2), %s3133_s25, 4  ;;  %vm851_vm0 = vcmask (!%p240_p2), 130048  }
   0x6   : > { %243 = sbr.rel (%p240_p2) target bundleno = 2547 (0x9f3), region = 48  ;;  %v3701_v1 = vld [vmem:[%s5534_s1 + $0xc0] sm:$0xff] (!%p240_p2)   ;;  %3263 = vmatprep.subr.bf16.mxu0 (!%p240_p2), %v3700_v0  ;;  %v3705_v5 = vld [vmem:[%s5534_s1 + $0xc8] sm:$0xff] (!%p240_p2)   ;;  %v3709_v9 = vld [vmem:[%s5534_s1 + $0xd0] sm:$0xff] (!%p240_p2)   ;;  %p273_p3 = scmp.lt.s32.totalorder (!%p240_p2), %s3138_s12, 31 }
   0x7   : > { %v3702_v2 = vld [vmem:[%s5534_s1] sm:$0xff] (!%p240_p2)   ;;  %3327 = vmatprep.subr.bf16.mxu1 (!%p240_p2), %v3701_v1  ;;  %v3706_v6 = vld [vmem:[%s5534_s1 + $0x8] sm:$0xff] (!%p240_p2)   ;;  %v3710_v10 = vld [vmem:[%s5534_s1 + $0x10] sm:$0xff] (!%p240_p2)  }
   0x8   : > { %v3703_v3 = vld [vmem:[%s5534_s1 + $0x80] sm:$0xff] (!%p240_p2)   ;;  %3264 = vmatpush3.bf16.msra.mxu0 (!%p240_p2), %v3702_v2  ;;  %v3707_v7 = vld [vmem:[%s5534_s1 + $0x88] sm:$0xff] (!%p240_p2)   ;;  %v3711_v11 = vld [vmem:[%s5534_s1 + $0x90] sm:$0xff] (!%p240_p2)  }
   0x9   : > { %3328 = vmatpush3.bf16.msra.mxu1 (!%p240_p2), %v3703_v3  ;;  %3265 = vmatprep.subr.bf16.mxu0 (!%p240_p2), %v3704_v4  ;;  %v3712_v12 = vld [vmem:[%s5534_s1 + $0x58] sm:$0xff] (!%p240_p2)   ;;  %v3716_v16 = vld [vmem:[%s5534_s1 + $0x60] sm:$0xff] (!%p240_p2)   ;;  %v3720_v20 = vld [vmem:[%s5534_s1 + $0x68] sm:$0xff] (!%p240_p2)  }
   0xa   : > { %3329 = vmatprep.subr.bf16.mxu1 (!%p240_p2), %v3705_v5  ;;  %v3713_v13 = vld [vmem:[%s5534_s1 + $0xd8] sm:$0xff] (!%p240_p2)   ;;  %v3717_v17 = vld [vmem:[%s5534_s1 + $0xe0] sm:$0xff] (!%p240_p2)   ;;  %v3721_v21 = vld [vmem:[%s5534_s1 + $0xe8] sm:$0xff] (!%p240_p2)  }
   0xb   : > { %v3714_v14 = vld [vmem:[%s5534_s1 + $0x18] sm:$0xff] (!%p240_p2)   ;;  %v3718_v18 = vld [vmem:[%s5534_s1 + $0x20] sm:$0xff] (!%p240_p2)   ;;  %v3722_v22 = vld [vmem:[%s5534_s1 + $0x28] sm:$0xff] (!%p240_p2)  }
   0xc   : > { %3266 = vmatpush3.bf16.msra.mxu0 (!%p240_p2), %v3706_v6  ;;  %v3715_v15 = vld [vmem:[%s5534_s1 + $0x98] sm:$0xff] (!%p240_p2)   ;;  %v3719_v19 = vld [vmem:[%s5534_s1 + $0xa0] sm:$0xff] (!%p240_p2)   ;;  %v3723_v23 = vld [vmem:[%s5534_s1 + $0xa8] sm:$0xff] (!%p240_p2)  }
   0xd   : > { %3330 = vmatpush3.bf16.msra.mxu1 %v3707_v7  ;;  %3267 = vmatprep.subr.bf16.mxu0 %v3708_v8  ;;  %s5542_s12 = smov (!%p273_p3, %s3138_s12), 31  ;;  %v3724_v24 = vld [vmem:[%s5534_s1 + $0x70] sm:$0xff]   ;;  %v3728_v28 = vld [vmem:[%s5534_s1 + $0x78] sm:$0xff]   ;;  %v3732_v44 = vld [vmem:[%s5534_s1 + $0x140] sm:$0xff]  }
   0xe   : > { %3331 = vmatprep.subr.bf16.mxu1 %v3709_v9  ;;  %v3725_v25 = vld [vmem:[%s5534_s1 + $0xf0] sm:$0xff]   ;;  %s3690_s14 = smul.u32 56, %s5542_s12  ;;  %v3729_v29 = vld [vmem:[%s5534_s1 + $0xf8] sm:$0xff]   ;;  %v3733_v45 = vld [vmem:[%s5534_s1 + $0x100] sm:$0xff]   ;;  %s3141_s30 = sshll.u32 %s5542_s12, 3 }
   0xf   : > { %v3726_v26 = vld [vmem:[%s5534_s1 + $0x30] sm:$0xff]   ;;  %v3730_v30 = vld [vmem:[%s5534_s1 + $0x38] sm:$0xff]   ;;  %v3734_v57 = vld [vmem:[%s5534_s1 + $0x148] sm:$0xff]   ;;  %s5508_s10 = scalar_lea.vmem %s5540_s7, %s3141_s30 }
  0x10   : > { %3268 = vmatpush3.bf16.msra.mxu0 %v3710_v10  ;;  %v3727_v27 = vld [vmem:[%s5534_s1 + $0xb0] sm:$0xff]   ;;  %s4128_s26 = scalar_lea.vmem %s5533_s0, %s3690_s14  ;;  %v3731_v31 = vld [vmem:[%s5534_s1 + $0xb8] sm:$0xff]   ;;  %v3735_v59 = vld [vmem:[%s5534_s1 + $0x108] sm:$0xff]  }
  0x11   : > { %3332 = vmatpush3.bf16.msra.mxu1 %v3711_v11  ;;  %3269 = vmatprep.subr.bf16.mxu0 %v3712_v12  ;;  %v287_v32 = vld [vmem:[%s4128_s26 + $0x8] sm:$0xff]  ;;  %v294_v33 = vld [vmem:[%s4128_s26 + $0x40] sm:$0xff]  ;;  %v289_v34 = vld [vmem:[%s4128_s26 + $0x18] sm:$0xff] }
  0x12   : > { %3333 = vmatprep.subr.bf16.mxu1 %v3713_v13  ;;  %v399_v35 = vpack.c.bf16 %v294_v33, %v287_v32  ;;  %v296_v36 = vld [vmem:[%s4128_s26 + $0x50] sm:$0xff]  ;;  %v286_v37 = vld [vmem:[%s4128_s26] sm:$0xff]  ;;  %v293_v38 = vld [vmem:[%s4128_s26 + $0x38] sm:$0xff] }
  0x13   : > { %v401_v39 = vpack.c.bf16 %v296_v36, %v289_v34  ;;  %v398_v40 = vpack.c.bf16 %v293_v38, %v286_v37  ;;  %v288_v41 = vld [vmem:[%s4128_s26 + $0x10] sm:$0xff]  ;;  %v295_v42 = vld [vmem:[%s4128_s26 + $0x48] sm:$0xff]  ;;  %v301_v46 = vld [vmem:[%s4128_s26 + $0x78] sm:$0xff] }
  0x14   : > { %3270 = vmatpush3.bf16.msra.mxu0 %v3714_v14  ;;  %908 = vmatprep.mubr.bf16.mxu0 %v399_v35  ;;  %v400_v43 = vpack.c.bf16 %v295_v42, %v288_v41  ;;  %v308_v47 = vld [vmem:[%s4128_s26 + $0xb0] sm:$0xff]  ;;  %v303_v48 = vld [vmem:[%s4128_s26 + $0x88] sm:$0xff]  ;;  %v310_v49 = vld [vmem:[%s4128_s26 + $0xc0] sm:$0xff] }
  0x15   : > { %3334 = vmatpush3.bf16.msra.mxu1 %v3715_v15  ;;  %3271 = vmatprep.subr.bf16.mxu0 %v3716_v16  ;;  %v406_v50 = vpack.c.bf16 %v308_v47, %v301_v46  ;;  %v408_v51 = vpack.c.bf16 %v310_v49, %v303_v48  ;;  %v300_v52 = vld [vmem:[%s4128_s26 + $0x70] sm:$0xff]  ;;  %v307_v53 = vld [vmem:[%s4128_s26 + $0xa8] sm:$0xff]  ;;  %v302_v54 = vld [vmem:[%s4128_s26 + $0x80] sm:$0xff] }
  0x16   : > { %3335 = vmatprep.subr.bf16.mxu1 %v3717_v17  ;;  %1005 = vmatprep.mubr.bf16.mxu1 %v401_v39  ;;  %v309_v55 = vld [vmem:[%s4128_s26 + $0xb8] sm:$0xff]  ;;  %v405_v56 = vpack.c.bf16 %v307_v53, %v300_v52  ;;  %v315_v60 = vld [vmem:[%s4128_s26 + $0xe8] sm:$0xff]  ;;  %v322_v61 = vld [vmem:[%s4128_s26 + $0x120] sm:$0xff] }
  0x17   : > { %v407_v58 = vpack.c.bf16 %v309_v55, %v302_v54  ;;  %v413_v62 = vpack.c.bf16 %v322_v61, %v315_v60  ;;  %v317_v63 = vld [vmem:[%s4128_s26 + $0xf8] sm:$0xff]  ;;  %v324_v0 = vld [vmem:[%s4128_s26 + $0x130] sm:$0xff]  ;;  %v314_v2 = vld [vmem:[%s4128_s26 + $0xe0] sm:$0xff] }
  0x18   : > { %3272 = vmatpush3.bf16.msra.mxu0 %v3718_v18  ;;  %v415_v1 = vpack.c.bf16 %v324_v0, %v317_v63  ;;  %v321_v3 = vld [vmem:[%s4128_s26 + $0x118] sm:$0xff]  ;;  %v316_v4 = vld [vmem:[%s4128_s26 + $0xf0] sm:$0xff]  ;;  %v323_v7 = vld [vmem:[%s4128_s26 + $0x128] sm:$0xff] }
  0x19   : > { %3336 = vmatpush3.bf16.msra.mxu1 %v3719_v19  ;;  %3273 = vmatprep.subr.bf16.mxu0 %v3720_v20  ;;  %v3736_v5 = vld [vmem:[%s5534_s1 + $0x150] sm:$0xff]   ;;  %v329_v8 = vld [vmem:[%s4128_s26 + $0x158] sm:$0xff]  ;;  %v331_v10 = vld [vmem:[%s4128_s26 + $0x168] sm:$0xff]  ;;  %v412_v12 = vpack.c.bf16 %v321_v3, %v314_v2  ;;  %v414_v13 = vpack.c.bf16 %v323_v7, %v316_v4 }
  0x1a   : > { %3337 = vmatprep.subr.bf16.mxu1 %v3721_v21  ;;  %v3737_v6 = vld [vmem:[%s5534_s1 + $0x110] sm:$0xff]   ;;  %v338_v11 = vld [vmem:[%s4128_s26 + $0x1a0] sm:$0xff]  ;;  %v3738_v15 = vld [vmem:[%s5534_s1 + $0x158] sm:$0xff]  }
  0x1b   : > { %v336_v9 = vld [vmem:[%s4128_s26 + $0x190] sm:$0xff]  ;;  %v422_v16 = vpack.c.bf16 %v338_v11, %v331_v10  ;;  %v3739_v17 = vld [vmem:[%s5534_s1 + $0x118] sm:$0xff]   ;;  %v335_v19 = vld [vmem:[%s4128_s26 + $0x188] sm:$0xff] }
  0x1c   : > { %3274 = vmatpush3.bf16.msra.mxu0 %v3722_v22  ;;  %v420_v14 = vpack.c.bf16 %v336_v9, %v329_v8  ;;  %v328_v18 = vld [vmem:[%s4128_s26 + $0x150] sm:$0xff]  ;;  %v330_v20 = vld [vmem:[%s4128_s26 + $0x160] sm:$0xff]  ;;  %v337_v21 = vld [vmem:[%s4128_s26 + $0x198] sm:$0xff] }
  0x1d   : > { %3338 = vmatpush3.bf16.msra.mxu1 %v3723_v23  ;;  %3275 = vmatprep.subr.bf16.mxu0 %v3724_v24  ;;  %v343_v22 = vld [vmem:[%s4128_s26 + $0x1c8] sm:$0xff]  ;;  %v350_v23 = vld [vmem:[%s4128_s26 + $0x200] sm:$0xff]  ;;  %v349_v35 = vld [vmem:[%s4128_s26 + $0x1f8] sm:$0xff] }
  0x1e   : > { %3339 = vmatprep.subr.bf16.mxu1 %v3725_v25  ;;  %v3740_v24 = vld [vmem:[%s5534_s1 + $0x160] sm:$0xff]   ;;  %v345_v25 = vld [vmem:[%s4128_s26 + $0x1d8] sm:$0xff]  ;;  %v3742_v32 = vld [vmem:[%s5534_s1 + $0x168] sm:$0xff]  }
  0x1f   : > { %v3743_v33 = vld [vmem:[%s5534_s1 + $0x128] sm:$0xff]   ;;  %v342_v34 = vld [vmem:[%s4128_s26 + $0x1c0] sm:$0xff]  ;;  %v344_v36 = vld [vmem:[%s4128_s26 + $0x1d0] sm:$0xff] }
  0x20   : > { %3276 = vmatpush3.bf16.msra.mxu0 %v3726_v26  ;;  %v352_v26 = vld [vmem:[%s4128_s26 + $0x210] sm:$0xff]  ;;  %v351_v37 = vld [vmem:[%s4128_s26 + $0x208] sm:$0xff]  ;;  %v357_v38 = vld [vmem:[%s4128_s26 + $0x238] sm:$0xff] }
  0x21   : > { %3340 = vmatpush3.bf16.msra.mxu1 %v3727_v27  ;;  %3277 = vmatprep.subr.bf16.mxu0 %v3728_v28  ;;  %v3741_v27 = vld [vmem:[%s5534_s1 + $0x120] sm:$0xff]   ;;  %v419_v28 = vpack.c.bf16 %v335_v19, %v328_v18  ;;  %v364_v39 = vld [vmem:[%s4128_s26 + $0x270] sm:$0xff]  ;;  %v3746_v49 = vld [vmem:[%s5534_s1 + $0x178] sm:$0xff]  }
  0x22   : > { %3341 = vmatprep.subr.bf16.mxu1 %v3729_v29  ;;  %v421_v29 = vpack.c.bf16 %v337_v21, %v330_v20  ;;  %v366_v41 = vld [vmem:[%s4128_s26 + $0x280] sm:$0xff]  ;;  %v3744_v42 = vld [vmem:[%s5534_s1 + $0x170] sm:$0xff]   ;;  %v434_v46 = vpack.c.bf16 %v364_v39, %v357_v38  ;;  %v3747_v52 = vld [vmem:[%s5534_s1 + $0x138] sm:$0xff]  }
  0x23   : > { %v356_v48 = vld [vmem:[%s4128_s26 + $0x230] sm:$0xff]  ;;  %v365_v53 = vld [vmem:[%s4128_s26 + $0x278] sm:$0xff]  ;;  %v371_v54 = vld [vmem:[%s4128_s26 + $0x2a8] sm:$0xff] }
  0x24   : > { %3278 = vmatpush3.bf16.msra.mxu0 %v3730_v30  ;;  %v427_v30 = vpack.c.bf16 %v350_v23, %v343_v22  ;;  %v378_v55 = vld [vmem:[%s4128_s26 + $0x2e0] sm:$0xff]  ;;  %v377_v0 = vld [vmem:[%s4128_s26 + $0x2d8] sm:$0xff]  ;;  %v379_v2 = vld [vmem:[%s4128_s26 + $0x2e8] sm:$0xff] }
  0x25   : > { %3342 = vmatpush3.bf16.msra.mxu1 %v3731_v31  ;;  %3391 = vmatprep.subr.bf16.mxu0 %v3732_v44  ;;  %v429_v31 = vpack.c.bf16 %v352_v26, %v345_v25  ;;  %v441_v61 = vpack.c.bf16 %v378_v55, %v371_v54  ;;  %v370_v63 = vld [vmem:[%s4128_s26 + $0x2a0] sm:$0xff]  ;;  %v385_v3 = vld [vmem:[%s4128_s26 + $0x318] sm:$0xff]  ;;  %v392_v4 = vld [vmem:[%s4128_s26 + $0x350] sm:$0xff] }
  0x26   : > { %3674 = vmatprep.subr.bf16.mxu1 %v3732_v44  ;;  %v3745_v44 = vld [vmem:[%s5534_s1 + $0x130] sm:$0xff]   ;;  %v440_v7 = vpack.c.bf16 %v377_v0, %v370_v63  ;;  %v448_v9 = vpack.c.bf16 %v392_v4, %v385_v3  ;;  %v382_v18 = vld [vmem:[%s4128_s26 + $0x300] sm:$0xff]  ;;  %v381_v26 = vld [vmem:[%s4128_s26 + $0x2f8] sm:$0xff] }
  0x27   : > { %909 = vmatmul.mubr.bf16.vlgmr.msra.gmra.mrb[0].mxu0 %v398_v40  ;;  %v359_v40 = vld [vmem:[%s4128_s26 + $0x248] sm:$0xff]  ;;  %v384_v11 = vld [vmem:[%s4128_s26 + $0x310] sm:$0xff]  ;;  %v290_v23 = vld [vmem:[%s4128_s26 + $0x20] sm:$0xff] }
  0x28   : > { %1006 = vmatmul.mubr.bf16.vlgmr.msra.gmra.mrb[0].mxu1 %v400_v43  ;;  %3392 = vmatpush3.bf16.msra.mxu0 %v3733_v45  ;;  %v426_v43 = vpack.c.bf16 %v349_v35, %v342_v34  ;;  %v436_v47 = vpack.c.bf16 %v366_v41, %v359_v40  ;;  %v374_v25 = vld [vmem:[%s4128_s26 + $0x2c0] sm:$0xff]  ;;  %v304_v35 = vld [vmem:[%s4128_s26 + $0x90] sm:$0xff]  ;;  %v395_v38 = vld [vmem:[%s4128_s26 + $0x368] sm:$0xff] }
  0x29   : > { %3682 = vmatpush3.bf16.msra.mxu1 %v3733_v45  ;;  %916 = vmatprep.mubr.bf16.mxu0 %v406_v50  ;;  %v428_v45 = vpack.c.bf16 %v351_v37, %v344_v36  ;;  %v363_v50 = vld [vmem:[%s4128_s26 + $0x268] sm:$0xff]  ;;  %v388_v37 = vld [vmem:[%s4128_s26 + $0x330] sm:$0xff]  ;;  %v326_v40 = vld [vmem:[%s4128_s26 + $0x140] sm:$0xff] }
  0x2a   : > { %1013 = vmatprep.mubr.bf16.mxu1 %v408_v51  ;;  %3393 = vmatprep.subr.bf16.mxu0 %v3734_v57  ;;  %v358_v51 = vld [vmem:[%s4128_s26 + $0x240] sm:$0xff]  ;;  %v311_v36 = vld [vmem:[%s4128_s26 + $0xc8] sm:$0xff]  ;;  %v292_v41 = vld [vmem:[%s4128_s26 + $0x30] sm:$0xff] }
  0x2b   : > { %3675 = vmatprep.subr.bf16.mxu1 %v3734_v57  ;;  %v380_v57 = vld [vmem:[%s4128_s26 + $0x2f0] sm:$0xff]  ;;  %v435_v60 = vpack.c.bf16 %v365_v53, %v358_v51  ;;  %v319_v39 = vld [vmem:[%s4128_s26 + $0x108] sm:$0xff]  ;;  %v333_v51 = vld [vmem:[%s4128_s26 + $0x178] sm:$0xff] }
  0x2c   : > { %3394 = vmatpush3.bf16.msra.mxu0 %v3735_v59  ;;  %v320_v53 = vld [vmem:[%s4128_s26 + $0x110] sm:$0xff]  ;;  %v327_v54 = vld [vmem:[%s4128_s26 + $0x148] sm:$0xff]  ;;  %v354_v0 = vld [vmem:[%s4128_s26 + $0x220] sm:$0xff] }
  0x2d   : > { %3683 = vmatpush3.bf16.msra.mxu1 %v3735_v59  ;;  %3395 = vmatprep.subr.bf16.mxu0 %v3736_v5  ;;  %v4239_v59 = vld [vmem:[%s5534_s1 + $0x180] sm:$0xff]   ;;  %v347_v63 = vld [vmem:[%s4128_s26 + $0x1e8] sm:$0xff] }
  0x2e   : > { %3676 = vmatprep.subr.bf16.mxu1 %v3736_v5  ;;  %v387_v5 = vld [vmem:[%s4128_s26 + $0x328] sm:$0xff] }
  0x2f   : > { %917 = vmatmul.mubr.bf16.gmra.mrb[4].mxu0 %v405_v56  ;;  %v373_v56 = vld [vmem:[%s4128_s26 + $0x2b8] sm:$0xff] }
  0x30   : > { %1014 = vmatmul.mubr.bf16.gmra.mrb[4].mxu1 %v407_v58  ;;  %924 = vmatprep.mubr.bf16.mxu0 %v413_v62  ;;  %v433_v58 = vpack.c.bf16 %v363_v50, %v356_v48  ;;  %v443_v62 = vpack.c.bf16 %v380_v57, %v373_v56  ;;  %v325_v48 = vld [vmem:[%s4128_s26 + $0x138] sm:$0xff] }
  0x31   : > { %1021 = vmatprep.mubr.bf16.mxu1 %v415_v1  ;;  %3396 = vmatpush3.bf16.msra.mxu0 %v3737_v6  ;;  %v372_v1 = vld [vmem:[%s4128_s26 + $0x2b0] sm:$0xff]  ;;  %v313_v50 = vld [vmem:[%s4128_s26 + $0xd8] sm:$0xff] }
  0x32   : > { %3684 = vmatpush3.bf16.msra.mxu1 %v3737_v6  ;;  %3397 = vmatprep.subr.bf16.mxu0 %v3738_v15  ;;  %v394_v6 = vld [vmem:[%s4128_s26 + $0x360] sm:$0xff]  ;;  %v442_v8 = vpack.c.bf16 %v379_v2, %v372_v1  ;;  %v348_v1 = vld [vmem:[%s4128_s26 + $0x1f0] sm:$0xff]  ;;  %v355_v2 = vld [vmem:[%s4128_s26 + $0x228] sm:$0xff] }
  0x33   : > { %3677 = vmatprep.subr.bf16.mxu1 %v3738_v15  ;;  %v450_v10 = vpack.c.bf16 %v394_v6, %v387_v5  ;;  %v291_v15 = vld [vmem:[%s4128_s26 + $0x28] sm:$0xff]  ;;  %v431_v5 = vpack.c.bf16 %v354_v0, %v347_v63  ;;  %v432_v6 = vpack.c.bf16 %v355_v2, %v348_v1 }
  0x35   : > { %3398 = vmatpush3.bf16.msra.mxu0 %v3739_v17 }
  0x36   : > { %3685 = vmatpush3.bf16.msra.mxu1 %v3739_v17  ;;  %3399 = vmatprep.subr.bf16.mxu0 %v3740_v24  ;;  %v375_v17 = vld [vmem:[%s4128_s26 + $0x2c8] sm:$0xff] }
  0x37   : > { %925 = vmatmul.mubr.bf16.gmra.mrb[8].mxu0 %v412_v12  ;;  %3678 = vmatprep.subr.bf16.mxu1 %v3740_v24  ;;  %v391_v12 = vld [vmem:[%s4128_s26 + $0x348] sm:$0xff]  ;;  %v445_v22 = vpack.c.bf16 %v382_v18, %v375_v17  ;;  %v297_v24 = vld [vmem:[%s4128_s26 + $0x58] sm:$0xff] }
  0x38   : > { %1022 = vmatmul.mubr.bf16.gmra.mrb[8].mxu1 %v414_v13  ;;  %932 = vmatprep.mubr.bf16.mxu0 %v420_v14  ;;  %v386_v13 = vld [vmem:[%s4128_s26 + $0x320] sm:$0xff]  ;;  %v393_v14 = vld [vmem:[%s4128_s26 + $0x358] sm:$0xff]  ;;  %v447_v19 = vpack.c.bf16 %v391_v12, %v384_v11  ;;  %v368_v12 = vld [vmem:[%s4128_s26 + $0x290] sm:$0xff] }
  0x39   : > { %1029 = vmatprep.mubr.bf16.mxu1 %v422_v16  ;;  %3400 = vmatpush3.bf16.msra.mxu0 %v3741_v27  ;;  %v298_v16 = vld [vmem:[%s4128_s26 + $0x60] sm:$0xff]  ;;  %v449_v20 = vpack.c.bf16 %v393_v14, %v386_v13  ;;  %v361_v11 = vld [vmem:[%s4128_s26 + $0x258] sm:$0xff]  ;;  %v376_v13 = vld [vmem:[%s4128_s26 + $0x2d0] sm:$0xff] }
  0x3a   : > { %3686 = vmatpush3.bf16.msra.mxu1 %v3741_v27  ;;  %3401 = vmatprep.subr.bf16.mxu0 %v3742_v32  ;;  %v403_v21 = vpack.c.bf16 %v298_v16, %v291_v15  ;;  %v305_v27 = vld [vmem:[%s4128_s26 + $0x98] sm:$0xff]  ;;  %v383_v14 = vld [vmem:[%s4128_s26 + $0x308] sm:$0xff]  ;;  %v438_v17 = vpack.c.bf16 %v368_v12, %v361_v11 }
  0x3b   : > { %3679 = vmatprep.subr.bf16.mxu1 %v3742_v32  ;;  %v444_v32 = vpack.c.bf16 %v381_v26, %v374_v25  ;;  %v446_v18 = vpack.c.bf16 %v383_v14, %v376_v13  ;;  %v4314_v26 = vld [vmem:[%s5539_s6] ss:$0 sm:$0xff] }
  0x3d   : > { %3402 = vmatpush3.bf16.msra.mxu0 %v3743_v33 }
  0x3e   : > { %3687 = vmatpush3.bf16.msra.mxu1 %v3743_v33  ;;  %3403 = vmatprep.subr.bf16.mxu0 %v3744_v42 }
  0x3f   : > { %933 = vmatmul.mubr.bf16.gmra.mrb[12].mxu0 %v419_v28  ;;  %3680 = vmatprep.subr.bf16.mxu1 %v3744_v42  ;;  %v312_v28 = vld [vmem:[%s4128_s26 + $0xd0] sm:$0xff]  ;;  %v299_v42 = vld [vmem:[%s4128_s26 + $0x68] sm:$0xff] }
  0x40   : > { %1030 = vmatmul.mubr.bf16.gmra.mrb[12].mxu1 %v421_v29  ;;  %940 = vmatprep.mubr.bf16.mxu0 %v427_v30  ;;  %v389_v29 = vld [vmem:[%s4128_s26 + $0x338] sm:$0xff]  ;;  %v396_v30 = vld [vmem:[%s4128_s26 + $0x370] sm:$0xff]  ;;  %v410_v33 = vpack.c.bf16 %v312_v28, %v305_v27 }
  0x41   : > { %1037 = vmatprep.mubr.bf16.mxu1 %v429_v31  ;;  %3404 = vmatpush3.bf16.msra.mxu0 %v3745_v44  ;;  %v402_v31 = vpack.c.bf16 %v297_v24, %v290_v23  ;;  %v452_v34 = vpack.c.bf16 %v396_v30, %v389_v29 }
  0x42   : > { %3688 = vmatpush3.bf16.msra.mxu1 %v3745_v44  ;;  %3405 = vmatprep.subr.bf16.mxu0 %v3746_v49  ;;  %v451_v44 = vpack.c.bf16 %v395_v38, %v388_v37 }
  0x43   : > { %3681 = vmatprep.subr.bf16.mxu1 %v3746_v49  ;;  %v306_v49 = vld [vmem:[%s4128_s26 + $0xa0] sm:$0xff] }
  0x44   : > { %v411_v56 = vpack.c.bf16 %v313_v50, %v306_v49 }
  0x45   : > { %3406 = vmatpush3.bf16.msra.mxu0 %v3747_v52 }
  0x46   : > { %3689 = vmatpush3.bf16.msra.mxu1 %v3747_v52  ;;  %v340_v52 = vld [vmem:[%s4128_s26 + $0x1b0] sm:$0xff] }
  0x47   : > { %941 = vmatmul.mubr.bf16.gmra.mrb[16].mxu0 %v426_v43  ;;  %3528 = vmatprep.subr.bf16.mxu1 %v4239_v59  ;;  %v409_v43 = vpack.c.bf16 %v311_v36, %v304_v35  ;;  %v424_v57 = vpack.c.bf16 %v340_v52, %v333_v51 }
  0x48   : > { %1038 = vmatmul.mubr.bf16.gmra.mrb[16].mxu1 %v428_v45  ;;  %948 = vmatprep.mubr.bf16.mxu0 %v434_v46  ;;  %v417_v45 = vpack.c.bf16 %v326_v40, %v319_v39  ;;  %v404_v46 = vpack.c.bf16 %v299_v42, %v292_v41 }
  0x49   : > { %1045 = vmatprep.mubr.bf16.mxu1 %v436_v47  ;;  %v318_v47 = vld [vmem:[%s4128_s26 + $0x100] sm:$0xff] }
  0x4a   : > { %v416_v55 = vpack.c.bf16 %v325_v48, %v318_v47 }
  0x4f   : > { %949 = vmatmul.mubr.bf16.gmra.mrb[20].mxu0 %v433_v58  ;;  %v418_v58 = vpack.c.bf16 %v327_v54, %v320_v53 }
  0x50   : > { %1046 = vmatmul.mubr.bf16.gmra.mrb[20].mxu1 %v435_v60  ;;  %956 = vmatprep.mubr.bf16.mxu0 %v441_v61  ;;  %v339_v60 = vld [vmem:[%s4128_s26 + $0x1a8] sm:$0xff]  ;;  %v334_v61 = vld [vmem:[%s4128_s26 + $0x180] sm:$0xff] }
  0x51   : > { %1053 = vmatprep.mubr.bf16.mxu1 %v443_v62  ;;  %v341_v62 = vld [vmem:[%s4128_s26 + $0x1b8] sm:$0xff] }
  0x52   : > { %v425_v4 = vpack.c.bf16 %v341_v62, %v334_v61 }
  0x57   : > { %957 = vmatmul.mubr.bf16.gmra.mrb[24].mxu0 %v440_v7  ;;  %v346_v7 = vld [vmem:[%s4128_s26 + $0x1e0] sm:$0xff] }
  0x58   : > { %1054 = vmatmul.mubr.bf16.gmra.mrb[24].mxu1 %v442_v8  ;;  %964 = vmatprep.mubr.bf16.mxu0 %v448_v9  ;;  %v353_v8 = vld [vmem:[%s4128_s26 + $0x218] sm:$0xff]  ;;  %v362_v9 = vld [vmem:[%s4128_s26 + $0x260] sm:$0xff] }
  0x59   : > { %1061 = vmatprep.mubr.bf16.mxu1 %v450_v10  ;;  %v369_v10 = vld [vmem:[%s4128_s26 + $0x298] sm:$0xff]  ;;  %v430_v15 = vpack.c.bf16 %v353_v8, %v346_v7 }
  0x5a   : > { %v439_v16 = vpack.c.bf16 %v369_v10, %v362_v9 }
  0x5f   : > { %965 = vmatmul.mubr.bf16.gmra.mrb[28].mxu0 %v447_v19  ;;  %v360_v19 = vld [vmem:[%s4128_s26 + $0x250] sm:$0xff] }
  0x60   : > { %1062 = vmatmul.mubr.bf16.gmra.mrb[28].mxu1 %v449_v20  ;;  %1102 = vmatprep.mubr.bf16.mxu0 %v403_v21  ;;  %v367_v20 = vld [vmem:[%s4128_s26 + $0x288] sm:$0xff]  ;;  %v390_v21 = vld [vmem:[%s4128_s26 + $0x340] sm:$0xff] }
  0x61   : > { %1150 = vmatprep.mubr.bf16.mxu1 %v445_v22  ;;  %v397_v22 = vld [vmem:[%s4128_s26 + $0x378] sm:$0xff]  ;;  %v437_v23 = vpack.c.bf16 %v367_v20, %v360_v19 }
  0x62   : > { %v453_v24 = vpack.c.bf16 %v397_v22, %v390_v21 }
  0x67   : > { %1103 = vmatmul.mubr.bf16.vlgmr.msra.gmra.mrb[32].mxu0 %v402_v31 }
  0x68   : > { %1151 = vmatmul.mubr.bf16.vlgmr.msra.gmra.mrb[32].mxu1 %v444_v32  ;;  %1110 = vmatprep.mubr.bf16.mxu0 %v410_v33 }
  0x69   : > { %1158 = vmatprep.mubr.bf16.mxu1 %v452_v34  ;;  %3529 = vmatpush3.bf16.msra.mxu1 %v4239_v59  ;;  %v332_v59 = vld [vmem:[%s4128_s26 + $0x170] sm:$0xff] }
  0x6a   : > { %v423_v3 = vpack.c.bf16 %v339_v60, %v332_v59 }
  0x6f   : > { %1111 = vmatmul.mubr.bf16.gmra.mrb[36].mxu0 %v409_v43 }
  0x70   : > { %1159 = vmatmul.mubr.bf16.gmra.mrb[36].mxu1 %v451_v44  ;;  %1118 = vmatprep.mubr.bf16.mxu0 %v417_v45 }
  0x71   : > { %3530 = vmatprep.mubr.msk.bf16.mxu1 %vm851_vm0, %v404_v46 }
  0x77   : > { %1119 = vmatmul.mubr.bf16.gmra.mrb[40].mxu0 %v416_v55 }
  0x78   : > { %3531 = vmatmul.mubr.msk.bf16.vlgmr.msra.gmra.mrb[40].mxu1 %vm851_vm0, %v411_v56  ;;  %1126 = vmatprep.mubr.bf16.mxu0 %v424_v57 }
  0x79   : > { %3534 = vmatprep.mubr.msk.bf16.mxu1 %vm851_vm0, %v418_v58 }
  0x7f   : > { %1127 = vmatmul.mubr.bf16.gmra.mrb[44].mxu0 %v423_v3 }
  0x80   : > { %3535 = vmatmul.mubr.msk.bf16.gmra.mrb[44].mxu1 %vm851_vm0, %v425_v4  ;;  %1134 = vmatprep.mubr.bf16.mxu0 %v431_v5 }
  0x81   : > { %3538 = vmatprep.mubr.msk.bf16.mxu1 %vm851_vm0, %v432_v6 }
  0x87   : > { %1135 = vmatmul.mubr.bf16.gmra.mrb[48].mxu0 %v430_v15 }
  0x88   : > { %3539 = vmatmul.mubr.msk.bf16.gmra.mrb[48].mxu1 %vm851_vm0, %v439_v16  ;;  %1142 = vmatprep.mubr.bf16.mxu0 %v438_v17 }
  0x89   : > { %3542 = vmatprep.mubr.msk.bf16.mxu1 %vm851_vm0, %v446_v18 }
  0x8f   : > { %1143 = vmatmul.mubr.bf16.gmra.mrb[52].mxu0 %v437_v23 }
  0x90   : > { %3543 = vmatmul.mubr.msk.bf16.gmra.mrb[52].mxu1 %vm851_vm0, %v453_v24 }
  0xfa   : > { %v3279_v25 = vpop.f32.mrb[0].mxu0 }
  0xfb   : > { %v3280_v27 = vpop.f32.mrb[1].mxu0  ;;  %v3343_v28 = vpop.f32.mrb[0].mxu1 }
  0xfc   : > { %v3281_v29 = vadd.f32 %v3280_v27, %v3279_v25  ;;  %v3282_v30 = vpop.f32.mrb[2].mxu0  ;;  %v3344_v31 = vpop.f32.mrb[1].mxu1 }
  0xfd   : > { %v3283_v32 = vpop.f32.mrb[3].mxu0  ;;  %v3345_v33 = vadd.f32 %v3344_v31, %v3343_v28  ;;  %v3346_v34 = vpop.f32.mrb[2].mxu1 }
  0xfe   : > { %v911_v35 = vadd.f32 %v3281_v29, %v4314_v26  ;;  %v3284_v36 = vadd.f32 %v3283_v32, %v3282_v30  ;;  %v3347_v37 = vpop.f32.mrb[3].mxu1 }
  0xff   : > { %v3348_v38 = vadd.f32 %v3347_v37, %v3346_v34 }
 0x100   : > { %v914_v39 = vadd.f32 %v3284_v36, %v4314_v26  ;;  %v4318_v40 = vadd.f32 %v3345_v33, %v911_v35 }
 0x102   : > { %v4320_v41 = vadd.f32 %v3348_v38, %v914_v39  ;;  %v3285_v42 = vpop.f32.mrb[4].mxu0 }
 0x103   : > { %v3286_v43 = vpop.f32.mrb[5].mxu0  ;;  %v3349_v44 = vpop.f32.mrb[4].mxu1 }
 0x104   : > { %v3287_v45 = vadd.f32 %v3286_v43, %v3285_v42  ;;  %v3288_v46 = vpop.f32.mrb[6].mxu0  ;;  %v3350_v47 = vpop.f32.mrb[5].mxu1 }
 0x105   : > { %v3289_v48 = vpop.f32.mrb[7].mxu0  ;;  %v3351_v49 = vadd.f32 %v3350_v47, %v3349_v44  ;;  %v3352_v50 = vpop.f32.mrb[6].mxu1 }
 0x106   : > { %v919_v51 = vadd.f32 %v3287_v45, %v4314_v26  ;;  %v3290_v52 = vadd.f32 %v3289_v48, %v3288_v46  ;;  %v3353_v53 = vpop.f32.mrb[7].mxu1 }
 0x107   : > { %v3354_v54 = vadd.f32 %v3353_v53, %v3352_v50 }
 0x108   : > { %v922_v55 = vadd.f32 %v3290_v52, %v4314_v26  ;;  %v4324_v56 = vadd.f32 %v3351_v49, %v919_v51 }
 0x10a   : > { %v4326_v57 = vadd.f32 %v3354_v54, %v922_v55  ;;  %v3291_v58 = vpop.f32.mrb[8].mxu0 }
 0x10b   : > { %v3292_v59 = vpop.f32.mrb[9].mxu0  ;;  %v3355_v60 = vpop.f32.mrb[8].mxu1 }
 0x10c   : > { %v3293_v61 = vadd.f32 %v3292_v59, %v3291_v58  ;;  %v3294_v62 = vpop.f32.mrb[10].mxu0  ;;  %v3356_v63 = vpop.f32.mrb[9].mxu1 }
 0x10d   : > { %v3295_v0 = vpop.f32.mrb[11].mxu0  ;;  %v3357_v1 = vadd.f32 %v3356_v63, %v3355_v60  ;;  %v3358_v2 = vpop.f32.mrb[10].mxu1 }
 0x10e   : > { %v927_v3 = vadd.f32 %v3293_v61, %v4314_v26  ;;  %v3296_v4 = vadd.f32 %v3295_v0, %v3294_v62  ;;  %v3359_v5 = vpop.f32.mrb[11].mxu1 }
 0x10f   : > { %v3360_v6 = vadd.f32 %v3359_v5, %v3358_v2 }
 0x110   : > { %v930_v7 = vadd.f32 %v3296_v4, %v4314_v26  ;;  %v4330_v8 = vadd.f32 %v3357_v1, %v927_v3 }
 0x112   : > { %v4332_v9 = vadd.f32 %v3360_v6, %v930_v7  ;;  %v3297_v10 = vpop.f32.mrb[12].mxu0 }
 0x113   : > { %v3298_v11 = vpop.f32.mrb[13].mxu0  ;;  %v3361_v12 = vpop.f32.mrb[12].mxu1 }
 0x114   : > { %v3299_v13 = vadd.f32 %v3298_v11, %v3297_v10  ;;  %v3300_v14 = vpop.f32.mrb[14].mxu0  ;;  %v3362_v15 = vpop.f32.mrb[13].mxu1 }
 0x115   : > { %v3301_v16 = vpop.f32.mrb[15].mxu0  ;;  %v3363_v17 = vadd.f32 %v3362_v15, %v3361_v12  ;;  %v3364_v18 = vpop.f32.mrb[14].mxu1 }
 0x116   : > { %v935_v19 = vadd.f32 %v3299_v13, %v4314_v26  ;;  %v3302_v20 = vadd.f32 %v3301_v16, %v3300_v14  ;;  %v3365_v21 = vpop.f32.mrb[15].mxu1 }
 0x117   : > { %v3366_v22 = vadd.f32 %v3365_v21, %v3364_v18 }
 0x118   : > { %v938_v23 = vadd.f32 %v3302_v20, %v4314_v26  ;;  %v4336_v24 = vadd.f32 %v3363_v17, %v935_v19 }
 0x11a   : > { %v4338_v25 = vadd.f32 %v3366_v22, %v938_v23  ;;  %v3303_v27 = vpop.f32.mrb[16].mxu0 }
 0x11b   : > { %v3304_v28 = vpop.f32.mrb[17].mxu0  ;;  %v3367_v29 = vpop.f32.mrb[16].mxu1 }
 0x11c   : > { %v3305_v30 = vadd.f32 %v3304_v28, %v3303_v27  ;;  %v3306_v31 = vpop.f32.mrb[18].mxu0  ;;  %v3368_v32 = vpop.f32.mrb[17].mxu1 }
 0x11d   : > { %v3307_v33 = vpop.f32.mrb[19].mxu0  ;;  %v3369_v34 = vadd.f32 %v3368_v32, %v3367_v29  ;;  %v3370_v35 = vpop.f32.mrb[18].mxu1 }
 0x11e   : > { %v943_v36 = vadd.f32 %v3305_v30, %v4314_v26  ;;  %v3308_v37 = vadd.f32 %v3307_v33, %v3306_v31  ;;  %v3371_v38 = vpop.f32.mrb[19].mxu1 }
 0x11f   : > { %v3372_v39 = vadd.f32 %v3371_v38, %v3370_v35 }
 0x120   : > { %v946_v42 = vadd.f32 %v3308_v37, %v4314_v26  ;;  %v4342_v43 = vadd.f32 %v3369_v34, %v943_v36 }
 0x122   : > { %v4344_v44 = vadd.f32 %v3372_v39, %v946_v42  ;;  %v3309_v45 = vpop.f32.mrb[20].mxu0 }
 0x123   : > { %v3310_v46 = vpop.f32.mrb[21].mxu0  ;;  %v3373_v47 = vpop.f32.mrb[20].mxu1 }
 0x124   : > { %v3311_v48 = vadd.f32 %v3310_v46, %v3309_v45  ;;  %v3312_v49 = vpop.f32.mrb[22].mxu0  ;;  %v3374_v50 = vpop.f32.mrb[21].mxu1 }
 0x125   : > { %v3313_v51 = vpop.f32.mrb[23].mxu0  ;;  %v3375_v52 = vadd.f32 %v3374_v50, %v3373_v47  ;;  %v3376_v53 = vpop.f32.mrb[22].mxu1 }
 0x126   : > { %v951_v54 = vadd.f32 %v3311_v48, %v4314_v26  ;;  %v3314_v55 = vadd.f32 %v3313_v51, %v3312_v49  ;;  %v3377_v58 = vpop.f32.mrb[23].mxu1 }
 0x127   : > { %v3378_v59 = vadd.f32 %v3377_v58, %v3376_v53 }
 0x128   : > { %v954_v60 = vadd.f32 %v3314_v55, %v4314_v26  ;;  %v4348_v61 = vadd.f32 %v3375_v52, %v951_v54 }
 0x12a   : > { %v4350_v62 = vadd.f32 %v3378_v59, %v954_v60  ;;  %v3315_v63 = vpop.f32.mrb[24].mxu0 }
 0x12b   : > { %v3316_v0 = vpop.f32.mrb[25].mxu0  ;;  %v3379_v1 = vpop.f32.mrb[24].mxu1 }
 0x12c   : > { %v3317_v2 = vadd.f32 %v3316_v0, %v3315_v63  ;;  %v3318_v3 = vpop.f32.mrb[26].mxu0  ;;  %v3380_v4 = vpop.f32.mrb[25].mxu1 }
 0x12d   : > { %v3319_v5 = vpop.f32.mrb[27].mxu0  ;;  %v3381_v6 = vadd.f32 %v3380_v4, %v3379_v1  ;;  %v3382_v7 = vpop.f32.mrb[26].mxu1 }
 0x12e   : > { %v959_v10 = vadd.f32 %v3317_v2, %v4314_v26  ;;  %v3320_v11 = vadd.f32 %v3319_v5, %v3318_v3  ;;  %v3383_v12 = vpop.f32.mrb[27].mxu1 }
 0x12f   : > { %v3384_v13 = vadd.f32 %v3383_v12, %v3382_v7 }
 0x130   : > { %v962_v14 = vadd.f32 %v3320_v11, %v4314_v26  ;;  %v1056_v15 = vadd.f32 %v3381_v6, %v959_v10 }
 0x132   : > { %v1059_v16 = vadd.f32 %v3384_v13, %v962_v14  ;;  %v3321_v17 = vpop.f32.mrb[28].mxu0 }
 0x133   : > { %v3322_v18 = vpop.f32.mrb[29].mxu0  ;;  %v3385_v19 = vpop.f32.mrb[28].mxu1 }
 0x134   : > { %v3323_v20 = vadd.f32 %v3322_v18, %v3321_v17  ;;  %v3324_v21 = vpop.f32.mrb[30].mxu0  ;;  %v3386_v22 = vpop.f32.mrb[29].mxu1 }
 0x135   : > { %v3325_v23 = vpop.f32.mrb[31].mxu0  ;;  %v3387_v27 = vadd.f32 %v3386_v22, %v3385_v19  ;;  %v3388_v28 = vpop.f32.mrb[30].mxu1 }
 0x136   : > { %v967_v29 = vadd.f32 %v3323_v20, %v4314_v26  ;;  %v3326_v30 = vadd.f32 %v3325_v23, %v3324_v21  ;;  %v3389_v31 = vpop.f32.mrb[31].mxu1 }
 0x137   : > { %v3390_v32 = vadd.f32 %v3389_v31, %v3388_v28 }
 0x138   : > { %v970_v33 = vadd.f32 %v3326_v30, %v4314_v26  ;;  %v1064_v34 = vadd.f32 %v3387_v27, %v967_v29 }
 0x13a   : > { %v1067_v35 = vadd.f32 %v3390_v32, %v970_v33  ;;  %v3407_v36 = vpop.f32.mrb[32].mxu0 }
 0x13b   : > { %v3443_v37 = vpop.f32.mrb[32].mxu1  ;;  %v3408_v38 = vpop.f32.mrb[33].mxu0 }
 0x13c   : > { %v3409_v39 = vadd.f32 %v3408_v38, %v3407_v36  ;;  %v3444_v42 = vpop.f32.mrb[33].mxu1  ;;  %v3410_v45 = vpop.f32.mrb[34].mxu0 }
 0x13d   : > { %v3445_v46 = vadd.f32 %v3444_v42, %v3443_v37  ;;  %v3446_v47 = vpop.f32.mrb[34].mxu1  ;;  %v3411_v48 = vpop.f32.mrb[35].mxu0 }
 0x13e   : > { %v3412_v49 = vadd.f32 %v3411_v48, %v3410_v45  ;;  %v3447_v50 = vpop.f32.mrb[35].mxu1  ;;  %v1105_v51 = vadd.f32 %v3409_v39, %v4318_v40 }
 0x13f   : > { %v3448_v52 = vadd.f32 %v3447_v50, %v3446_v47  ;;  %v4357_v53 = vadd.f32 %v3445_v46, %v1056_v15 }
 0x140   : > { %v1108_v26 = vadd.f32 %v3412_v49, %v4320_v41 }
 0x141   : > { %v4360_v54 = vadd.f32 %v3448_v52, %v1059_v16 }
 0x142   : > { %v3413_v55 = vpop.f32.mrb[36].mxu0 }
 0x143   : > { %v3449_v58 = vpop.f32.mrb[36].mxu1  ;;  %v3414_v59 = vpop.f32.mrb[37].mxu0 }
 0x144   : > { %v3415_v60 = vadd.f32 %v3414_v59, %v3413_v55  ;;  %v3450_v63 = vpop.f32.mrb[37].mxu1  ;;  %v3416_v0 = vpop.f32.mrb[38].mxu0 }
 0x145   : > { %v3451_v1 = vadd.f32 %v3450_v63, %v3449_v58  ;;  %v3452_v2 = vpop.f32.mrb[38].mxu1  ;;  %v3417_v3 = vpop.f32.mrb[39].mxu0 }
 0x146   : > { %v3418_v4 = vadd.f32 %v3417_v3, %v3416_v0  ;;  %v3453_v5 = vpop.f32.mrb[39].mxu1  ;;  %v1113_v40 = vadd.f32 %v3415_v60, %v4324_v56 }
 0x147   : > { %v3454_v6 = vadd.f32 %v3453_v5, %v3452_v2  ;;  %v4363_v7 = vadd.f32 %v3451_v1, %v1064_v34 }
 0x148   : > { %v1116_v41 = vadd.f32 %v3418_v4, %v4326_v57 }
 0x149   : > { %v4366_v10 = vadd.f32 %v3454_v6, %v1067_v35 }
 0x14a   : > { %v3419_v11 = vpop.f32.mrb[40].mxu0 }
 0x14b   : > { %v3532_v12 = vpop.f32.mrb[40].mxu1  ;;  %v3420_v13 = vpop.f32.mrb[41].mxu0 }
 0x14c   : > { %v4368_v14 = vadd.f32 %v3532_v12, %v1113_v40  ;;  %v3421_v15 = vadd.f32 %v3420_v13, %v3419_v11  ;;  %v1201_v16 = vpop.f32.mrb[41].mxu1  ;;  %v3422_v17 = vpop.f32.mrb[42].mxu0 }
 0x14d   : > { %v4370_v18 = vadd.f32 %v1201_v16, %v1105_v51  ;;  %v3533_v19 = vpop.f32.mrb[42].mxu1  ;;  %v3423_v20 = vpop.f32.mrb[43].mxu0 }
 0x14e   : > { %v1266_v56 = vmax.f32 %v4368_v14, 0.0  ;;  %v4373_v21 = vadd.f32 %v3533_v19, %v1116_v41  ;;  %v3424_v22 = vadd.f32 %v3423_v20, %v3422_v17  ;;  %v1204_v57 = vpop.f32.mrb[43].mxu1  ;;  %v1121_v23 = vadd.f32 %v3421_v15, %v4330_v8 }
 0x14f   : > { %v1264_v27 = vmax.f32 %v4370_v18, 0.0  ;;  %v4377_v28 = vadd.f32 %v1204_v57, %v1108_v26 }
 0x150   : > { %1284 = vadd.xlane.f32.xlu1 %v1266_v56  ;;  %v1124_v29 = vadd.f32 %v3424_v22, %v4332_v9  ;;  %v1267_v30 = vmax.f32 %v4373_v21, 0.0 }
 0x151   : > { %1280 = vadd.xlane.f32.xlu0 %v1264_v27  ;;  %v1265_v32 = vmax.f32 %v4377_v28, 0.0 }
 0x152   : > { %v3425_v31 = vpop.f32.mrb[44].mxu0 }
 0x153   : > { %v3536_v33 = vpop.f32.mrb[44].mxu1  ;;  %v3426_v34 = vpop.f32.mrb[45].mxu0 }
 0x154   : > { %v3427_v8 = vadd.f32 %v3426_v34, %v3425_v31  ;;  %v1217_v35 = vpop.f32.mrb[45].mxu1  ;;  %1286 = vadd.xlane.f32.xlu1 %v1267_v30  ;;  %v3428_v36 = vpop.f32.mrb[46].mxu0 }
 0x155   : > { %v4388_v37 = vadd.f32 %v1217_v35, %v1121_v23  ;;  %v3537_v38 = vpop.f32.mrb[46].mxu1  ;;  %1282 = vadd.xlane.f32.xlu0 %v1265_v32  ;;  %v3429_v9 = vpop.f32.mrb[47].mxu0  ;;  %v3749_v35 = vld [vmem:[%s5535_s2] sm:$0xff]  }
 0x156   : > { %v1129_v39 = vadd.f32 %v3427_v8, %v4336_v24  ;;  %v3430_v42 = vadd.f32 %v3429_v9, %v3428_v36  ;;  %v1220_v45 = vpop.f32.mrb[47].mxu1  ;;  %3546 = vmatprep.subr.bf16.mxu1 %v3749_v35  ;;  %v1328_v36 = vlaneseq }
 0x157   : > { %v1268_v46 = vmax.f32 %v4388_v37, 0.0  ;;  %v4394_v47 = vadd.f32 %v1220_v45, %v1124_v29  ;;  %3547 = vmatpush3.bf16.msra.mxu1 %v3749_v35 }
 0x158   : > { %v1132_v48 = vadd.f32 %v3430_v42, %v4338_v25  ;;  %v4397_v49 = vadd.f32 %v3536_v33, %v1129_v39 }
 0x159   : > { %v1269_v50 = vmax.f32 %v4394_v47, 0.0  ;;  %1288 = vadd.xlane.f32.xlu0 %v1268_v46 }
 0x15a   : > { %v3431_v51 = vpop.f32.mrb[48].mxu0  ;;  %v1270_v52 = vmax.f32 %v4397_v49, 0.0  ;;  %v4403_v26 = vadd.f32 %v3537_v38, %v1132_v48  ;;  %v1329_v38 = vand.u32 127, %v1328_v36  ;;  %v3981_v48 = vmov 0.0  }
 0x15b   : > { %1290 = vadd.xlane.f32.xlu1 %v1269_v50  ;;  %v3432_v24 = vpop.f32.mrb[49].mxu0  ;;  %v3540_v55 = vpop.f32.mrb[48].mxu1 }
 0x15c   : > { %v3433_v58 = vadd.f32 %v3432_v24, %v3431_v51  ;;  %v3434_v59 = vpop.f32.mrb[50].mxu0  ;;  %v1271_v25 = vmax.f32 %v4403_v26, 0.0  ;;  %v1233_v60 = vpop.f32.mrb[49].mxu1  ;;  %vm1330_vm1 = vcmp.lt.s32.totalorder %v1329_v38, 20 }
 0x15d   : > { %1292 = vadd.xlane.f32.xlu0 %v1270_v52  ;;  %v3435_v63 = vpop.f32.mrb[51].mxu0  ;;  %v3541_v0 = vpop.f32.mrb[50].mxu1  ;;  %v4463_v51 = vsel %vm1330_vm1, 1.0, %v3981_v48  ;;  %v3751_v48 = vld [vmem:[%s5535_s2 + $0x10] sm:$0xff]  }
 0x15e   : > { %v3436_v1 = vadd.f32 %v3435_v63, %v3434_v59  ;;  %v1137_v2 = vadd.f32 %v3433_v58, %v4342_v43  ;;  %v1236_v3 = vpop.f32.mrb[51].mxu1 }
 0x15f   : > { %1294 = vadd.xlane.f32.xlu1 %v1271_v25 }
 0x160   : > { %v4413_v4 = vadd.f32 %v1233_v60, %v1137_v2  ;;  %v1140_v5 = vadd.f32 %v3436_v1, %v4344_v44 }
 0x162   : > { %v1272_v40 = vmax.f32 %v4413_v4, 0.0  ;;  %v4417_v6 = vadd.f32 %v1236_v3, %v1140_v5  ;;  %v3437_v41 = vpop.f32.mrb[52].mxu0 }
 0x163   : > { %v3544_v11 = vpop.f32.mrb[52].mxu1  ;;  %v3438_v12 = vpop.f32.mrb[53].mxu0 }
 0x164   : > { %v1273_v13 = vmax.f32 %v4417_v6, 0.0  ;;  %v4421_v15 = vadd.f32 %v3544_v11, %v4363_v7  ;;  %v3439_v43 = vadd.f32 %v3438_v12, %v3437_v41  ;;  %v1249_v16 = vpop.f32.mrb[53].mxu1  ;;  %v3440_v17 = vpop.f32.mrb[54].mxu0  ;;  %1296 = vadd.xlane.f32.xlu0 %v1272_v40 }
 0x165   : > { %v4426_v44 = vadd.f32 %v1249_v16, %v4357_v53  ;;  %v3545_v19 = vpop.f32.mrb[54].mxu1  ;;  %v3441_v20 = vpop.f32.mrb[55].mxu0 }
 0x166   : > { %v1145_v22 = vadd.f32 %v3439_v43, %v4348_v61  ;;  %v4430_v57 = vadd.f32 %v3545_v19, %v4366_v10  ;;  %v3442_v23 = vadd.f32 %v3441_v20, %v3440_v17  ;;  %v1252_v29 = vpop.f32.mrb[55].mxu1  ;;  %1298 = vadd.xlane.f32.xlu1 %v1273_v13 }
 0x167   : > { %v4435_v7 = vadd.f32 %v1252_v29, %v4360_v54  ;;  %v1276_v10 = vmax.f32 %v4426_v44, 0.0 }
 0x168   : > { %v1148_v31 = vadd.f32 %v3442_v23, %v4350_v62  ;;  %v4438_v33 = vadd.f32 %v3540_v55, %v1145_v22  ;;  %v1278_v62 = vmax.f32 %v4421_v15, 0.0  ;;  %v1279_v8 = vmax.f32 %v4430_v57, 0.0  ;;  %v3754_v15 = vld [vmem:[%s5535_s2 + $0x28] sm:$0xff]  }
 0x169   : > { %v1277_v54 = vmax.f32 %v4435_v7, 0.0 }
 0x16a   : > { %v1274_v53 = vmax.f32 %v4438_v33, 0.0  ;;  %v4441_v34 = vadd.f32 %v3541_v0, %v1148_v31 }
 0x16c   : > { %1300 = vadd.xlane.f32.xlu0 %v1274_v53  ;;  %v1275_v61 = vmax.f32 %v4441_v34, 0.0 }
 0x16e   : > { %1302 = vadd.xlane.f32.xlu1 %v1275_v61 }
 0x170   : > { %1304 = vadd.xlane.f32.xlu0 %v1276_v10 }
 0x172   : > { %1306 = vadd.xlane.f32.xlu1 %v1277_v54 }
 0x174   : > { %1308 = vadd.xlane.f32.xlu0 %v1278_v62 }
 0x176   : > { %1310 = vadd.xlane.f32.xlu1 %v1279_v8 }
 0x1dd   : > { %v1285_v9 = vpop.xlane.xlu1 %1284 }
 0x1de   : > { %v1314_v39 = vmul.f32 0.05, %v1285_v9  ;;  %v1281_v42 = vpop.xlane.xlu0 %1280 }
 0x1df   : > { %v1312_v45 = vmul.f32 0.05, %v1281_v42 }
 0x1e0   : > { %v1335_v24 = vsub.f32 %v1266_v56, %v1314_v39  ;;  %v3750_v39 = vld [vmem:[%s5535_s2 + $0x8] sm:$0xff]  }
 0x1e1   : > { %v1333_v55 = vsub.f32 %v1264_v27, %v1312_v45  ;;  %v1287_v58 = vpop.xlane.xlu1 %1286  ;;  %3548 = vmatprep.subr.bf16.mxu1 %v3750_v39 }
 0x1e2   : > { %v1315_v59 = vmul.f32 0.05, %v1287_v58  ;;  %v1283_v60 = vpop.xlane.xlu0 %1282  ;;  %v4479_v56 = vmul.f32 %v4463_v51, %v1335_v24  ;;  %3549 = vmatpush3.bf16.msra.mxu1 %v3750_v39 }
 0x1e3   : > { %v1313_v63 = vmul.f32 0.05, %v1283_v60  ;;  %v4470_v0 = vmul.f32 %v4463_v51, %v1333_v55  ;;  %3550 = vmatprep.subr.bf16.mxu1 %v3751_v48 }
 0x1e4   : > { %v1336_v1 = vsub.f32 %v1267_v30, %v1315_v59  ;;  %v1367_v30 = vmul.f32 %v4479_v56, %v4479_v56 }
 0x1e5   : > { %v1334_v2 = vsub.f32 %v1265_v32, %v1313_v63  ;;  %v1365_v14 = vmul.f32 %v4470_v0, %v4470_v0 }
 0x1e6   : > { %v1289_v18 = vpop.xlane.xlu0 %1288  ;;  %v4485_v41 = vmul.f32 %v4463_v51, %v1336_v1  ;;  %3551 = vmatpush3.bf16.msra.mxu1 %v3751_v48 }
 0x1e7   : > { %v1316_v27 = vmul.f32 0.05, %v1289_v18  ;;  %1381 = vadd.xlane.f32.xlu0 %v1365_v14  ;;  %v4482_v3 = vmul.f32 %v4463_v51, %v1334_v2  ;;  %v3752_v2 = vld [vmem:[%s5535_s2 + $0x18] sm:$0xff]  }
 0x1e8   : > { %v1291_v5 = vpop.xlane.xlu1 %1290  ;;  %v1368_v37 = vmul.f32 %v4485_v41, %v4485_v41  ;;  %3552 = vmatprep.subr.bf16.mxu1 %v3752_v2 }
 0x1e9   : > { %v1337_v21 = vsub.f32 %v1268_v46, %v1316_v27  ;;  %v1317_v28 = vmul.f32 0.05, %v1291_v5  ;;  %v1366_v32 = vmul.f32 %v4482_v3, %v4482_v3 }
 0x1ea   : > { %v1293_v11 = vpop.xlane.xlu0 %1292  ;;  %3553 = vmatpush3.bf16.msra.mxu1 %v3752_v2 }
 0x1eb   : > { %v1338_v12 = vsub.f32 %v1269_v50, %v1317_v28  ;;  %v1318_v43 = vmul.f32 0.05, %v1293_v11  ;;  %1385 = vadd.xlane.f32.xlu0 %v1367_v30  ;;  %1383 = vadd.xlane.f32.xlu1 %v1366_v32  ;;  %v4496_v16 = vmul.f32 %v4463_v51, %v1337_v21  ;;  %v3753_v21 = vld [vmem:[%s5535_s2 + $0x20] sm:$0xff]  }
 0x1ec   : > { %v1295_v17 = vpop.xlane.xlu1 %1294  ;;  %3554 = vmatprep.subr.bf16.mxu1 %v3753_v21 }
 0x1ed   : > { %v1339_v46 = vsub.f32 %v1270_v52, %v1318_v43  ;;  %v1319_v19 = vmul.f32 0.05, %v1295_v17  ;;  %v1369_v20 = vmul.f32 %v4496_v16, %v4496_v16  ;;  %v4505_v47 = vmul.f32 %v4463_v51, %v1338_v12  ;;  %v3756_v17 = vld [vmem:[%s5535_s2 + $0x38] sm:$0xff]  }
 0x1ee   : > { %3555 = vmatpush3.bf16.msra.mxu1 %v3753_v21 }
 0x1ef   : > { %v1340_v50 = vsub.f32 %v1271_v25, %v1319_v19  ;;  %1387 = vadd.xlane.f32.xlu1 %v1368_v37  ;;  %1389 = vadd.xlane.f32.xlu0 %v1369_v20  ;;  %v4510_v22 = vmul.f32 %v4463_v51, %v1339_v46  ;;  %v1370_v49 = vmul.f32 %v4505_v47, %v4505_v47 }
 0x1f0   : > { %3556 = vmatprep.subr.bf16.mxu1 %v3754_v15 }
 0x1f1   : > { %v1297_v23 = vpop.xlane.xlu0 %1296  ;;  %v1371_v52 = vmul.f32 %v4510_v22, %v4510_v22  ;;  %v4517_v29 = vmul.f32 %v4463_v51, %v1340_v50 }
 0x1f2   : > { %v1320_v31 = vmul.f32 0.05, %v1297_v23  ;;  %3557 = vmatpush3.bf16.msra.mxu1 %v3754_v15 }
 0x1f3   : > { %1391 = vadd.xlane.f32.xlu1 %v1370_v49  ;;  %1393 = vadd.xlane.f32.xlu0 %v1371_v52  ;;  %v1299_v26 = vpop.xlane.xlu1 %1298  ;;  %v1372_v36 = vmul.f32 %v4517_v29, %v4517_v29 }
 0x1f4   : > { %v1341_v25 = vsub.f32 %v1272_v40, %v1320_v31  ;;  %v1321_v35 = vmul.f32 0.05, %v1299_v26 }
 0x1f6   : > { %v1342_v38 = vsub.f32 %v1273_v13, %v1321_v35  ;;  %v4526_v9 = vmul.f32 %v4463_v51, %v1341_v25 }
 0x1f7   : > { %1395 = vadd.xlane.f32.xlu1 %v1372_v36 }
 0x1f8   : > { %v1373_v42 = vmul.f32 %v4526_v9, %v4526_v9  ;;  %v4534_v4 = vmul.f32 %v4463_v51, %v1342_v38 }
 0x1f9   : > { %v1301_v40 = vpop.xlane.xlu0 %1300 }
 0x1fa   : > { %v1322_v45 = vmul.f32 0.05, %v1301_v40  ;;  %1397 = vadd.xlane.f32.xlu0 %v1373_v42  ;;  %v1374_v6 = vmul.f32 %v4534_v4, %v4534_v4 }
 0x1fb   : > { %v1303_v13 = vpop.xlane.xlu1 %1302 }
 0x1fc   : > { %v1343_v24 = vsub.f32 %v1274_v53, %v1322_v45  ;;  %v1323_v55 = vmul.f32 0.05, %v1303_v13  ;;  %1399 = vadd.xlane.f32.xlu1 %v1374_v6 }
 0x1fd   : > { %v1305_v58 = vpop.xlane.xlu0 %1304 }
 0x1fe   : > { %v1344_v59 = vsub.f32 %v1275_v61, %v1323_v55  ;;  %v1324_v60 = vmul.f32 0.05, %v1305_v58  ;;  %v4546_v63 = vmul.f32 %v4463_v51, %v1343_v24  ;;  %v4601_v55 = vld [vmem:[%s5539_s6 + $0x1] ss:$0 sm:$0xff] }
 0x1ff   : > { %v1307_v1 = vpop.xlane.xlu1 %1306 }
 0x200   : > { %v1345_v33 = vsub.f32 %v1276_v10, %v1324_v60  ;;  %v1325_v53 = vmul.f32 0.05, %v1307_v1  ;;  %v1375_v14 = vmul.f32 %v4546_v63, %v4546_v63  ;;  %v4556_v34 = vmul.f32 %v4463_v51, %v1344_v59 }
 0x201   : > { %v1309_v61 = vpop.xlane.xlu0 %1308 }
 0x202   : > { %v1346_v18 = vsub.f32 %v1277_v54, %v1325_v53  ;;  %v1326_v27 = vmul.f32 0.05, %v1309_v61  ;;  %1401 = vadd.xlane.f32.xlu0 %v1375_v14  ;;  %v1376_v5 = vmul.f32 %v4556_v34, %v4556_v34  ;;  %v4563_v44 = vmul.f32 %v4463_v51, %v1345_v33 }
 0x203   : > { %v1311_v10 = vpop.xlane.xlu1 %1310 }
 0x204   : > { %v1347_v28 = vsub.f32 %v1278_v62, %v1326_v27  ;;  %v1327_v30 = vmul.f32 0.05, %v1311_v10  ;;  %1403 = vadd.xlane.f32.xlu1 %v1376_v5  ;;  %v1377_v7 = vmul.f32 %v4563_v44, %v4563_v44  ;;  %v4573_v54 = vmul.f32 %v4463_v51, %v1346_v18  ;;  %v4609_v27 = vld [vmem:[%s5539_s6 + $0x2] ss:$0 sm:$0xff] }
 0x206   : > { %v1348_v32 = vsub.f32 %v1279_v8, %v1327_v30  ;;  %1405 = vadd.xlane.f32.xlu0 %v1377_v7  ;;  %v1378_v11 = vmul.f32 %v4573_v54, %v4573_v54  ;;  %v4580_v12 = vmul.f32 %v4463_v51, %v1347_v28  ;;  %v3755_v8 = vld [vmem:[%s5535_s2 + $0x30] sm:$0xff]  }
 0x207   : > { %3558 = vmatprep.subr.bf16.mxu1 %v3755_v8 }
 0x208   : > { %1407 = vadd.xlane.f32.xlu1 %v1378_v11  ;;  %v1379_v62 = vmul.f32 %v4580_v12, %v4580_v12  ;;  %v4588_v43 = vmul.f32 %v4463_v51, %v1348_v32  ;;  %3559 = vmatpush3.bf16.msra.mxu1 %v3755_v8 }
 0x209   : > { %3560 = vmatprep.subr.bf16.mxu1 %v3756_v17 }
 0x20a   : > { %1409 = vadd.xlane.f32.xlu0 %v1379_v62  ;;  %v1380_v57 = vmul.f32 %v4588_v43, %v4588_v43 }
 0x20c   : > { %1411 = vadd.xlane.f32.xlu1 %v1380_v57  ;;  %3561 = vmatpush3.bf16.msra.mxu1 %v3756_v17 }
 0x274   : > { %v1382_v37 = vpop.xlane.xlu0 %1381 }
 0x275   : > { %v1413_v46 = vmul.f32 0.05, %v1382_v37 }
 0x277   : > { %v1429_v19 = vadd.f32 1e-05, %v1413_v46 }
 0x278   : > { %v1384_v20 = vpop.xlane.xlu1 %1383  ;;  %v1386_v50 = vpop.xlane.xlu0 %1385 }
 0x279   : > { %3781 = vrsqrt.f32 %v1429_v19  ;;  %v1414_v23 = vmul.f32 0.05, %v1384_v20  ;;  %v1415_v49 = vmul.f32 0.05, %v1386_v50 }
 0x27b   : > { %v1430_v52 = vadd.f32 1e-05, %v1414_v23  ;;  %v1431_v31 = vadd.f32 1e-05, %v1415_v49 }
 0x27c   : > { %v1388_v26 = vpop.xlane.xlu1 %1387  ;;  %v1390_v25 = vpop.xlane.xlu0 %1389 }
 0x27d   : > { %3783 = vrsqrt.f32 %v1430_v52  ;;  %v1416_v35 = vmul.f32 0.05, %v1388_v26  ;;  %v1417_v36 = vmul.f32 0.05, %v1390_v25 }
 0x27e   : > { %3785 = vrsqrt.f32 %v1431_v31 }
 0x27f   : > { %v1432_v38 = vadd.f32 1e-05, %v1416_v35  ;;  %v1433_v39 = vadd.f32 1e-05, %v1417_v36 }
 0x280   : > { %v1392_v42 = vpop.xlane.xlu1 %1391  ;;  %v1394_v40 = vpop.xlane.xlu0 %1393 }
 0x281   : > { %3787 = vrsqrt.f32 %v1432_v38  ;;  %v1418_v45 = vmul.f32 0.05, %v1392_v42  ;;  %v1419_v6 = vmul.f32 0.05, %v1394_v40 }
 0x282   : > { %3789 = vrsqrt.f32 %v1433_v39 }
 0x283   : > { %v3782_v13 = vpop.eup %3781  ;;  %v1434_v48 = vadd.f32 1e-05, %v1418_v45  ;;  %v1435_v24 = vadd.f32 1e-05, %v1419_v6 }
 0x284   : > { %v1396_v58 = vpop.xlane.xlu1 %1395  ;;  %v1461_v59 = vmul.f32 %v3782_v13, %v4470_v0 }
 0x285   : > { %3791 = vrsqrt.f32 %v1434_v48  ;;  %v1420_v60 = vmul.f32 0.05, %v1396_v58 }
 0x286   : > { %3793 = vrsqrt.f32 %v1435_v24  ;;  %v1483_v53 = vmul.f32 %v4601_v55, %v1461_v59 }
 0x287   : > { %v3784_v1 = vpop.eup %3783  ;;  %v1436_v2 = vadd.f32 1e-05, %v1420_v60  ;;  %v1398_v33 = vpop.xlane.xlu0 %1397 }
 0x288   : > { %v3786_v14 = vpop.eup %3785  ;;  %v1421_v61 = vmul.f32 0.05, %v1398_v33  ;;  %v1462_v18 = vmul.f32 %v3784_v1, %v4482_v3  ;;  %v1503_v32 = vadd.f32 %v4609_v27, %v1483_v53 }
 0x289   : > { %v1463_v5 = vmul.f32 %v3786_v14, %v4479_v56  ;;  %3795 = vrsqrt.f32 %v1436_v2  ;;  %v1400_v0 = vpop.xlane.xlu1 %1399 }
 0x28a   : > { %v1437_v10 = vadd.f32 1e-05, %v1421_v61  ;;  %v1422_v21 = vmul.f32 0.05, %v1400_v0  ;;  %v1484_v28 = vmul.f32 %v4601_v55, %v1462_v18 }
 0x28b   : > { %v3788_v30 = vpop.eup %3787  ;;  %v1485_v7 = vmul.f32 %v4601_v55, %v1463_v5 }
 0x28c   : > { %v3790_v11 = vpop.eup %3789  ;;  %v1464_v3 = vmul.f32 %v3788_v30, %v4485_v41  ;;  %3797 = vrsqrt.f32 %v1437_v10  ;;  %v1438_v15 = vadd.f32 1e-05, %v1422_v21  ;;  %v1504_v62 = vadd.f32 %v4609_v27, %v1484_v28 }
 0x28d   : > { %v1465_v56 = vmul.f32 %v3790_v11, %v4496_v16  ;;  %v1505_v50 = vadd.f32 %v4609_v27, %v1485_v7 }
 0x28e   : > { %v1486_v57 = vmul.f32 %v4601_v55, %v1464_v3  ;;  %3799 = vrsqrt.f32 %v1438_v15  ;;  %v1519_v8 = vpack.c.bf16 %v1504_v62, %v1503_v32 }
 0x28f   : > { %v3792_v17 = vpop.eup %3791  ;;  %v1402_v37 = vpop.xlane.xlu0 %1401  ;;  %v1487_v46 = vmul.f32 %v4601_v55, %v1465_v56 }
 0x290   : > { %v3794_v19 = vpop.eup %3793  ;;  %3562 = vmatprep.mubr.bf16.mxu1 %v1519_v8  ;;  %v1423_v20 = vmul.f32 0.05, %v1402_v37  ;;  %v1506_v41 = vadd.f32 %v4609_v27, %v1486_v57  ;;  %v1466_v23 = vmul.f32 %v3792_v17, %v4505_v47 }
 0x291   : > { %v1404_v49 = vpop.xlane.xlu1 %1403  ;;  %v1467_v16 = vmul.f32 %v3794_v19, %v4510_v22  ;;  %v1507_v38 = vadd.f32 %v4609_v27, %v1487_v46 }
 0x292   : > { %v1439_v52 = vadd.f32 1e-05, %v1423_v20  ;;  %v1424_v31 = vmul.f32 0.05, %v1404_v49  ;;  %v1520_v26 = vpack.c.bf16 %v1506_v41, %v1505_v50  ;;  %v1488_v25 = vmul.f32 %v4601_v55, %v1466_v23 }
 0x293   : > { %v3796_v35 = vpop.eup %3795  ;;  %v1406_v36 = vpop.xlane.xlu0 %1405  ;;  %v1489_v22 = vmul.f32 %v4601_v55, %v1467_v16 }
 0x294   : > { %3801 = vrsqrt.f32 %v1439_v52  ;;  %v1440_v39 = vadd.f32 1e-05, %v1424_v31  ;;  %3563 = vmatmul.mubr.bf16.vlgmr.msra.gmra.mrb[56].mxu1 %v1520_v26  ;;  %v1425_v42 = vmul.f32 0.05, %v1406_v36  ;;  %v1508_v40 = vadd.f32 %v4609_v27, %v1488_v25 }
 0x295   : > { %v1408_v45 = vpop.xlane.xlu1 %1407  ;;  %v1468_v47 = vmul.f32 %v3796_v35, %v4517_v29  ;;  %v1509_v29 = vadd.f32 %v4609_v27, %v1489_v22 }
 0x296   : > { %v3798_v6 = vpop.eup %3797  ;;  %3803 = vrsqrt.f32 %v1440_v39  ;;  %v1441_v13 = vadd.f32 1e-05, %v1425_v42  ;;  %v1426_v48 = vmul.f32 0.05, %v1408_v45  ;;  %v1521_v24 = vpack.c.bf16 %v1508_v40, %v1507_v38 }
 0x297   : > { %v1410_v58 = vpop.xlane.xlu0 %1409  ;;  %v1490_v59 = vmul.f32 %v4601_v55, %v1468_v47  ;;  %v1469_v60 = vmul.f32 %v3798_v6, %v4526_v9 }
 0x298   : > { %v3800_v1 = vpop.eup %3799  ;;  %3805 = vrsqrt.f32 %v1441_v13  ;;  %v1442_v2 = vadd.f32 1e-05, %v1426_v48  ;;  %3566 = vmatprep.mubr.bf16.mxu1 %v1521_v24  ;;  %v1427_v33 = vmul.f32 0.05, %v1410_v58 }
 0x299   : > { %v1412_v53 = vpop.xlane.xlu1 %1411  ;;  %v1510_v14 = vadd.f32 %v4609_v27, %v1490_v59  ;;  %v1470_v61 = vmul.f32 %v3800_v1, %v4534_v4  ;;  %v1491_v18 = vmul.f32 %v4601_v55, %v1469_v60 }
 0x29a   : > { %3807 = vrsqrt.f32 %v1442_v2  ;;  %v1443_v5 = vadd.f32 1e-05, %v1427_v33  ;;  %v1428_v0 = vmul.f32 0.05, %v1412_v53 }
 0x29b   : > { %v1522_v10 = vpack.c.bf16 %v1510_v14, %v1509_v29  ;;  %v1492_v9 = vmul.f32 %v4601_v55, %v1470_v61  ;;  %v1511_v28 = vadd.f32 %v4609_v27, %v1491_v18 }
 0x29c   : > { %3809 = vrsqrt.f32 %v1443_v5  ;;  %v1444_v21 = vadd.f32 1e-05, %v1428_v0 }
 0x29d   : > { %3567 = vmatmul.mubr.bf16.gmra.mrb[60].mxu1 %v1522_v10  ;;  %v1512_v30 = vadd.f32 %v4609_v27, %v1492_v9 }
 0x29e   : > { %v3802_v7 = vpop.eup %3801  ;;  %3811 = vrsqrt.f32 %v1444_v21 }
 0x29f   : > { %v1523_v32 = vpack.c.bf16 %v1512_v30, %v1511_v28  ;;  %v1471_v4 = vmul.f32 %v3802_v7, %v4546_v63 }
 0x2a0   : > { %v3804_v11 = vpop.eup %3803 }
 0x2a1   : > { %3570 = vmatprep.mubr.bf16.mxu1 %v1523_v32  ;;  %v1472_v3 = vmul.f32 %v3804_v11, %v4556_v34  ;;  %v1493_v15 = vmul.f32 %v4601_v55, %v1471_v4 }
 0x2a2   : > { %v3806_v62 = vpop.eup %3805 }
 0x2a3   : > { %v1494_v56 = vmul.f32 %v4601_v55, %v1472_v3  ;;  %v1473_v57 = vmul.f32 %v3806_v62, %v4563_v44  ;;  %v1513_v17 = vadd.f32 %v4609_v27, %v1493_v15 }
 0x2a4   : > { %v3808_v8 = vpop.eup %3807 }
 0x2a5   : > { %v1514_v37 = vadd.f32 %v4609_v27, %v1494_v56  ;;  %v1474_v46 = vmul.f32 %v3808_v8, %v4573_v54  ;;  %v1495_v63 = vmul.f32 %v4601_v55, %v1473_v57 }
 0x2a6   : > { %v3810_v19 = vpop.eup %3809 }
 0x2a7   : > { %v1524_v20 = vpack.c.bf16 %v1514_v37, %v1513_v17  ;;  %v1496_v34 = vmul.f32 %v4601_v55, %v1474_v46  ;;  %v1475_v50 = vmul.f32 %v3810_v19, %v4580_v12  ;;  %v1515_v23 = vadd.f32 %v4609_v27, %v1495_v63  ;;  %v3203_v12 = vld [vmem:[%s5539_s6 + $0x3] ss:$0 sm:$0xff] }
 0x2a8   : > { %v3812_v41 = vpop.eup %3811  ;;  %v3757_v19 = vld [vmem:[%s5536_s3] sm:$0xff]  }
 0x2a9   : > { %3571 = vmatmul.mubr.bf16.gmra.mrb[64].mxu1 %v1524_v20  ;;  %v1516_v44 = vadd.f32 %v4609_v27, %v1496_v34  ;;  %v1476_v49 = vmul.f32 %v3812_v41, %v4588_v43  ;;  %v1497_v16 = vmul.f32 %v4601_v55, %v1475_v50  ;;  %v3758_v20 = vld [vmem:[%s5536_s3 + $0x8] sm:$0xff]   ;;  %3578 = vmatprep.subr.bf16.mxu0 %v3757_v19  ;;  %v3759_v34 = vld [vmem:[%s5536_s3 + $0x10] sm:$0xff]  }
 0x2aa   : > { %3579 = vmatpush3.bf16.msra.mxu0 %v3757_v19 }
 0x2ab   : > { %v1525_v52 = vpack.c.bf16 %v1516_v44, %v1515_v23  ;;  %v1498_v54 = vmul.f32 %v4601_v55, %v1476_v49  ;;  %v1517_v31 = vadd.f32 %v4609_v27, %v1497_v16  ;;  %3580 = vmatprep.subr.bf16.mxu0 %v3758_v20 }
 0x2ad   : > { %3574 = vmatprep.mubr.bf16.mxu1 %v1525_v52  ;;  %v1518_v26 = vadd.f32 %v4609_v27, %v1498_v54 }
 0x2ae   : > { %3581 = vmatpush3.bf16.msra.mxu0 %v3758_v20 }
 0x2af   : > { %v1526_v25 = vpack.c.bf16 %v1518_v26, %v1517_v31  ;;  %3582 = vmatprep.subr.bf16.mxu0 %v3759_v34 }
 0x2b1   : > { %3575 = vmatmul.mubr.bf16.gmra.mrb[68].mxu1 %v1526_v25 }
 0x2b2   : > { %3583 = vmatpush3.bf16.msra.mxu0 %v3759_v34 }
 0x367   : > { %v3564_v35 = vpop.f32.mrb[56].mxu1 }
 0x368   : > { %v1630_v36 = vpop.f32.mrb[57].mxu1  ;;  %v4661_v42 = vadd.f32 %v3564_v35, %v3203_v12 }
 0x369   : > { %v4659_v38 = vadd.f32 %v3203_v12, %v1630_v36  ;;  %v3565_v43 = vpop.f32.mrb[58].mxu1 }
 0x36a   : > { %v1633_v39 = vpop.f32.mrb[59].mxu1  ;;  %v4666_v45 = vadd.f32 %v3565_v43, %v3203_v12  ;;  %v1695_v47 = vmax.f32 %v4661_v42, 0.0 }
 0x36b   : > { %v1693_v55 = vmax.f32 %v4659_v38, 0.0  ;;  %v4664_v40 = vadd.f32 %v3203_v12, %v1633_v39 }
 0x36c   : > { %v1696_v6 = vmax.f32 %v4666_v45, 0.0 }
 0x36d   : > { %v1694_v27 = vmax.f32 %v4664_v40, 0.0  ;;  %1709 = vadd.xlane.f32.xlu0 %v1693_v55 }
 0x36f   : > { %1711 = vadd.xlane.f32.xlu1 %v1694_v27 }
 0x370   : > { %v3568_v22 = vpop.f32.mrb[60].mxu1 }
 0x371   : > { %v1646_v13 = vpop.f32.mrb[61].mxu1  ;;  %1713 = vadd.xlane.f32.xlu0 %v1695_v47  ;;  %v4681_v59 = vadd.f32 %v3568_v22, %v3203_v12 }
 0x372   : > { %v4677_v48 = vadd.f32 %v3203_v12, %v1646_v13  ;;  %v3569_v24 = vpop.f32.mrb[62].mxu1 }
 0x373   : > { %v1649_v58 = vpop.f32.mrb[63].mxu1  ;;  %1715 = vadd.xlane.f32.xlu1 %v1696_v6  ;;  %v4686_v2 = vadd.f32 %v3569_v24, %v3203_v12  ;;  %v1699_v53 = vmax.f32 %v4681_v59, 0.0 }
 0x374   : > { %v1697_v60 = vmax.f32 %v4677_v48, 0.0  ;;  %v4684_v1 = vadd.f32 %v3203_v12, %v1649_v58 }
 0x375   : > { %v1700_v29 = vmax.f32 %v4686_v2, 0.0 }
 0x376   : > { %v1698_v33 = vmax.f32 %v4684_v1, 0.0  ;;  %1717 = vadd.xlane.f32.xlu0 %v1697_v60 }
 0x378   : > { %1719 = vadd.xlane.f32.xlu1 %v1698_v33 }
 0x37a   : > { %1721 = vadd.xlane.f32.xlu0 %v1699_v53 }
 0x37c   : > { %1723 = vadd.xlane.f32.xlu1 %v1700_v29  ;;  %v3572_v14 = vpop.f32.mrb[64].mxu1 }
 0x37d   : > { %v1662_v61 = vpop.f32.mrb[65].mxu1  ;;  %v4701_v10 = vadd.f32 %v3572_v14, %v3203_v12 }
 0x37e   : > { %v4699_v18 = vadd.f32 %v3203_v12, %v1662_v61  ;;  %v3573_v5 = vpop.f32.mrb[66].mxu1 }
 0x37f   : > { %v1665_v0 = vpop.f32.mrb[67].mxu1  ;;  %v4706_v28 = vadd.f32 %v3573_v5, %v3203_v12  ;;  %v1703_v7 = vmax.f32 %v4701_v10, 0.0 }
 0x380   : > { %v1701_v9 = vmax.f32 %v4699_v18, 0.0  ;;  %v4704_v21 = vadd.f32 %v3203_v12, %v1665_v0 }
 0x381   : > { %v1704_v11 = vmax.f32 %v4706_v28, 0.0 }
 0x382   : > { %v1702_v30 = vmax.f32 %v4704_v21, 0.0  ;;  %1725 = vadd.xlane.f32.xlu0 %v1701_v9 }
 0x384   : > { %1727 = vadd.xlane.f32.xlu1 %v1702_v30  ;;  %v3576_v32 = vpop.f32.mrb[68].mxu1 }
 0x385   : > { %v1678_v4 = vpop.f32.mrb[69].mxu1  ;;  %v4719_v56 = vadd.f32 %v3576_v32, %v3203_v12 }
 0x386   : > { %v4715_v3 = vadd.f32 %v3203_v12, %v1678_v4  ;;  %1729 = vadd.xlane.f32.xlu0 %v1703_v7  ;;  %v3577_v15 = vpop.f32.mrb[70].mxu1 }
 0x387   : > { %v1681_v62 = vpop.f32.mrb[71].mxu1  ;;  %v4726_v17 = vadd.f32 %v3577_v15, %v3203_v12  ;;  %v1707_v46 = vmax.f32 %v4719_v56, 0.0  ;;  %v3762_v56 = vld [vmem:[%s5536_s3 + $0x28] sm:$0xff]  }
 0x388   : > { %v1705_v57 = vmax.f32 %v4715_v3, 0.0  ;;  %v4722_v8 = vadd.f32 %v3203_v12, %v1681_v62  ;;  %1731 = vadd.xlane.f32.xlu1 %v1704_v11 }
 0x389   : > { %v1708_v63 = vmax.f32 %v4726_v17, 0.0 }
 0x38a   : > { %v1706_v37 = vmax.f32 %v4722_v8, 0.0  ;;  %1733 = vadd.xlane.f32.xlu0 %v1705_v57 }
 0x38c   : > { %1735 = vadd.xlane.f32.xlu1 %v1706_v37 }
 0x38e   : > { %1737 = vadd.xlane.f32.xlu0 %v1707_v46 }
 0x390   : > { %1739 = vadd.xlane.f32.xlu1 %v1708_v63 }
 0x3fa   : > { %v1710_v50 = vpop.xlane.xlu0 %1709 }
 0x3fb   : > { %v1741_v41 = vmul.f32 0.05, %v1710_v50 }
 0x3fc   : > { %v1712_v23 = vpop.xlane.xlu1 %1711 }
 0x3fd   : > { %v1757_v44 = vsub.f32 %v1693_v55, %v1741_v41  ;;  %v1742_v49 = vmul.f32 0.05, %v1712_v23 }
 0x3fe   : > { %v1714_v16 = vpop.xlane.xlu0 %1713 }
 0x3ff   : > { %v1758_v52 = vsub.f32 %v1694_v27, %v1742_v49  ;;  %v1743_v54 = vmul.f32 0.05, %v1714_v16  ;;  %v4753_v31 = vmul.f32 %v4463_v51, %v1757_v44 }
 0x400   : > { %v1716_v26 = vpop.xlane.xlu1 %1715 }
 0x401   : > { %v1759_v25 = vsub.f32 %v1695_v47, %v1743_v54  ;;  %v1744_v12 = vmul.f32 0.05, %v1716_v26  ;;  %v1789_v35 = vmul.f32 %v4753_v31, %v4753_v31  ;;  %v4760_v36 = vmul.f32 %v4463_v51, %v1758_v52 }
 0x403   : > { %v1760_v38 = vsub.f32 %v1696_v6, %v1744_v12  ;;  %v1718_v43 = vpop.xlane.xlu0 %1717  ;;  %1805 = vadd.xlane.f32.xlu0 %v1789_v35  ;;  %v1790_v39 = vmul.f32 %v4760_v36, %v4760_v36  ;;  %v4767_v55 = vmul.f32 %v4463_v51, %v1759_v25 }
 0x404   : > { %v1745_v42 = vmul.f32 0.05, %v1718_v43 }
 0x405   : > { %v1720_v40 = vpop.xlane.xlu1 %1719  ;;  %1807 = vadd.xlane.f32.xlu1 %v1790_v39  ;;  %v1791_v27 = vmul.f32 %v4767_v55, %v4767_v55  ;;  %v4772_v47 = vmul.f32 %v4463_v51, %v1760_v38  ;;  %v3761_v39 = vld [vmem:[%s5536_s3 + $0x20] sm:$0xff]  }
 0x406   : > { %v1761_v45 = vsub.f32 %v1697_v60, %v1745_v42  ;;  %v1746_v22 = vmul.f32 0.05, %v1720_v40 }
 0x407   : > { %v1722_v6 = vpop.xlane.xlu0 %1721  ;;  %1809 = vadd.xlane.f32.xlu0 %v1791_v27  ;;  %v1792_v13 = vmul.f32 %v4772_v47, %v4772_v47 }
 0x408   : > { %v1762_v24 = vsub.f32 %v1698_v33, %v1746_v22  ;;  %v1747_v58 = vmul.f32 0.05, %v1722_v6  ;;  %v4781_v14 = vmul.f32 %v4463_v51, %v1761_v45 }
 0x409   : > { %v1724_v61 = vpop.xlane.xlu1 %1723  ;;  %1811 = vadd.xlane.f32.xlu1 %v1792_v13  ;;  %v3764_v13 = vld [vmem:[%s5536_s3 + $0x38] sm:$0xff]  }
 0x40a   : > { %v1763_v5 = vsub.f32 %v1699_v53, %v1747_v58  ;;  %v1748_v48 = vmul.f32 0.05, %v1724_v61  ;;  %v1793_v60 = vmul.f32 %v4781_v14, %v4781_v14  ;;  %v4788_v0 = vmul.f32 %v4463_v51, %v1762_v24 }
 0x40c   : > { %v1764_v1 = vsub.f32 %v1700_v29, %v1748_v48  ;;  %1813 = vadd.xlane.f32.xlu0 %v1793_v60  ;;  %v1794_v33 = vmul.f32 %v4788_v0, %v4788_v0  ;;  %v4795_v32 = vmul.f32 %v4463_v51, %v1763_v5 }
 0x40e   : > { %1815 = vadd.xlane.f32.xlu1 %v1794_v33  ;;  %v1795_v59 = vmul.f32 %v4795_v32, %v4795_v32  ;;  %v4800_v53 = vmul.f32 %v4463_v51, %v1764_v1 }
 0x40f   : > { %v1726_v4 = vpop.xlane.xlu0 %1725 }
 0x410   : > { %1817 = vadd.xlane.f32.xlu0 %v1795_v59  ;;  %v1749_v15 = vmul.f32 0.05, %v1726_v4  ;;  %v1796_v2 = vmul.f32 %v4800_v53, %v4800_v53 }
 0x411   : > { %v1728_v29 = vpop.xlane.xlu1 %1727 }
 0x412   : > { %v1765_v62 = vsub.f32 %v1701_v9, %v1749_v15  ;;  %1819 = vadd.xlane.f32.xlu1 %v1796_v2  ;;  %v1750_v19 = vmul.f32 0.05, %v1728_v29 }
 0x413   : > { %v1730_v20 = vpop.xlane.xlu0 %1729 }
 0x414   : > { %v1766_v34 = vsub.f32 %v1702_v30, %v1750_v19  ;;  %v1751_v50 = vmul.f32 0.05, %v1730_v20  ;;  %v4809_v41 = vmul.f32 %v4463_v51, %v1765_v62 }
 0x415   : > { %v1732_v23 = vpop.xlane.xlu1 %1731 }
 0x416   : > { %v1767_v44 = vsub.f32 %v1703_v7, %v1751_v50  ;;  %v1752_v49 = vmul.f32 0.05, %v1732_v23  ;;  %v1797_v16 = vmul.f32 %v4809_v41, %v4809_v41  ;;  %v4816_v18 = vmul.f32 %v4463_v51, %v1766_v34  ;;  %v3760_v7 = vld [vmem:[%s5536_s3 + $0x18] sm:$0xff]  }
 0x417   : > { %v1734_v9 = vpop.xlane.xlu0 %1733  ;;  %3584 = vmatprep.subr.bf16.mxu0 %v3760_v7 }
 0x418   : > { %v1768_v21 = vsub.f32 %v1704_v11, %v1752_v49  ;;  %v1753_v30 = vmul.f32 0.05, %v1734_v9  ;;  %1821 = vadd.xlane.f32.xlu0 %v1797_v16  ;;  %v1798_v52 = vmul.f32 %v4816_v18, %v4816_v18  ;;  %v4823_v54 = vmul.f32 %v4463_v51, %v1767_v44  ;;  %3585 = vmatpush3.bf16.msra.mxu0 %v3760_v7  ;;  %v4878_v16 = vld [vmem:[%s5539_s6 + $0x4] ss:$0 sm:$0xff] }
 0x419   : > { %v1736_v10 = vpop.xlane.xlu1 %1735  ;;  %3586 = vmatprep.subr.bf16.mxu0 %v3761_v39 }
 0x41a   : > { %v1769_v26 = vsub.f32 %v1705_v57, %v1753_v30  ;;  %v1754_v25 = vmul.f32 0.05, %v1736_v10  ;;  %1823 = vadd.xlane.f32.xlu1 %v1798_v52  ;;  %v1799_v28 = vmul.f32 %v4823_v54, %v4823_v54  ;;  %v4833_v11 = vmul.f32 %v4463_v51, %v1768_v21 }
 0x41b   : > { %v1738_v12 = vpop.xlane.xlu0 %1737 }
 0x41c   : > { %v1770_v35 = vsub.f32 %v1706_v37, %v1754_v25  ;;  %v1755_v38 = vmul.f32 0.05, %v1738_v12  ;;  %1825 = vadd.xlane.f32.xlu0 %v1799_v28  ;;  %v1800_v43 = vmul.f32 %v4833_v11, %v4833_v11  ;;  %v4840_v3 = vmul.f32 %v4463_v51, %v1769_v26  ;;  %3587 = vmatpush3.bf16.msra.mxu0 %v3761_v39  ;;  %v4885_v25 = vld [vmem:[%s5539_s6 + $0x5] ss:$0 sm:$0xff] }
 0x41d   : > { %v1740_v57 = vpop.xlane.xlu1 %1739  ;;  %3588 = vmatprep.subr.bf16.mxu0 %v3762_v56 }
 0x41e   : > { %v1771_v42 = vsub.f32 %v1707_v46, %v1755_v38  ;;  %v1756_v40 = vmul.f32 0.05, %v1740_v57  ;;  %1827 = vadd.xlane.f32.xlu1 %v1800_v43  ;;  %v1801_v8 = vmul.f32 %v4840_v3, %v4840_v3  ;;  %v4850_v37 = vmul.f32 %v4463_v51, %v1770_v35 }
 0x420   : > { %v1772_v27 = vsub.f32 %v1708_v63, %v1756_v40  ;;  %1829 = vadd.xlane.f32.xlu0 %v1801_v8  ;;  %v1802_v45 = vmul.f32 %v4850_v37, %v4850_v37  ;;  %v4857_v22 = vmul.f32 %v4463_v51, %v1771_v42  ;;  %3589 = vmatpush3.bf16.msra.mxu0 %v3762_v56  ;;  %v3763_v63 = vld [vmem:[%s5536_s3 + $0x30] sm:$0xff]  }
 0x421   : > { %3590 = vmatprep.subr.bf16.mxu0 %v3763_v63 }
 0x422   : > { %1831 = vadd.xlane.f32.xlu1 %v1802_v45  ;;  %v1803_v46 = vmul.f32 %v4857_v22, %v4857_v22  ;;  %v4865_v6 = vmul.f32 %v4463_v51, %v1772_v27 }
 0x424   : > { %1833 = vadd.xlane.f32.xlu0 %v1803_v46  ;;  %v1804_v17 = vmul.f32 %v4865_v6, %v4865_v6  ;;  %3591 = vmatpush3.bf16.msra.mxu0 %v3763_v63 }
 0x425   : > { %3592 = vmatprep.subr.bf16.mxu0 %v3764_v13 }
 0x426   : > { %1835 = vadd.xlane.f32.xlu1 %v1804_v17 }
 0x428   : > { %3593 = vmatpush3.bf16.msra.mxu0 %v3764_v13 }
 0x490   : > { %v1806_v24 = vpop.xlane.xlu0 %1805 }
 0x491   : > { %v1837_v58 = vmul.f32 0.05, %v1806_v24 }
 0x492   : > { %v1808_v61 = vpop.xlane.xlu1 %1807 }
 0x493   : > { %v1853_v5 = vadd.f32 1e-05, %v1837_v58  ;;  %v1838_v48 = vmul.f32 0.05, %v1808_v61 }
 0x494   : > { %v1810_v60 = vpop.xlane.xlu0 %1809 }
 0x495   : > { %3813 = vrsqrt.f32 %v1853_v5  ;;  %v1854_v1 = vadd.f32 1e-05, %v1838_v48  ;;  %v1839_v33 = vmul.f32 0.05, %v1810_v60 }
 0x496   : > { %v1812_v59 = vpop.xlane.xlu1 %1811 }
 0x497   : > { %3815 = vrsqrt.f32 %v1854_v1  ;;  %v1855_v4 = vadd.f32 1e-05, %v1839_v33  ;;  %v1840_v15 = vmul.f32 0.05, %v1812_v59 }
 0x499   : > { %3817 = vrsqrt.f32 %v1855_v4  ;;  %v1856_v2 = vadd.f32 1e-05, %v1840_v15  ;;  %v1814_v29 = vpop.xlane.xlu0 %1813 }
 0x49a   : > { %v1841_v62 = vmul.f32 0.05, %v1814_v29 }
 0x49b   : > { %3819 = vrsqrt.f32 %v1856_v2  ;;  %v1816_v19 = vpop.xlane.xlu1 %1815 }
 0x49c   : > { %v1857_v20 = vadd.f32 1e-05, %v1841_v62  ;;  %v1842_v34 = vmul.f32 0.05, %v1816_v19 }
 0x49d   : > { %v1818_v50 = vpop.xlane.xlu0 %1817 }
 0x49e   : > { %3821 = vrsqrt.f32 %v1857_v20  ;;  %v1858_v23 = vadd.f32 1e-05, %v1842_v34  ;;  %v1843_v44 = vmul.f32 0.05, %v1818_v50 }
 0x49f   : > { %v3814_v49 = vpop.eup %3813  ;;  %v1820_v9 = vpop.xlane.xlu1 %1819 }
 0x4a0   : > { %3823 = vrsqrt.f32 %v1858_v23  ;;  %v1859_v21 = vadd.f32 1e-05, %v1843_v44  ;;  %v1844_v30 = vmul.f32 0.05, %v1820_v9  ;;  %v1885_v52 = vmul.f32 %v3814_v49, %v4753_v31 }
 0x4a1   : > { %v3816_v10 = vpop.eup %3815 }
 0x4a2   : > { %3825 = vrsqrt.f32 %v1859_v21  ;;  %v1860_v7 = vadd.f32 1e-05, %v1844_v30  ;;  %v1886_v26 = vmul.f32 %v3816_v10, %v4760_v36  ;;  %v1907_v28 = vmul.f32 %v4878_v16, %v1885_v52 }
 0x4a3   : > { %v3818_v12 = vpop.eup %3817 }
 0x4a4   : > { %v1887_v35 = vmul.f32 %v3818_v12, %v4767_v55  ;;  %3827 = vrsqrt.f32 %v1860_v7  ;;  %v1908_v38 = vmul.f32 %v4878_v16, %v1886_v26  ;;  %v1927_v57 = vadd.f32 %v4885_v25, %v1907_v28 }
 0x4a5   : > { %v3820_v43 = vpop.eup %3819  ;;  %v1822_v31 = vpop.xlane.xlu0 %1821 }
 0x4a6   : > { %v1909_v39 = vmul.f32 %v4878_v16, %v1887_v35  ;;  %v1888_v36 = vmul.f32 %v3820_v43, %v4772_v47  ;;  %v1845_v42 = vmul.f32 0.05, %v1822_v31  ;;  %v1928_v40 = vadd.f32 %v4885_v25, %v1908_v38 }
 0x4a7   : > { %v1824_v8 = vpop.xlane.xlu1 %1823 }
 0x4a8   : > { %v3822_v27 = vpop.eup %3821  ;;  %v1910_v45 = vmul.f32 %v4878_v16, %v1888_v36  ;;  %v1861_v56 = vadd.f32 1e-05, %v1845_v42  ;;  %v1846_v55 = vmul.f32 0.05, %v1824_v8  ;;  %v1943_v46 = vpack.c.bf16 %v1928_v40, %v1927_v57 }
 0x4a9   : > { %v1826_v17 = vpop.xlane.xlu0 %1825  ;;  %v1929_v63 = vadd.f32 %v4885_v25, %v1909_v39  ;;  %v1889_v13 = vmul.f32 %v3822_v27, %v4781_v14 }
 0x4aa   : > { %v3824_v24 = vpop.eup %3823  ;;  %3829 = vrsqrt.f32 %v1861_v56  ;;  %v1862_v58 = vadd.f32 1e-05, %v1846_v55  ;;  %3594 = vmatprep.mubr.bf16.mxu0 %v1943_v46  ;;  %v1847_v47 = vmul.f32 0.05, %v1826_v17  ;;  %v1930_v61 = vadd.f32 %v4885_v25, %v1910_v45 }
 0x4ab   : > { %v1828_v5 = vpop.xlane.xlu1 %1827  ;;  %v1890_v48 = vmul.f32 %v3824_v24, %v4788_v0  ;;  %v1911_v60 = vmul.f32 %v4878_v16, %v1889_v13 }
 0x4ac   : > { %v3826_v1 = vpop.eup %3825  ;;  %3831 = vrsqrt.f32 %v1862_v58  ;;  %v1863_v33 = vadd.f32 1e-05, %v1847_v47  ;;  %v1848_v59 = vmul.f32 0.05, %v1828_v5  ;;  %v1944_v4 = vpack.c.bf16 %v1930_v61, %v1929_v63 }
 0x4ad   : > { %v1830_v15 = vpop.xlane.xlu0 %1829  ;;  %v1912_v14 = vmul.f32 %v4878_v16, %v1890_v48  ;;  %v1891_v2 = vmul.f32 %v3826_v1, %v4795_v32  ;;  %v1931_v0 = vadd.f32 %v4885_v25, %v1911_v60 }
 0x4ae   : > { %v3828_v29 = vpop.eup %3827  ;;  %3833 = vrsqrt.f32 %v1863_v33  ;;  %v1864_v62 = vadd.f32 1e-05, %v1848_v59  ;;  %3595 = vmatmul.mubr.bf16.vlgmr.msra.gmra.mrb[56].mxu0 %v1944_v4  ;;  %v1849_v19 = vmul.f32 0.05, %v1830_v15 }
 0x4af   : > { %v1832_v20 = vpop.xlane.xlu1 %1831  ;;  %v1932_v34 = vadd.f32 %v4885_v25, %v1912_v14  ;;  %v1892_v50 = vmul.f32 %v3828_v29, %v4800_v53  ;;  %v1913_v23 = vmul.f32 %v4878_v16, %v1891_v2 }
 0x4b0   : > { %3835 = vrsqrt.f32 %v1864_v62  ;;  %v1865_v44 = vadd.f32 1e-05, %v1849_v19  ;;  %v1850_v49 = vmul.f32 0.05, %v1832_v20 }
 0x4b1   : > { %v1945_v9 = vpack.c.bf16 %v1932_v34, %v1931_v0  ;;  %v1834_v21 = vpop.xlane.xlu0 %1833  ;;  %v1914_v32 = vmul.f32 %v4878_v16, %v1892_v50  ;;  %v1933_v7 = vadd.f32 %v4885_v25, %v1913_v23 }
 0x4b2   : > { %3837 = vrsqrt.f32 %v1865_v44  ;;  %v1866_v30 = vadd.f32 1e-05, %v1850_v49  ;;  %v1851_v52 = vmul.f32 0.05, %v1834_v21 }
 0x4b3   : > { %3598 = vmatprep.mubr.bf16.mxu0 %v1945_v9  ;;  %v1836_v10 = vpop.xlane.xlu1 %1835  ;;  %v1934_v26 = vadd.f32 %v4885_v25, %v1914_v32 }
 0x4b4   : > { %v3830_v28 = vpop.eup %3829  ;;  %3839 = vrsqrt.f32 %v1866_v30  ;;  %v1867_v53 = vadd.f32 1e-05, %v1851_v52  ;;  %v1852_v12 = vmul.f32 0.05, %v1836_v10 }
 0x4b5   : > { %v1946_v35 = vpack.c.bf16 %v1934_v26, %v1933_v7  ;;  %v1893_v38 = vmul.f32 %v3830_v28, %v4809_v41 }
 0x4b6   : > { %v3832_v43 = vpop.eup %3831  ;;  %3841 = vrsqrt.f32 %v1867_v53  ;;  %v1868_v31 = vadd.f32 1e-05, %v1852_v12 }
 0x4b7   : > { %3599 = vmatmul.mubr.bf16.gmra.mrb[60].mxu0 %v1946_v35  ;;  %v1894_v57 = vmul.f32 %v3832_v43, %v4816_v18  ;;  %v1915_v39 = vmul.f32 %v4878_v16, %v1893_v38 }
 0x4b8   : > { %v3834_v36 = vpop.eup %3833  ;;  %3843 = vrsqrt.f32 %v1868_v31 }
 0x4b9   : > { %v1916_v42 = vmul.f32 %v4878_v16, %v1894_v57  ;;  %v1895_v40 = vmul.f32 %v3834_v36, %v4823_v54  ;;  %v1935_v27 = vadd.f32 %v4885_v25, %v1915_v39 }
 0x4ba   : > { %v3836_v8 = vpop.eup %3835 }
 0x4bb   : > { %v1936_v45 = vadd.f32 %v4885_v25, %v1916_v42  ;;  %v1896_v41 = vmul.f32 %v3836_v8, %v4833_v11  ;;  %v1917_v56 = vmul.f32 %v4878_v16, %v1895_v40 }
 0x4bc   : > { %v3838_v55 = vpop.eup %3837 }
 0x4bd   : > { %v1947_v46 = vpack.c.bf16 %v1936_v45, %v1935_v27  ;;  %v1918_v18 = vmul.f32 %v4878_v16, %v1896_v41  ;;  %v1897_v17 = vmul.f32 %v3838_v55, %v4840_v3  ;;  %v1937_v13 = vadd.f32 %v4885_v25, %v1917_v56 }
 0x4be   : > { %v3840_v63 = vpop.eup %3839 }
 0x4bf   : > { %3602 = vmatprep.mubr.bf16.mxu0 %v1947_v46  ;;  %v1938_v54 = vadd.f32 %v4885_v25, %v1918_v18  ;;  %v1898_v24 = vmul.f32 %v3840_v63, %v4850_v37  ;;  %v1919_v58 = vmul.f32 %v4878_v16, %v1897_v17 }
 0x4c0   : > { %v3842_v47 = vpop.eup %3841 }
 0x4c1   : > { %v1948_v11 = vpack.c.bf16 %v1938_v54, %v1937_v13  ;;  %v1920_v61 = vmul.f32 %v4878_v16, %v1898_v24  ;;  %v1899_v5 = vmul.f32 %v3842_v47, %v4857_v22  ;;  %v1939_v3 = vadd.f32 %v4885_v25, %v1919_v58  ;;  %v3214_v22 = vld [vmem:[%s5539_s6 + $0x6] ss:$0 sm:$0xff] }
 0x4c2   : > { %v3844_v48 = vpop.eup %3843  ;;  %v3765_v47 = vld [vmem:[%s5537_s4] sm:$0xff]  }
 0x4c3   : > { %3603 = vmatmul.mubr.bf16.gmra.mrb[64].mxu0 %v1948_v11  ;;  %v1940_v60 = vadd.f32 %v4885_v25, %v1920_v61  ;;  %v1900_v1 = vmul.f32 %v3844_v48, %v4865_v6  ;;  %v1921_v33 = vmul.f32 %v4878_v16, %v1899_v5  ;;  %3610 = vmatprep.subr.bf16.mxu1 %v3765_v47 }
 0x4c4   : > { %3611 = vmatpush3.bf16.msra.mxu1 %v3765_v47 }
 0x4c5   : > { %v1949_v59 = vpack.c.bf16 %v1940_v60, %v1939_v3  ;;  %v1922_v37 = vmul.f32 %v4878_v16, %v1900_v1  ;;  %v1941_v4 = vadd.f32 %v4885_v25, %v1921_v33 }
 0x4c7   : > { %3606 = vmatprep.mubr.bf16.mxu0 %v1949_v59  ;;  %v1942_v15 = vadd.f32 %v4885_v25, %v1922_v37 }
 0x4c9   : > { %v1950_v14 = vpack.c.bf16 %v1942_v15, %v1941_v4 }
 0x4cb   : > { %3607 = vmatmul.mubr.bf16.gmra.mrb[68].mxu0 %v1950_v14 }
 0x581   : > { %v3596_v2 = vpop.f32.mrb[56].mxu0 }
 0x582   : > { %v2054_v29 = vpop.f32.mrb[57].mxu0  ;;  %v4938_v20 = vadd.f32 %v3596_v2, %v3214_v22 }
 0x583   : > { %v4936_v62 = vadd.f32 %v3214_v22, %v2054_v29  ;;  %v3597_v6 = vpop.f32.mrb[58].mxu0 }
 0x584   : > { %v2057_v19 = vpop.f32.mrb[59].mxu0  ;;  %v4943_v34 = vadd.f32 %v3597_v6, %v3214_v22  ;;  %v2119_v50 = vmax.f32 %v4938_v20, 0.0 }
 0x585   : > { %v2117_v16 = vmax.f32 %v4936_v62, 0.0  ;;  %v4941_v0 = vadd.f32 %v3214_v22, %v2057_v19 }
 0x586   : > { %v2120_v44 = vmax.f32 %v4943_v34, 0.0 }
 0x587   : > { %v2118_v25 = vmax.f32 %v4941_v0, 0.0  ;;  %2133 = vadd.xlane.f32.xlu0 %v2117_v16 }
 0x589   : > { %2135 = vadd.xlane.f32.xlu1 %v2118_v25 }
 0x58a   : > { %v3600_v23 = vpop.f32.mrb[60].mxu0 }
 0x58b   : > { %v2070_v49 = vpop.f32.mrb[61].mxu0  ;;  %2137 = vadd.xlane.f32.xlu0 %v2119_v50  ;;  %v4958_v30 = vadd.f32 %v3600_v23, %v3214_v22 }
 0x58c   : > { %v4954_v9 = vadd.f32 %v3214_v22, %v2070_v49  ;;  %v3601_v21 = vpop.f32.mrb[62].mxu0 }
 0x58d   : > { %v2073_v32 = vpop.f32.mrb[63].mxu0  ;;  %2139 = vadd.xlane.f32.xlu1 %v2120_v44  ;;  %v4963_v7 = vadd.f32 %v3601_v21, %v3214_v22  ;;  %v2123_v28 = vmax.f32 %v4958_v30, 0.0 }
 0x58e   : > { %v2121_v52 = vmax.f32 %v4954_v9, 0.0  ;;  %v4961_v10 = vadd.f32 %v3214_v22, %v2073_v32 }
 0x58f   : > { %v2124_v53 = vmax.f32 %v4963_v7, 0.0 }
 0x590   : > { %v2122_v26 = vmax.f32 %v4961_v10, 0.0  ;;  %2141 = vadd.xlane.f32.xlu0 %v2121_v52 }
 0x592   : > { %2143 = vadd.xlane.f32.xlu1 %v2122_v26 }
 0x594   : > { %2145 = vadd.xlane.f32.xlu0 %v2123_v28 }
 0x596   : > { %2147 = vadd.xlane.f32.xlu1 %v2124_v53  ;;  %v3604_v12 = vpop.f32.mrb[64].mxu0 }
 0x597   : > { %v2086_v35 = vpop.f32.mrb[65].mxu0  ;;  %v4978_v57 = vadd.f32 %v3604_v12, %v3214_v22 }
 0x598   : > { %v4976_v38 = vadd.f32 %v3214_v22, %v2086_v35  ;;  %v3605_v43 = vpop.f32.mrb[66].mxu0 }
 0x599   : > { %v2089_v31 = vpop.f32.mrb[67].mxu0  ;;  %v4983_v42 = vadd.f32 %v3605_v43, %v3214_v22  ;;  %v2127_v8 = vmax.f32 %v4978_v57, 0.0 }
 0x59a   : > { %v2125_v39 = vmax.f32 %v4976_v38, 0.0  ;;  %v4981_v36 = vadd.f32 %v3214_v22, %v2089_v31 }
 0x59b   : > { %v2128_v41 = vmax.f32 %v4983_v42, 0.0 }
 0x59c   : > { %v2126_v40 = vmax.f32 %v4981_v36, 0.0  ;;  %2149 = vadd.xlane.f32.xlu0 %v2125_v39 }
 0x59e   : > { %2151 = vadd.xlane.f32.xlu1 %v2126_v40  ;;  %v3608_v27 = vpop.f32.mrb[68].mxu0 }
 0x59f   : > { %v2102_v45 = vpop.f32.mrb[69].mxu0  ;;  %v4996_v18 = vadd.f32 %v3608_v27, %v3214_v22 }
 0x5a0   : > { %v4992_v56 = vadd.f32 %v3214_v22, %v2102_v45  ;;  %2153 = vadd.xlane.f32.xlu0 %v2127_v8  ;;  %v3609_v55 = vpop.f32.mrb[70].mxu0  ;;  %v3766_v45 = vld [vmem:[%s5537_s4 + $0x8] sm:$0xff]  }
 0x5a1   : > { %v2105_v46 = vpop.f32.mrb[71].mxu0  ;;  %v5003_v13 = vadd.f32 %v3609_v55, %v3214_v22  ;;  %v2131_v24 = vmax.f32 %v4996_v18, 0.0  ;;  %3612 = vmatprep.subr.bf16.mxu1 %v3766_v45  ;;  %v3770_v18 = vld [vmem:[%s5537_s4 + $0x28] sm:$0xff]  }
 0x5a2   : > { %v2129_v17 = vmax.f32 %v4992_v56, 0.0  ;;  %v4999_v63 = vadd.f32 %v3214_v22, %v2105_v46  ;;  %2155 = vadd.xlane.f32.xlu1 %v2128_v41  ;;  %3613 = vmatpush3.bf16.msra.mxu1 %v3766_v45 }
 0x5a3   : > { %v2132_v58 = vmax.f32 %v5003_v13, 0.0 }
 0x5a4   : > { %v2130_v54 = vmax.f32 %v4999_v63, 0.0  ;;  %2157 = vadd.xlane.f32.xlu0 %v2129_v17 }
 0x5a6   : > { %2159 = vadd.xlane.f32.xlu1 %v2130_v54 }
 0x5a8   : > { %2161 = vadd.xlane.f32.xlu0 %v2131_v24 }
 0x5aa   : > { %2163 = vadd.xlane.f32.xlu1 %v2132_v58 }
 0x614   : > { %v2134_v11 = vpop.xlane.xlu0 %2133 }
 0x615   : > { %v2165_v61 = vmul.f32 0.05, %v2134_v11 }
 0x616   : > { %v2136_v5 = vpop.xlane.xlu1 %2135 }
 0x617   : > { %v2181_v48 = vsub.f32 %v2117_v16, %v2165_v61  ;;  %v2166_v3 = vmul.f32 0.05, %v2136_v5 }
 0x618   : > { %v2138_v60 = vpop.xlane.xlu0 %2137 }
 0x619   : > { %v2182_v1 = vsub.f32 %v2118_v25, %v2166_v3  ;;  %v2167_v33 = vmul.f32 0.05, %v2138_v60  ;;  %v5024_v59 = vmul.f32 %v4463_v51, %v2181_v48  ;;  %v3767_v3 = vld [vmem:[%s5537_s4 + $0x10] sm:$0xff]  }
 0x61a   : > { %v2140_v37 = vpop.xlane.xlu1 %2139  ;;  %3614 = vmatprep.subr.bf16.mxu1 %v3767_v3 }
 0x61b   : > { %v2183_v4 = vsub.f32 %v2119_v50, %v2167_v33  ;;  %v2168_v15 = vmul.f32 0.05, %v2140_v37  ;;  %v2213_v14 = vmul.f32 %v5024_v59, %v5024_v59  ;;  %v5031_v22 = vmul.f32 %v4463_v51, %v2182_v1  ;;  %3615 = vmatpush3.bf16.msra.mxu1 %v3767_v3 }
 0x61d   : > { %v2184_v2 = vsub.f32 %v2120_v44, %v2168_v15  ;;  %v2142_v29 = vpop.xlane.xlu0 %2141  ;;  %2229 = vadd.xlane.f32.xlu0 %v2213_v14  ;;  %v2214_v62 = vmul.f32 %v5031_v22, %v5031_v22  ;;  %v5038_v6 = vmul.f32 %v4463_v51, %v2183_v4  ;;  %v3768_v4 = vld [vmem:[%s5537_s4 + $0x18] sm:$0xff]  }
 0x61e   : > { %v2169_v19 = vmul.f32 0.05, %v2142_v29  ;;  %3616 = vmatprep.subr.bf16.mxu1 %v3768_v4 }
 0x61f   : > { %v2144_v20 = vpop.xlane.xlu1 %2143  ;;  %2231 = vadd.xlane.f32.xlu1 %v2214_v62  ;;  %v2215_v16 = vmul.f32 %v5038_v6, %v5038_v6  ;;  %v5043_v0 = vmul.f32 %v4463_v51, %v2184_v2  ;;  %3617 = vmatpush3.bf16.msra.mxu1 %v3768_v4 }
 0x620   : > { %v2185_v34 = vsub.f32 %v2121_v52, %v2169_v19  ;;  %v2170_v25 = vmul.f32 0.05, %v2144_v20  ;;  %v3769_v20 = vld [vmem:[%s5537_s4 + $0x20] sm:$0xff]  }
 0x621   : > { %v2146_v50 = vpop.xlane.xlu0 %2145  ;;  %2233 = vadd.xlane.f32.xlu0 %v2215_v16  ;;  %v2216_v23 = vmul.f32 %v5043_v0, %v5043_v0  ;;  %3618 = vmatprep.subr.bf16.mxu1 %v3769_v20 }
 0x622   : > { %v2186_v44 = vsub.f32 %v2122_v26, %v2170_v25  ;;  %v2171_v49 = vmul.f32 0.05, %v2146_v50  ;;  %v5052_v21 = vmul.f32 %v4463_v51, %v2185_v34 }
 0x623   : > { %v2148_v32 = vpop.xlane.xlu1 %2147  ;;  %2235 = vadd.xlane.f32.xlu1 %v2216_v23  ;;  %3619 = vmatpush3.bf16.msra.mxu1 %v3769_v20 }
 0x624   : > { %v2187_v12 = vsub.f32 %v2123_v28, %v2171_v49  ;;  %v2172_v9 = vmul.f32 0.05, %v2148_v32  ;;  %v2217_v52 = vmul.f32 %v5052_v21, %v5052_v21  ;;  %v5059_v35 = vmul.f32 %v4463_v51, %v2186_v44  ;;  %3620 = vmatprep.subr.bf16.mxu1 %v3770_v18  ;;  %v3772_v49 = vld [vmem:[%s5537_s4 + $0x38] sm:$0xff]  }
 0x626   : > { %v2188_v10 = vsub.f32 %v2124_v53, %v2172_v9  ;;  %2237 = vadd.xlane.f32.xlu0 %v2217_v52  ;;  %v2218_v26 = vmul.f32 %v5059_v35, %v5059_v35  ;;  %v5066_v43 = vmul.f32 %v4463_v51, %v2187_v12 }
 0x627   : > { %3621 = vmatpush3.bf16.msra.mxu1 %v3770_v18 }
 0x628   : > { %2239 = vadd.xlane.f32.xlu1 %v2218_v26  ;;  %v2219_v30 = vmul.f32 %v5066_v43, %v5066_v43  ;;  %v5071_v28 = vmul.f32 %v4463_v51, %v2188_v10 }
 0x629   : > { %v2150_v31 = vpop.xlane.xlu0 %2149 }
 0x62a   : > { %2241 = vadd.xlane.f32.xlu0 %v2219_v30  ;;  %v2173_v27 = vmul.f32 0.05, %v2150_v31  ;;  %v2220_v7 = vmul.f32 %v5071_v28, %v5071_v28 }
 0x62b   : > { %v2152_v53 = vpop.xlane.xlu1 %2151 }
 0x62c   : > { %v2189_v55 = vsub.f32 %v2125_v39, %v2173_v27  ;;  %2243 = vadd.xlane.f32.xlu1 %v2220_v7  ;;  %v2174_v46 = vmul.f32 0.05, %v2152_v53 }
 0x62d   : > { %v2154_v47 = vpop.xlane.xlu0 %2153 }
 0x62e   : > { %v2190_v11 = vsub.f32 %v2126_v40, %v2174_v46  ;;  %v2175_v61 = vmul.f32 0.05, %v2154_v47  ;;  %v5083_v5 = vmul.f32 %v4463_v51, %v2189_v55 }
 0x62f   : > { %v2156_v48 = vpop.xlane.xlu1 %2155 }
 0x630   : > { %v2191_v38 = vsub.f32 %v2127_v8, %v2175_v61  ;;  %v2176_v39 = vmul.f32 0.05, %v2156_v48  ;;  %v2221_v60 = vmul.f32 %v5083_v5, %v5083_v5  ;;  %v5093_v36 = vmul.f32 %v4463_v51, %v2190_v11 }
 0x631   : > { %v2158_v40 = vpop.xlane.xlu0 %2157 }
 0x632   : > { %v2192_v1 = vsub.f32 %v2128_v41, %v2176_v39  ;;  %v2177_v33 = vmul.f32 0.05, %v2158_v40  ;;  %2245 = vadd.xlane.f32.xlu0 %v2221_v60  ;;  %v2222_v37 = vmul.f32 %v5093_v36, %v5093_v36  ;;  %v5100_v57 = vmul.f32 %v4463_v51, %v2191_v38  ;;  %v5155_v60 = vld [vmem:[%s5539_s6 + $0x7] ss:$0 sm:$0xff] }
 0x633   : > { %v2160_v8 = vpop.xlane.xlu1 %2159 }
 0x634   : > { %v2193_v15 = vsub.f32 %v2129_v17, %v2177_v33  ;;  %v2178_v14 = vmul.f32 0.05, %v2160_v8  ;;  %2247 = vadd.xlane.f32.xlu1 %v2222_v37  ;;  %v2223_v42 = vmul.f32 %v5100_v57, %v5100_v57  ;;  %v5110_v41 = vmul.f32 %v4463_v51, %v2192_v1 }
 0x635   : > { %v2162_v2 = vpop.xlane.xlu0 %2161 }
 0x636   : > { %v2194_v29 = vsub.f32 %v2130_v54, %v2178_v14  ;;  %v2179_v62 = vmul.f32 0.05, %v2162_v2  ;;  %2249 = vadd.xlane.f32.xlu0 %v2223_v42  ;;  %v2224_v19 = vmul.f32 %v5110_v41, %v5110_v41  ;;  %v5117_v56 = vmul.f32 %v4463_v51, %v2193_v15  ;;  %v5162_v14 = vld [vmem:[%s5539_s6 + $0x8] ss:$0 sm:$0xff] }
 0x637   : > { %v2164_v17 = vpop.xlane.xlu1 %2163 }
 0x638   : > { %v2195_v16 = vsub.f32 %v2131_v24, %v2179_v62  ;;  %v2180_v34 = vmul.f32 0.05, %v2164_v17  ;;  %2251 = vadd.xlane.f32.xlu1 %v2224_v19  ;;  %v2225_v63 = vmul.f32 %v5117_v56, %v5117_v56  ;;  %v5127_v54 = vmul.f32 %v4463_v51, %v2194_v29 }
 0x63a   : > { %v2196_v25 = vsub.f32 %v2132_v58, %v2180_v34  ;;  %2253 = vadd.xlane.f32.xlu0 %v2225_v63  ;;  %v2226_v50 = vmul.f32 %v5127_v54, %v5127_v54  ;;  %v5134_v23 = vmul.f32 %v4463_v51, %v2195_v16  ;;  %v3771_v58 = vld [vmem:[%s5537_s4 + $0x30] sm:$0xff]  }
 0x63b   : > { %3622 = vmatprep.subr.bf16.mxu1 %v3771_v58 }
 0x63c   : > { %2255 = vadd.xlane.f32.xlu1 %v2226_v50  ;;  %v2227_v24 = vmul.f32 %v5134_v23, %v5134_v23  ;;  %v5142_v44 = vmul.f32 %v4463_v51, %v2196_v25  ;;  %3623 = vmatpush3.bf16.msra.mxu1 %v3771_v58 }
 0x63d   : > { %3624 = vmatprep.subr.bf16.mxu1 %v3772_v49 }
 0x63e   : > { %2257 = vadd.xlane.f32.xlu0 %v2227_v24  ;;  %v2228_v13 = vmul.f32 %v5142_v44, %v5142_v44 }
 0x640   : > { %2259 = vadd.xlane.f32.xlu1 %v2228_v13  ;;  %3625 = vmatpush3.bf16.msra.mxu1 %v3772_v49 }
 0x6aa   : > { %v2230_v32 = vpop.xlane.xlu0 %2229 }
 0x6ab   : > { %v2261_v12 = vmul.f32 0.05, %v2230_v32 }
 0x6ac   : > { %v2232_v9 = vpop.xlane.xlu1 %2231 }
 0x6ad   : > { %v2277_v52 = vadd.f32 1e-05, %v2261_v12  ;;  %v2262_v10 = vmul.f32 0.05, %v2232_v9 }
 0x6ae   : > { %v2234_v26 = vpop.xlane.xlu0 %2233 }
 0x6af   : > { %3845 = vrsqrt.f32 %v2277_v52  ;;  %v2278_v30 = vadd.f32 1e-05, %v2262_v10  ;;  %v2263_v31 = vmul.f32 0.05, %v2234_v26 }
 0x6b0   : > { %v2236_v27 = vpop.xlane.xlu1 %2235 }
 0x6b1   : > { %3847 = vrsqrt.f32 %v2278_v30  ;;  %v2279_v7 = vadd.f32 1e-05, %v2263_v31  ;;  %v2264_v53 = vmul.f32 0.05, %v2236_v27 }
 0x6b3   : > { %3849 = vrsqrt.f32 %v2279_v7  ;;  %v2280_v45 = vadd.f32 1e-05, %v2264_v53  ;;  %v2238_v55 = vpop.xlane.xlu0 %2237 }
 0x6b4   : > { %v2265_v46 = vmul.f32 0.05, %v2238_v55 }
 0x6b5   : > { %3851 = vrsqrt.f32 %v2280_v45  ;;  %v2240_v47 = vpop.xlane.xlu1 %2239 }
 0x6b6   : > { %v2281_v11 = vadd.f32 1e-05, %v2265_v46  ;;  %v2266_v61 = vmul.f32 0.05, %v2240_v47 }
 0x6b7   : > { %v2242_v48 = vpop.xlane.xlu0 %2241 }
 0x6b8   : > { %3853 = vrsqrt.f32 %v2281_v11  ;;  %v2282_v3 = vadd.f32 1e-05, %v2266_v61  ;;  %v2267_v38 = vmul.f32 0.05, %v2242_v48 }
 0x6b9   : > { %v3846_v39 = vpop.eup %3845  ;;  %v2244_v40 = vpop.xlane.xlu1 %2243 }
 0x6ba   : > { %3855 = vrsqrt.f32 %v2282_v3  ;;  %v2283_v1 = vadd.f32 1e-05, %v2267_v38  ;;  %v2268_v33 = vmul.f32 0.05, %v2244_v40  ;;  %v2309_v37 = vmul.f32 %v3846_v39, %v5024_v59 }
 0x6bb   : > { %v3848_v8 = vpop.eup %3847 }
 0x6bc   : > { %3857 = vrsqrt.f32 %v2283_v1  ;;  %v2284_v4 = vadd.f32 1e-05, %v2268_v33  ;;  %v2310_v15 = vmul.f32 %v3848_v8, %v5031_v22  ;;  %v2331_v42 = vmul.f32 %v5155_v60, %v2309_v37 }
 0x6bd   : > { %v3850_v2 = vpop.eup %3849 }
 0x6be   : > { %v2311_v29 = vmul.f32 %v3850_v2, %v5038_v6  ;;  %3859 = vrsqrt.f32 %v2284_v4  ;;  %v2332_v62 = vmul.f32 %v5155_v60, %v2310_v15  ;;  %v2351_v17 = vadd.f32 %v5162_v14, %v2331_v42 }
 0x6bf   : > { %v3852_v19 = vpop.eup %3851  ;;  %v2246_v59 = vpop.xlane.xlu0 %2245 }
 0x6c0   : > { %v2333_v20 = vmul.f32 %v5155_v60, %v2311_v29  ;;  %v2312_v22 = vmul.f32 %v3852_v19, %v5043_v0  ;;  %v2269_v16 = vmul.f32 0.05, %v2246_v59  ;;  %v2352_v34 = vadd.f32 %v5162_v14, %v2332_v62 }
 0x6c1   : > { %v2248_v63 = vpop.xlane.xlu1 %2247 }
 0x6c2   : > { %v3854_v25 = vpop.eup %3853  ;;  %v2334_v50 = vmul.f32 %v5155_v60, %v2312_v22  ;;  %v2285_v18 = vadd.f32 1e-05, %v2269_v16  ;;  %v2270_v6 = vmul.f32 0.05, %v2248_v63  ;;  %v2367_v24 = vpack.c.bf16 %v2352_v34, %v2351_v17 }
 0x6c3   : > { %v2250_v13 = vpop.xlane.xlu0 %2249  ;;  %v2353_v58 = vadd.f32 %v5162_v14, %v2333_v20  ;;  %v2313_v49 = vmul.f32 %v3854_v25, %v5052_v21 }
 0x6c4   : > { %v3856_v32 = vpop.eup %3855  ;;  %3861 = vrsqrt.f32 %v2285_v18  ;;  %v2286_v12 = vadd.f32 1e-05, %v2270_v6  ;;  %3626 = vmatprep.mubr.bf16.mxu1 %v2367_v24  ;;  %v2271_v0 = vmul.f32 0.05, %v2250_v13  ;;  %v2354_v9 = vadd.f32 %v5162_v14, %v2334_v50 }
 0x6c5   : > { %v2252_v52 = vpop.xlane.xlu1 %2251  ;;  %v2314_v10 = vmul.f32 %v3856_v32, %v5059_v35  ;;  %v2335_v26 = vmul.f32 %v5155_v60, %v2313_v49 }
 0x6c6   : > { %v3858_v30 = vpop.eup %3857  ;;  %3863 = vrsqrt.f32 %v2286_v12  ;;  %v2287_v31 = vadd.f32 1e-05, %v2271_v0  ;;  %v2272_v27 = vmul.f32 0.05, %v2252_v52  ;;  %v2368_v7 = vpack.c.bf16 %v2354_v9, %v2353_v58 }
 0x6c7   : > { %v2254_v53 = vpop.xlane.xlu0 %2253  ;;  %v2336_v21 = vmul.f32 %v5155_v60, %v2314_v10  ;;  %v2315_v45 = vmul.f32 %v3858_v30, %v5066_v43  ;;  %v2355_v35 = vadd.f32 %v5162_v14, %v2335_v26 }
 0x6c8   : > { %v3860_v55 = vpop.eup %3859  ;;  %3865 = vrsqrt.f32 %v2287_v31  ;;  %v2288_v46 = vadd.f32 1e-05, %v2272_v27  ;;  %3627 = vmatmul.mubr.bf16.vlgmr.msra.gmra.mrb[72].mxu1 %v2368_v7  ;;  %v2273_v47 = vmul.f32 0.05, %v2254_v53 }
 0x6c9   : > { %v2256_v11 = vpop.xlane.xlu1 %2255  ;;  %v2356_v61 = vadd.f32 %v5162_v14, %v2336_v21  ;;  %v2316_v48 = vmul.f32 %v3860_v55, %v5071_v28  ;;  %v2337_v3 = vmul.f32 %v5155_v60, %v2315_v45 }
 0x6ca   : > { %3867 = vrsqrt.f32 %v2288_v46  ;;  %v2289_v38 = vadd.f32 1e-05, %v2273_v47  ;;  %v2274_v39 = vmul.f32 0.05, %v2256_v11 }
 0x6cb   : > { %v2369_v40 = vpack.c.bf16 %v2356_v61, %v2355_v35  ;;  %v2258_v1 = vpop.xlane.xlu0 %2257  ;;  %v2338_v43 = vmul.f32 %v5155_v60, %v2316_v48  ;;  %v2357_v4 = vadd.f32 %v5162_v14, %v2337_v3 }
 0x6cc   : > { %3869 = vrsqrt.f32 %v2289_v38  ;;  %v2290_v33 = vadd.f32 1e-05, %v2274_v39  ;;  %v2275_v37 = vmul.f32 0.05, %v2258_v1 }
 0x6cd   : > { %3630 = vmatprep.mubr.bf16.mxu1 %v2369_v40  ;;  %v2260_v8 = vpop.xlane.xlu1 %2259  ;;  %v2358_v15 = vadd.f32 %v5162_v14, %v2338_v43 }
 0x6ce   : > { %v3862_v42 = vpop.eup %3861  ;;  %3871 = vrsqrt.f32 %v2290_v33  ;;  %v2291_v28 = vadd.f32 1e-05, %v2275_v37  ;;  %v2276_v2 = vmul.f32 0.05, %v2260_v8 }
 0x6cf   : > { %v2370_v29 = vpack.c.bf16 %v2358_v15, %v2357_v4  ;;  %v2317_v62 = vmul.f32 %v3862_v42, %v5083_v5 }
 0x6d0   : > { %v3864_v19 = vpop.eup %3863  ;;  %3873 = vrsqrt.f32 %v2291_v28  ;;  %v2292_v59 = vadd.f32 1e-05, %v2276_v2 }
 0x6d1   : > { %3631 = vmatmul.mubr.bf16.gmra.mrb[76].mxu1 %v2370_v29  ;;  %v2318_v17 = vmul.f32 %v3864_v19, %v5093_v36  ;;  %v2339_v20 = vmul.f32 %v5155_v60, %v2317_v62 }
 0x6d2   : > { %v3866_v22 = vpop.eup %3865  ;;  %3875 = vrsqrt.f32 %v2292_v59 }
 0x6d3   : > { %v2340_v16 = vmul.f32 %v5155_v60, %v2318_v17  ;;  %v2319_v34 = vmul.f32 %v3866_v22, %v5100_v57  ;;  %v2359_v25 = vadd.f32 %v5162_v14, %v2339_v20 }
 0x6d4   : > { %v3868_v63 = vpop.eup %3867 }
 0x6d5   : > { %v2360_v50 = vadd.f32 %v5162_v14, %v2340_v16  ;;  %v2320_v5 = vmul.f32 %v3868_v63, %v5110_v41  ;;  %v2341_v18 = vmul.f32 %v5155_v60, %v2319_v34 }
 0x6d6   : > { %v3870_v6 = vpop.eup %3869 }
 0x6d7   : > { %v2371_v24 = vpack.c.bf16 %v2360_v50, %v2359_v25  ;;  %v2342_v36 = vmul.f32 %v5155_v60, %v2320_v5  ;;  %v2321_v13 = vmul.f32 %v3870_v6, %v5117_v56  ;;  %v2361_v49 = vadd.f32 %v5162_v14, %v2341_v18 }
 0x6d8   : > { %v3872_v58 = vpop.eup %3871 }
 0x6d9   : > { %3634 = vmatprep.mubr.bf16.mxu1 %v2371_v24  ;;  %v2362_v57 = vadd.f32 %v5162_v14, %v2342_v36  ;;  %v2322_v32 = vmul.f32 %v3872_v58, %v5127_v54  ;;  %v2343_v12 = vmul.f32 %v5155_v60, %v2321_v13 }
 0x6da   : > { %v3874_v0 = vpop.eup %3873 }
 0x6db   : > { %v2372_v41 = vpack.c.bf16 %v2362_v57, %v2361_v49  ;;  %v2344_v9 = vmul.f32 %v5155_v60, %v2322_v32  ;;  %v2323_v52 = vmul.f32 %v3874_v0, %v5134_v23  ;;  %v2363_v56 = vadd.f32 %v5162_v14, %v2343_v12  ;;  %v3225_v23 = vld [vmem:[%s5539_s6 + $0x9] ss:$0 sm:$0xff]  ;;  %v3773_v0 = vld [vmem:[%s5538_s5] sm:$0xff]  }
 0x6dc   : > { %v3876_v10 = vpop.eup %3875  ;;  %3642 = vmatprep.subr.bf16.mxu0 %v3773_v0 }
 0x6dd   : > { %3635 = vmatmul.mubr.bf16.gmra.mrb[80].mxu1 %v2372_v41  ;;  %v2364_v26 = vadd.f32 %v5162_v14, %v2344_v9  ;;  %v2324_v30 = vmul.f32 %v3876_v10, %v5142_v44  ;;  %v2345_v31 = vmul.f32 %v5155_v60, %v2323_v52  ;;  %3643 = vmatpush3.bf16.msra.mxu0 %v3773_v0 }
 0x6df   : > { %v2373_v27 = vpack.c.bf16 %v2364_v26, %v2363_v56  ;;  %v2346_v54 = vmul.f32 %v5155_v60, %v2324_v30  ;;  %v2365_v7 = vadd.f32 %v5162_v14, %v2345_v31 }
 0x6e1   : > { %3638 = vmatprep.mubr.bf16.mxu1 %v2373_v27  ;;  %v2366_v53 = vadd.f32 %v5162_v14, %v2346_v54 }
 0x6e3   : > { %v2374_v21 = vpack.c.bf16 %v2366_v53, %v2365_v7 }
 0x6e5   : > { %3639 = vmatmul.mubr.bf16.gmra.mrb[84].mxu1 %v2374_v21 }
 0x79b   : > { %v3628_v45 = vpop.f32.mrb[72].mxu1 }
 0x79c   : > { %v2478_v55 = vpop.f32.mrb[73].mxu1  ;;  %v5215_v11 = vadd.f32 %v3628_v45, %v3225_v23 }
 0x79d   : > { %v5213_v46 = vadd.f32 %v3225_v23, %v2478_v55  ;;  %v3629_v44 = vpop.f32.mrb[74].mxu1 }
 0x79e   : > { %v2481_v47 = vpop.f32.mrb[75].mxu1  ;;  %v5220_v61 = vadd.f32 %v3629_v44, %v3225_v23  ;;  %v2543_v48 = vmax.f32 %v5215_v11, 0.0 }
 0x79f   : > { %v2541_v60 = vmax.f32 %v5213_v46, 0.0  ;;  %v5218_v35 = vadd.f32 %v3225_v23, %v2481_v47 }
 0x7a0   : > { %v2544_v38 = vmax.f32 %v5220_v61, 0.0 }
 0x7a1   : > { %v2542_v14 = vmax.f32 %v5218_v35, 0.0  ;;  %2557 = vadd.xlane.f32.xlu0 %v2541_v60 }
 0x7a3   : > { %2559 = vadd.xlane.f32.xlu1 %v2542_v14 }
 0x7a4   : > { %v3632_v3 = vpop.f32.mrb[76].mxu1 }
 0x7a5   : > { %v2494_v39 = vpop.f32.mrb[77].mxu1  ;;  %2561 = vadd.xlane.f32.xlu0 %v2543_v48  ;;  %v5235_v33 = vadd.f32 %v3632_v3, %v3225_v23 }
 0x7a6   : > { %v5231_v40 = vadd.f32 %v3225_v23, %v2494_v39  ;;  %v3633_v1 = vpop.f32.mrb[78].mxu1 }
 0x7a7   : > { %v2497_v43 = vpop.f32.mrb[79].mxu1  ;;  %2563 = vadd.xlane.f32.xlu1 %v2544_v38  ;;  %v5240_v4 = vadd.f32 %v3633_v1, %v3225_v23  ;;  %v2547_v42 = vmax.f32 %v5235_v33, 0.0 }
 0x7a8   : > { %v2545_v37 = vmax.f32 %v5231_v40, 0.0  ;;  %v5238_v8 = vadd.f32 %v3225_v23, %v2497_v43 }
 0x7a9   : > { %v2548_v28 = vmax.f32 %v5240_v4, 0.0  ;;  %v3774_v4 = vld [vmem:[%s5538_s5 + $0x8] sm:$0xff]  }
 0x7aa   : > { %v2546_v15 = vmax.f32 %v5238_v8, 0.0  ;;  %2565 = vadd.xlane.f32.xlu0 %v2545_v37  ;;  %3644 = vmatprep.subr.bf16.mxu0 %v3774_v4 }
 0x7ab   : > { %3645 = vmatpush3.bf16.msra.mxu0 %v3774_v4 }
 0x7ac   : > { %2567 = vadd.xlane.f32.xlu1 %v2546_v15 }
 0x7ae   : > { %2569 = vadd.xlane.f32.xlu0 %v2547_v42 }
 0x7b0   : > { %2571 = vadd.xlane.f32.xlu1 %v2548_v28  ;;  %v3636_v2 = vpop.f32.mrb[80].mxu1 }
 0x7b1   : > { %v2510_v29 = vpop.f32.mrb[81].mxu1  ;;  %v5255_v17 = vadd.f32 %v3636_v2, %v3225_v23 }
 0x7b2   : > { %v5253_v62 = vadd.f32 %v3225_v23, %v2510_v29  ;;  %v3637_v19 = vpop.f32.mrb[82].mxu1 }
 0x7b3   : > { %v2513_v59 = vpop.f32.mrb[83].mxu1  ;;  %v5260_v16 = vadd.f32 %v3637_v19, %v3225_v23  ;;  %v2551_v63 = vmax.f32 %v5255_v17, 0.0 }
 0x7b4   : > { %v2549_v20 = vmax.f32 %v5253_v62, 0.0  ;;  %v5258_v22 = vadd.f32 %v3225_v23, %v2513_v59 }
 0x7b5   : > { %v2552_v5 = vmax.f32 %v5260_v16, 0.0 }
 0x7b6   : > { %v2550_v34 = vmax.f32 %v5258_v22, 0.0  ;;  %2573 = vadd.xlane.f32.xlu0 %v2549_v20 }
 0x7b8   : > { %2575 = vadd.xlane.f32.xlu1 %v2550_v34  ;;  %v3640_v25 = vpop.f32.mrb[84].mxu1 }
 0x7b9   : > { %v2526_v50 = vpop.f32.mrb[85].mxu1  ;;  %v5273_v36 = vadd.f32 %v3640_v25, %v3225_v23 }
 0x7ba   : > { %v5269_v18 = vadd.f32 %v3225_v23, %v2526_v50  ;;  %2577 = vadd.xlane.f32.xlu0 %v2551_v63  ;;  %v3641_v6 = vpop.f32.mrb[86].mxu1 }
 0x7bb   : > { %v2529_v24 = vpop.f32.mrb[87].mxu1  ;;  %v5280_v49 = vadd.f32 %v3641_v6, %v3225_v23  ;;  %v2555_v32 = vmax.f32 %v5273_v36, 0.0  ;;  %v3778_v36 = vld [vmem:[%s5538_s5 + $0x28] sm:$0xff]  }
 0x7bc   : > { %v2553_v13 = vmax.f32 %v5269_v18, 0.0  ;;  %v5276_v58 = vadd.f32 %v3225_v23, %v2529_v24  ;;  %2579 = vadd.xlane.f32.xlu1 %v2552_v5 }
 0x7bd   : > { %v2556_v12 = vmax.f32 %v5280_v49, 0.0 }
 0x7be   : > { %v2554_v57 = vmax.f32 %v5276_v58, 0.0  ;;  %2581 = vadd.xlane.f32.xlu0 %v2553_v13 }
 0x7c0   : > { %2583 = vadd.xlane.f32.xlu1 %v2554_v57 }
 0x7c2   : > { %2585 = vadd.xlane.f32.xlu0 %v2555_v32 }
 0x7c4   : > { %2587 = vadd.xlane.f32.xlu1 %v2556_v12 }
 0x82e   : > { %v2558_v41 = vpop.xlane.xlu0 %2557 }
 0x82f   : > { %v2589_v9 = vmul.f32 0.05, %v2558_v41 }
 0x830   : > { %v2560_v52 = vpop.xlane.xlu1 %2559 }
 0x831   : > { %v2605_v10 = vsub.f32 %v2541_v60, %v2589_v9  ;;  %v2590_v56 = vmul.f32 0.05, %v2560_v52 }
 0x832   : > { %v2562_v26 = vpop.xlane.xlu0 %2561 }
 0x833   : > { %v5299_v30 = vmul.f32 %v4463_v51, %v2605_v10  ;;  %v2606_v31 = vsub.f32 %v2542_v14, %v2590_v56  ;;  %v2591_v27 = vmul.f32 0.05, %v2562_v26  ;;  %v3775_v56 = vld [vmem:[%s5538_s5 + $0x10] sm:$0xff]  }
 0x834   : > { %v2564_v54 = vpop.xlane.xlu1 %2563  ;;  %3646 = vmatprep.subr.bf16.mxu0 %v3775_v56 }
 0x835   : > { %v5304_v7 = vmul.f32 %v4463_v51, %v2606_v31  ;;  %v2607_v53 = vsub.f32 %v2543_v48, %v2591_v27  ;;  %v2592_v21 = vmul.f32 0.05, %v2564_v54  ;;  %v2637_v23 = vmul.f32 %v5299_v30, %v5299_v30  ;;  %3647 = vmatpush3.bf16.msra.mxu0 %v3775_v56 }
 0x837   : > { %v5311_v45 = vmul.f32 %v4463_v51, %v2607_v53  ;;  %v2608_v55 = vsub.f32 %v2544_v38, %v2592_v21  ;;  %v2566_v46 = vpop.xlane.xlu0 %2565  ;;  %2653 = vadd.xlane.f32.xlu0 %v2637_v23  ;;  %v2638_v44 = vmul.f32 %v5304_v7, %v5304_v7 }
 0x838   : > { %v2593_v47 = vmul.f32 0.05, %v2566_v46 }
 0x839   : > { %v5318_v60 = vmul.f32 %v4463_v51, %v2608_v55  ;;  %v2568_v11 = vpop.xlane.xlu1 %2567  ;;  %2655 = vadd.xlane.f32.xlu1 %v2638_v44  ;;  %v2639_v35 = vmul.f32 %v5311_v45, %v5311_v45 }
 0x83a   : > { %v2609_v14 = vsub.f32 %v2545_v37, %v2593_v47  ;;  %v2594_v48 = vmul.f32 0.05, %v2568_v11 }
 0x83b   : > { %v2570_v61 = vpop.xlane.xlu0 %2569  ;;  %2657 = vadd.xlane.f32.xlu0 %v2639_v35  ;;  %v2640_v3 = vmul.f32 %v5318_v60, %v5318_v60 }
 0x83c   : > { %v5327_v38 = vmul.f32 %v4463_v51, %v2609_v14  ;;  %v2610_v39 = vsub.f32 %v2546_v15, %v2594_v48  ;;  %v2595_v1 = vmul.f32 0.05, %v2570_v61 }
 0x83d   : > { %v2572_v43 = vpop.xlane.xlu1 %2571  ;;  %2659 = vadd.xlane.f32.xlu1 %v2640_v3 }
 0x83e   : > { %v5332_v2 = vmul.f32 %v4463_v51, %v2610_v39  ;;  %v2611_v40 = vsub.f32 %v2547_v42, %v2595_v1  ;;  %v2596_v37 = vmul.f32 0.05, %v2572_v43  ;;  %v2641_v29 = vmul.f32 %v5327_v38, %v5327_v38 }
 0x840   : > { %v5339_v19 = vmul.f32 %v4463_v51, %v2611_v40  ;;  %v2612_v8 = vsub.f32 %v2548_v28, %v2596_v37  ;;  %2661 = vadd.xlane.f32.xlu0 %v2641_v29  ;;  %v2642_v15 = vmul.f32 %v5332_v2, %v5332_v2 }
 0x842   : > { %v5346_v59 = vmul.f32 %v4463_v51, %v2612_v8  ;;  %2663 = vadd.xlane.f32.xlu1 %v2642_v15  ;;  %v2643_v33 = vmul.f32 %v5339_v19, %v5339_v19 }
 0x843   : > { %v2574_v42 = vpop.xlane.xlu0 %2573 }
 0x844   : > { %2665 = vadd.xlane.f32.xlu0 %v2643_v33  ;;  %v2597_v25 = vmul.f32 0.05, %v2574_v42  ;;  %v2644_v50 = vmul.f32 %v5346_v59, %v5346_v59 }
 0x845   : > { %v2576_v6 = vpop.xlane.xlu1 %2575 }
 0x846   : > { %v2613_v28 = vsub.f32 %v2549_v20, %v2597_v25  ;;  %2667 = vadd.xlane.f32.xlu1 %v2644_v50  ;;  %v2598_v24 = vmul.f32 0.05, %v2576_v6 }
 0x847   : > { %v2578_v0 = vpop.xlane.xlu0 %2577 }
 0x848   : > { %v5358_v41 = vmul.f32 %v4463_v51, %v2613_v28  ;;  %v2614_v9 = vsub.f32 %v2550_v34, %v2598_v24  ;;  %v2599_v52 = vmul.f32 0.05, %v2578_v0 }
 0x849   : > { %v2580_v10 = vpop.xlane.xlu1 %2579 }
 0x84a   : > { %v5366_v62 = vmul.f32 %v4463_v51, %v2614_v9  ;;  %v2615_v20 = vsub.f32 %v2551_v63, %v2599_v52  ;;  %v2600_v26 = vmul.f32 0.05, %v2580_v10  ;;  %v2645_v31 = vmul.f32 %v5358_v41, %v5358_v41  ;;  %v3776_v63 = vld [vmem:[%s5538_s5 + $0x18] sm:$0xff]  }
 0x84b   : > { %v2582_v27 = vpop.xlane.xlu0 %2581  ;;  %3648 = vmatprep.subr.bf16.mxu0 %v3776_v63 }
 0x84c   : > { %v5373_v22 = vmul.f32 %v4463_v51, %v2615_v20  ;;  %v2616_v34 = vsub.f32 %v2552_v5, %v2600_v26  ;;  %v2601_v54 = vmul.f32 0.05, %v2582_v27  ;;  %2669 = vadd.xlane.f32.xlu0 %v2645_v31  ;;  %v2646_v53 = vmul.f32 %v5366_v62, %v5366_v62  ;;  %3649 = vmatpush3.bf16.msra.mxu0 %v3776_v63  ;;  %v5432_v26 = vld [vmem:[%s5539_s6 + $0xa] ss:$0 sm:$0xff] }
 0x84d   : > { %v2584_v17 = vpop.xlane.xlu1 %2583 }
 0x84e   : > { %v5383_v21 = vmul.f32 %v4463_v51, %v2616_v34  ;;  %v2617_v23 = vsub.f32 %v2553_v13, %v2601_v54  ;;  %v2602_v55 = vmul.f32 0.05, %v2584_v17  ;;  %2671 = vadd.xlane.f32.xlu1 %v2646_v53  ;;  %v2647_v16 = vmul.f32 %v5373_v22, %v5373_v22  ;;  %v3777_v13 = vld [vmem:[%s5538_s5 + $0x20] sm:$0xff]  }
 0x84f   : > { %v2586_v5 = vpop.xlane.xlu0 %2585  ;;  %3650 = vmatprep.subr.bf16.mxu0 %v3777_v13 }
 0x850   : > { %v5390_v46 = vmul.f32 %v4463_v51, %v2617_v23  ;;  %v2618_v44 = vsub.f32 %v2554_v57, %v2602_v55  ;;  %v2603_v47 = vmul.f32 0.05, %v2586_v5  ;;  %2673 = vadd.xlane.f32.xlu0 %v2647_v16  ;;  %v2648_v11 = vmul.f32 %v5383_v21, %v5383_v21  ;;  %3651 = vmatpush3.bf16.msra.mxu0 %v3777_v13  ;;  %v5439_v23 = vld [vmem:[%s5539_s6 + $0xb] ss:$0 sm:$0xff] }
 0x851   : > { %v2588_v18 = vpop.xlane.xlu1 %2587  ;;  %3652 = vmatprep.subr.bf16.mxu0 %v3778_v36 }
 0x852   : > { %v5400_v35 = vmul.f32 %v4463_v51, %v2618_v44  ;;  %v2619_v14 = vsub.f32 %v2555_v32, %v2603_v47  ;;  %v2604_v48 = vmul.f32 0.05, %v2588_v18  ;;  %2675 = vadd.xlane.f32.xlu1 %v2648_v11  ;;  %v2649_v58 = vmul.f32 %v5390_v46, %v5390_v46 }
 0x854   : > { %v5407_v57 = vmul.f32 %v4463_v51, %v2619_v14  ;;  %v2620_v61 = vsub.f32 %v2556_v12, %v2604_v48  ;;  %2677 = vadd.xlane.f32.xlu0 %v2649_v58  ;;  %v2650_v3 = vmul.f32 %v5400_v35, %v5400_v35  ;;  %3653 = vmatpush3.bf16.msra.mxu0 %v3778_v36  ;;  %v3779_v12 = vld [vmem:[%s5538_s5 + $0x30] sm:$0xff]  }
 0x855   : > { %3654 = vmatprep.subr.bf16.mxu0 %v3779_v12 }
 0x856   : > { %v5417_v32 = vmul.f32 %v4463_v51, %v2620_v61  ;;  %2679 = vadd.xlane.f32.xlu1 %v2650_v3  ;;  %v2651_v39 = vmul.f32 %v5407_v57, %v5407_v57  ;;  %v3780_v51 = vld [vmem:[%s5538_s5 + $0x38] sm:$0xff]  }
 0x858   : > { %2681 = vadd.xlane.f32.xlu0 %v2651_v39  ;;  %v2652_v49 = vmul.f32 %v5417_v32, %v5417_v32  ;;  %3655 = vmatpush3.bf16.msra.mxu0 %v3779_v12 }
 0x859   : > { %3656 = vmatprep.subr.bf16.mxu0 %v3780_v51 }
 0x85a   : > { %2683 = vadd.xlane.f32.xlu1 %v2652_v49 }
 0x85c   : > { %3657 = vmatpush3.bf16.msra.mxu0 %v3780_v51 }
 0x8c4   : > { %v2654_v1 = vpop.xlane.xlu0 %2653 }
 0x8c5   : > { %v2685_v43 = vmul.f32 0.05, %v2654_v1 }
 0x8c6   : > { %v2656_v40 = vpop.xlane.xlu1 %2655 }
 0x8c7   : > { %v2701_v37 = vadd.f32 1e-05, %v2685_v43  ;;  %v2686_v29 = vmul.f32 0.05, %v2656_v40 }
 0x8c8   : > { %v2658_v8 = vpop.xlane.xlu0 %2657 }
 0x8c9   : > { %3877 = vrsqrt.f32 %v2701_v37  ;;  %v2702_v15 = vadd.f32 1e-05, %v2686_v29  ;;  %v2687_v33 = vmul.f32 0.05, %v2658_v8 }
 0x8ca   : > { %v2660_v42 = vpop.xlane.xlu1 %2659 }
 0x8cb   : > { %3879 = vrsqrt.f32 %v2702_v15  ;;  %v2703_v25 = vadd.f32 1e-05, %v2687_v33  ;;  %v2688_v50 = vmul.f32 0.05, %v2660_v42 }
 0x8cd   : > { %3881 = vrsqrt.f32 %v2703_v25  ;;  %v2704_v6 = vadd.f32 1e-05, %v2688_v50  ;;  %v2662_v4 = vpop.xlane.xlu0 %2661 }
 0x8ce   : > { %v2689_v28 = vmul.f32 0.05, %v2662_v4 }
 0x8cf   : > { %3883 = vrsqrt.f32 %v2704_v6  ;;  %v2664_v24 = vpop.xlane.xlu1 %2663 }
 0x8d0   : > { %v2705_v0 = vadd.f32 1e-05, %v2689_v28  ;;  %v2690_v9 = vmul.f32 0.05, %v2664_v24 }
 0x8d1   : > { %v2666_v52 = vpop.xlane.xlu0 %2665 }
 0x8d2   : > { %3885 = vrsqrt.f32 %v2705_v0  ;;  %v2706_v10 = vadd.f32 1e-05, %v2690_v9  ;;  %v2691_v56 = vmul.f32 0.05, %v2666_v52 }
 0x8d3   : > { %v3878_v20 = vpop.eup %3877  ;;  %v2668_v31 = vpop.xlane.xlu1 %2667 }
 0x8d4   : > { %3887 = vrsqrt.f32 %v2706_v10  ;;  %v2707_v27 = vadd.f32 1e-05, %v2691_v56  ;;  %v2692_v34 = vmul.f32 0.05, %v2668_v31  ;;  %v2733_v54 = vmul.f32 %v3878_v20, %v5299_v30 }
 0x8d5   : > { %v3880_v53 = vpop.eup %3879 }
 0x8d6   : > { %3889 = vrsqrt.f32 %v2707_v27  ;;  %v2708_v17 = vadd.f32 1e-05, %v2692_v34  ;;  %v2734_v63 = vmul.f32 %v3880_v53, %v5304_v7  ;;  %v2755_v55 = vmul.f32 %v5432_v26, %v2733_v54 }
 0x8d7   : > { %v3882_v16 = vpop.eup %3881 }
 0x8d8   : > { %v2735_v5 = vmul.f32 %v3882_v16, %v5311_v45  ;;  %3891 = vrsqrt.f32 %v2708_v17  ;;  %v2756_v44 = vmul.f32 %v5432_v26, %v2734_v63  ;;  %v2775_v11 = vadd.f32 %v5439_v23, %v2755_v55 }
 0x8d9   : > { %v3884_v47 = vpop.eup %3883  ;;  %v2670_v30 = vpop.xlane.xlu0 %2669 }
 0x8da   : > { %v2757_v18 = vmul.f32 %v5432_v26, %v2735_v5  ;;  %v2736_v7 = vmul.f32 %v3884_v47, %v5318_v60  ;;  %v2693_v13 = vmul.f32 0.05, %v2670_v30  ;;  %v2776_v14 = vadd.f32 %v5439_v23, %v2756_v44 }
 0x8db   : > { %v2672_v48 = vpop.xlane.xlu1 %2671 }
 0x8dc   : > { %v3886_v58 = vpop.eup %3885  ;;  %v2758_v61 = vmul.f32 %v5432_v26, %v2736_v7  ;;  %v2709_v3 = vadd.f32 1e-05, %v2693_v13  ;;  %v2694_v45 = vmul.f32 0.05, %v2672_v48  ;;  %v2791_v36 = vpack.c.bf16 %v2776_v14, %v2775_v11 }
 0x8dd   : > { %v2674_v39 = vpop.xlane.xlu0 %2673  ;;  %v2777_v49 = vadd.f32 %v5439_v23, %v2757_v18  ;;  %v2737_v12 = vmul.f32 %v3886_v58, %v5327_v38 }
 0x8de   : > { %v3888_v51 = vpop.eup %3887  ;;  %3893 = vrsqrt.f32 %v2709_v3  ;;  %v2710_v1 = vadd.f32 1e-05, %v2694_v45  ;;  %3658 = vmatprep.mubr.bf16.mxu0 %v2791_v36  ;;  %v2695_v60 = vmul.f32 0.05, %v2674_v39  ;;  %v2778_v43 = vadd.f32 %v5439_v23, %v2758_v61 }
 0x8df   : > { %v2676_v40 = vpop.xlane.xlu1 %2675  ;;  %v2738_v37 = vmul.f32 %v3888_v51, %v5332_v2  ;;  %v2759_v29 = vmul.f32 %v5432_v26, %v2737_v12 }
 0x8e0   : > { %v3890_v8 = vpop.eup %3889  ;;  %3895 = vrsqrt.f32 %v2710_v1  ;;  %v2711_v15 = vadd.f32 1e-05, %v2695_v60  ;;  %v2696_v33 = vmul.f32 0.05, %v2676_v40  ;;  %v2792_v42 = vpack.c.bf16 %v2778_v43, %v2777_v49 }
 0x8e1   : > { %v2678_v25 = vpop.xlane.xlu0 %2677  ;;  %v2760_v38 = vmul.f32 %v5432_v26, %v2738_v37  ;;  %v2739_v50 = vmul.f32 %v3890_v8, %v5339_v19  ;;  %v2779_v2 = vadd.f32 %v5439_v23, %v2759_v29 }
 0x8e2   : > { %v3892_v6 = vpop.eup %3891  ;;  %3897 = vrsqrt.f32 %v2711_v15  ;;  %v2712_v4 = vadd.f32 1e-05, %v2696_v33  ;;  %3659 = vmatmul.mubr.bf16.vlgmr.msra.gmra.mrb[72].mxu0 %v2792_v42  ;;  %v2697_v28 = vmul.f32 0.05, %v2678_v25 }
 0x8e3   : > { %v2680_v24 = vpop.xlane.xlu1 %2679  ;;  %v2780_v0 = vadd.f32 %v5439_v23, %v2760_v38  ;;  %v2740_v9 = vmul.f32 %v3892_v6, %v5346_v59  ;;  %v2761_v52 = vmul.f32 %v5432_v26, %v2739_v50 }
 0x8e4   : > { %3899 = vrsqrt.f32 %v2712_v4  ;;  %v2713_v10 = vadd.f32 1e-05, %v2697_v28  ;;  %v2698_v56 = vmul.f32 0.05, %v2680_v24 }
 0x8e5   : > { %v2793_v20 = vpack.c.bf16 %v2780_v0, %v2779_v2  ;;  %v2682_v31 = vpop.xlane.xlu0 %2681  ;;  %v2762_v19 = vmul.f32 %v5432_v26, %v2740_v9  ;;  %v2781_v53 = vadd.f32 %v5439_v23, %v2761_v52 }
 0x8e6   : > { %3901 = vrsqrt.f32 %v2713_v10  ;;  %v2714_v27 = vadd.f32 1e-05, %v2698_v56  ;;  %v2699_v34 = vmul.f32 0.05, %v2682_v31 }
 0x8e7   : > { %3662 = vmatprep.mubr.bf16.mxu0 %v2793_v20  ;;  %v2684_v54 = vpop.xlane.xlu1 %2683  ;;  %v2782_v17 = vadd.f32 %v5439_v23, %v2762_v19 }
 0x8e8   : > { %v3894_v63 = vpop.eup %3893  ;;  %3903 = vrsqrt.f32 %v2714_v27  ;;  %v2715_v59 = vadd.f32 1e-05, %v2699_v34  ;;  %v2700_v55 = vmul.f32 0.05, %v2684_v54 }
 0x8e9   : > { %v2794_v16 = vpack.c.bf16 %v2782_v17, %v2781_v53  ;;  %v2741_v5 = vmul.f32 %v3894_v63, %v5358_v41 }
 0x8ea   : > { %v3896_v44 = vpop.eup %3895  ;;  %3905 = vrsqrt.f32 %v2715_v59  ;;  %v2716_v47 = vadd.f32 1e-05, %v2700_v55 }
 0x8eb   : > { %3663 = vmatmul.mubr.bf16.gmra.mrb[76].mxu0 %v2794_v16  ;;  %v2742_v30 = vmul.f32 %v3896_v44, %v5366_v62  ;;  %v2763_v11 = vmul.f32 %v5432_v26, %v2741_v5 }
 0x8ec   : > { %v3898_v18 = vpop.eup %3897  ;;  %3907 = vrsqrt.f32 %v2716_v47 }
 0x8ed   : > { %v2764_v7 = vmul.f32 %v5432_v26, %v2742_v30  ;;  %v2743_v13 = vmul.f32 %v3898_v18, %v5373_v22  ;;  %v2783_v48 = vadd.f32 %v5439_v23, %v2763_v11 }
 0x8ee   : > { %v3900_v14 = vpop.eup %3899 }
 0x8ef   : > { %v2784_v58 = vadd.f32 %v5439_v23, %v2764_v7  ;;  %v2744_v41 = vmul.f32 %v3900_v14, %v5383_v21  ;;  %v2765_v61 = vmul.f32 %v5432_v26, %v2743_v13 }
 0x8f0   : > { %v3902_v3 = vpop.eup %3901 }
 0x8f1   : > { %v2795_v45 = vpack.c.bf16 %v2784_v58, %v2783_v48  ;;  %v2766_v62 = vmul.f32 %v5432_v26, %v2744_v41  ;;  %v2745_v36 = vmul.f32 %v3902_v3, %v5390_v46  ;;  %v2785_v49 = vadd.f32 %v5439_v23, %v2765_v61 }
 0x8f2   : > { %v3904_v39 = vpop.eup %3903 }
 0x8f3   : > { %3666 = vmatprep.mubr.bf16.mxu0 %v2795_v45  ;;  %v2786_v22 = vadd.f32 %v5439_v23, %v2766_v62  ;;  %v2746_v12 = vmul.f32 %v3904_v39, %v5400_v35  ;;  %v2767_v51 = vmul.f32 %v5432_v26, %v2745_v36 }
 0x8f4   : > { %v3906_v1 = vpop.eup %3905 }
 0x8f5   : > { %v2796_v21 = vpack.c.bf16 %v2786_v22, %v2785_v49  ;;  %v2768_v60 = vmul.f32 %v5432_v26, %v2746_v12  ;;  %v2747_v43 = vmul.f32 %v3906_v1, %v5407_v57  ;;  %v2787_v46 = vadd.f32 %v5439_v23, %v2767_v51  ;;  %v5490_v57 = vld [vmem:[%s5539_s6 + $0xc] ss:$0 sm:$0xff] }
 0x8f6   : > { %v3908_v40 = vpop.eup %3907 }
 0x8f7   : > { %3667 = vmatmul.mubr.bf16.gmra.mrb[80].mxu0 %v2796_v21  ;;  %v2788_v37 = vadd.f32 %v5439_v23, %v2768_v60  ;;  %v2748_v29 = vmul.f32 %v3908_v40, %v5417_v32  ;;  %v2769_v8 = vmul.f32 %v5432_v26, %v2747_v43 }
 0x8f9   : > { %v2797_v15 = vpack.c.bf16 %v2788_v37, %v2787_v46  ;;  %v2770_v35 = vmul.f32 %v5432_v26, %v2748_v29  ;;  %v2789_v33 = vadd.f32 %v5439_v23, %v2769_v8 }
 0x8fb   : > { %3670 = vmatprep.mubr.bf16.mxu0 %v2797_v15  ;;  %v2790_v42 = vadd.f32 %v5439_v23, %v2770_v35 }
 0x8fd   : > { %v2798_v25 = vpack.c.bf16 %v2790_v42, %v2789_v33 }
 0x8ff   : > { %3671 = vmatmul.mubr.bf16.gmra.mrb[84].mxu0 %v2798_v25 }
 0x9b5   : > { %v3660_v38 = vpop.f32.mrb[72].mxu0 }
 0x9b6   : > { %v2911_v32 = vadd.f32 %v3660_v38, %v5490_v57  ;;  %v2902_v50 = vpop.f32.mrb[73].mxu0 }
 0x9b7   : > { %v2903_v6 = vadd.f32 %v5490_v57, %v2902_v50  ;;  %v3661_v4 = vpop.f32.mrb[74].mxu0 }
 0x9b8   : > { %v3247_v26 = vmul.f32 -1.442695, %v2911_v32  ;;  %v2914_v28 = vadd.f32 %v3661_v4, %v5490_v57  ;;  %v2905_v24 = vpop.f32.mrb[75].mxu0 }
 0x9b9   : > { %v3245_v2 = vmul.f32 -1.442695, %v2903_v6  ;;  %v2906_v23 = vadd.f32 %v5490_v57, %v2905_v24 }
 0x9ba   : > { %3909 = vpow2.f32 %v3247_v26  ;;  %v3248_v0 = vmul.f32 -1.442695, %v2914_v28 }
 0x9bb   : > { %3911 = vpow2.f32 %v3245_v2  ;;  %v3246_v9 = vmul.f32 -1.442695, %v2906_v23 }
 0x9bc   : > { %3913 = vpow2.f32 %v3248_v0 }
 0x9bd   : > { %3915 = vpow2.f32 %v3246_v9 }
 0x9be   : > { %v3664_v52 = vpop.f32.mrb[76].mxu0 }
 0x9bf   : > { %v2927_v10 = vadd.f32 %v3664_v52, %v5490_v57  ;;  %v2918_v56 = vpop.f32.mrb[77].mxu0 }
 0x9c0   : > { %v2919_v20 = vadd.f32 %v5490_v57, %v2918_v56  ;;  %v3665_v31 = vpop.f32.mrb[78].mxu0 }
 0x9c1   : > { %v3251_v19 = vmul.f32 -1.442695, %v2927_v10  ;;  %v2930_v27 = vadd.f32 %v3665_v31, %v5490_v57  ;;  %v2921_v34 = vpop.f32.mrb[79].mxu0 }
 0x9c2   : > { %v3249_v54 = vmul.f32 -1.442695, %v2919_v20  ;;  %v2922_v53 = vadd.f32 %v5490_v57, %v2921_v34 }
 0x9c3   : > { %3917 = vpow2.f32 %v3251_v19  ;;  %v3252_v17 = vmul.f32 -1.442695, %v2930_v27 }
 0x9c4   : > { %v3910_v63 = vpop.eup %3909  ;;  %3919 = vpow2.f32 %v3249_v54  ;;  %v3250_v59 = vmul.f32 -1.442695, %v2922_v53 }
 0x9c5   : > { %v3912_v55 = vpop.eup %3911  ;;  %v3015_v16 = vadd.f32 1.0, %v3910_v63  ;;  %3921 = vpow2.f32 %v3252_v17 }
 0x9c6   : > { %v3914_v5 = vpop.eup %3913  ;;  %v3013_v44 = vadd.f32 1.0, %v3912_v55  ;;  %3923 = vpow2.f32 %v3250_v59 }
 0x9c7   : > { %v3916_v47 = vpop.eup %3915  ;;  %3925 = vrcp.f32 %v3015_v16  ;;  %v3016_v30 = vadd.f32 1.0, %v3914_v5 }
 0x9c8   : > { %3927 = vrcp.f32 %v3013_v44  ;;  %v3014_v11 = vadd.f32 1.0, %v3916_v47 }
 0x9c9   : > { %3929 = vrcp.f32 %v3016_v30 }
 0x9ca   : > { %3931 = vrcp.f32 %v3014_v11  ;;  %v3668_v18 = vpop.f32.mrb[80].mxu0 }
 0x9cb   : > { %v2943_v7 = vadd.f32 %v3668_v18, %v5490_v57  ;;  %v2934_v13 = vpop.f32.mrb[81].mxu0 }
 0x9cc   : > { %v2935_v14 = vadd.f32 %v5490_v57, %v2934_v13  ;;  %v3669_v48 = vpop.f32.mrb[82].mxu0 }
 0x9cd   : > { %v3918_v58 = vpop.eup %3917  ;;  %v3255_v41 = vmul.f32 -1.442695, %v2943_v7  ;;  %v2946_v61 = vadd.f32 %v3669_v48, %v5490_v57  ;;  %v2937_v3 = vpop.f32.mrb[83].mxu0 }
 0x9ce   : > { %v3920_v45 = vpop.eup %3919  ;;  %v3019_v62 = vadd.f32 1.0, %v3918_v58  ;;  %v2938_v36 = vadd.f32 %v5490_v57, %v2937_v3  ;;  %v3253_v51 = vmul.f32 -1.442695, %v2935_v14 }
 0x9cf   : > { %v3922_v39 = vpop.eup %3921  ;;  %v3017_v49 = vadd.f32 1.0, %v3920_v45  ;;  %3933 = vpow2.f32 %v3255_v41  ;;  %v3256_v60 = vmul.f32 -1.442695, %v2946_v61 }
 0x9d0   : > { %v3924_v22 = vpop.eup %3923  ;;  %3935 = vrcp.f32 %v3019_v62  ;;  %v3020_v12 = vadd.f32 1.0, %v3922_v39  ;;  %v3254_v40 = vmul.f32 -1.442695, %v2938_v36 }
 0x9d1   : > { %v3926_v1 = vpop.eup %3925  ;;  %3937 = vrcp.f32 %v3017_v49  ;;  %v3018_v21 = vadd.f32 1.0, %v3924_v22 }
 0x9d2   : > { %v3928_v43 = vpop.eup %3927  ;;  %3063 = vst [vmem:[%s5508_s10 + $0x10] sm:$0xff] %v3926_v1  ;;  %3939 = vrcp.f32 %v3020_v12  ;;  %v3672_v46 = vpop.f32.mrb[84].mxu0 }
 0x9d3   : > { %v3930_v37 = vpop.eup %3929  ;;  %3061 = vst [vmem:[%s5508_s10] sm:$0xff] %v3928_v43  ;;  %3941 = vrcp.f32 %v3018_v21  ;;  %v2959_v29 = vadd.f32 %v3672_v46, %v5490_v57  ;;  %v2950_v8 = vpop.f32.mrb[85].mxu0 }
 0x9d4   : > { %v3932_v15 = vpop.eup %3931  ;;  %3064 = vst [vmem:[%s5508_s10 + $0x18] sm:$0xff] %v3930_v37  ;;  %3943 = vpow2.f32 %v3253_v51  ;;  %v2951_v35 = vadd.f32 %v5490_v57, %v2950_v8  ;;  %v3673_v33 = vpop.f32.mrb[86].mxu0 }
 0x9d5   : > { %3062 = vst [vmem:[%s5508_s10 + $0x8] sm:$0xff] %v3932_v15  ;;  %3945 = vpow2.f32 %v3256_v60  ;;  %v3259_v42 = vmul.f32 -1.442695, %v2959_v29  ;;  %v2962_v25 = vadd.f32 %v3673_v33, %v5490_v57  ;;  %v2953_v38 = vpop.f32.mrb[87].mxu0 }
 0x9d6   : > { %3947 = vpow2.f32 %v3254_v40  ;;  %v3257_v32 = vmul.f32 -1.442695, %v2951_v35  ;;  %v2954_v50 = vadd.f32 %v5490_v57, %v2953_v38 }
 0x9d7   : > { %3949 = vpow2.f32 %v3259_v42  ;;  %v3260_v6 = vmul.f32 -1.442695, %v2962_v25 }
 0x9d8   : > { %3951 = vpow2.f32 %v3257_v32  ;;  %v3258_v4 = vmul.f32 -1.442695, %v2954_v50 }
 0x9d9   : > { %v3934_v26 = vpop.eup %3933  ;;  %3953 = vpow2.f32 %v3260_v6 }
 0x9da   : > { %v3936_v28 = vpop.eup %3935  ;;  %v3023_v24 = vadd.f32 1.0, %v3934_v26  ;;  %3955 = vpow2.f32 %v3258_v4 }
 0x9db   : > { %v3938_v2 = vpop.eup %3937  ;;  %3067 = vst [vmem:[%s5508_s10 + $0x30] sm:$0xff] %v3936_v28 }
 0x9dc   : > { %v3940_v23 = vpop.eup %3939  ;;  %3065 = vst [vmem:[%s5508_s10 + $0x20] sm:$0xff] %v3938_v2  ;;  %3957 = vrcp.f32 %v3023_v24 }
 0x9dd   : > { %v3942_v0 = vpop.eup %3941  ;;  %3068 = vst [vmem:[%s5508_s10 + $0x38] sm:$0xff] %v3940_v23 }
 0x9de   : > { %v3944_v9 = vpop.eup %3943  ;;  %3066 = vst [vmem:[%s5508_s10 + $0x28] sm:$0xff] %v3942_v0 }
 0x9df   : > { %v3946_v57 = vpop.eup %3945  ;;  %v3021_v52 = vadd.f32 1.0, %v3944_v9 }
 0x9e0   : > { %v3948_v10 = vpop.eup %3947  ;;  %v3024_v56 = vadd.f32 1.0, %v3946_v57 }
 0x9e1   : > { %v3950_v20 = vpop.eup %3949  ;;  %3959 = vrcp.f32 %v3021_v52  ;;  %v3022_v31 = vadd.f32 1.0, %v3948_v10 }
 0x9e2   : > { %v3952_v19 = vpop.eup %3951  ;;  %3961 = vrcp.f32 %v3024_v56  ;;  %v3027_v27 = vadd.f32 1.0, %v3950_v20 }
 0x9e3   : > { %v3954_v34 = vpop.eup %3953  ;;  %3963 = vrcp.f32 %v3022_v31  ;;  %v3025_v54 = vadd.f32 1.0, %v3952_v19 }
 0x9e4   : > { %v3956_v53 = vpop.eup %3955  ;;  %3965 = vrcp.f32 %v3027_v27  ;;  %v3028_v17 = vadd.f32 1.0, %v3954_v34 }
 0x9e5   : > { %3967 = vrcp.f32 %v3025_v54  ;;  %v3026_v63 = vadd.f32 1.0, %v3956_v53 }
 0x9e6   : > { %v3958_v59 = vpop.eup %3957  ;;  %3969 = vrcp.f32 %v3028_v17 }
 0x9e7   : > { %3071 = vst [vmem:[%s5508_s10 + $0x50] sm:$0xff] %v3958_v59  ;;  %3971 = vrcp.f32 %v3026_v63 }
 0x9eb   : > { %v3960_v55 = vpop.eup %3959 }
 0x9ec   : > { %v3962_v16 = vpop.eup %3961  ;;  %3069 = vst [vmem:[%s5508_s10 + $0x40] sm:$0xff] %v3960_v55 }
 0x9ed   : > { %v3964_v5 = vpop.eup %3963  ;;  %3072 = vst [vmem:[%s5508_s10 + $0x58] sm:$0xff] %v3962_v16 }
 0x9ee   : > { %v3966_v44 = vpop.eup %3965  ;;  %3070 = vst [vmem:[%s5508_s10 + $0x48] sm:$0xff] %v3964_v5 }
 0x9ef   : > { %v3968_v47 = vpop.eup %3967  ;;  %3075 = vst [vmem:[%s5508_s10 + $0x70] sm:$0xff] %v3966_v44 }
 0x9f0   : > { %v3970_v30 = vpop.eup %3969  ;;  %3073 = vst [vmem:[%s5508_s10 + $0x60] sm:$0xff] %v3968_v47 }
 0x9f1   : > { %v3972_v11 = vpop.eup %3971  ;;  %3076 = vst [vmem:[%s5508_s10 + $0x78] sm:$0xff] %v3970_v30 }
 0x9f2   : > { %3074 = vst [vmem:[%s5508_s10 + $0x68] sm:$0xff] %v3972_v11 }
 0x9f3 PF: > { %s17_s24 = sadd.s32 1, %s3979_s24  }
 0x9f4   : > { %p14_p4 = scmp.ge.s32.totalorder %s17_s24, 4  }
 0x9f6   :  { %16 = sbr.rel (!%p14_p4) target bundleno = 1 (0x1), region = 78 }

</bundles_post_ra>
